<compile_context>
chip_gen: v5e
topology: v5e:2x2
jax: 0.10.0
libtpu: 0.0.40
codegen_flags: <defaults>
</compile_context>

<pallas_src>
import jax
import jax.numpy as jnp
from jax import lax
from jax.experimental import pallas as pl
from jax.experimental.pallas import tpu as pltpu

EMB = 372          # embSize (fixed by the module)
NCLASS = 3         # noClasses
H = 32             # LSTMDims
R = 32             # ReLUDims
T = 8              # sequence length (len(quote))

LANE = 128         # TPU lane width
EMB_PAD = 384      # 372 -> 3*128
GPAD = 4 * LANE    # lane-aligned gate width (each gate in its own 128-lane block)


def quote_lstm_kernel(x_ref, wih_ref, whh_ref, blstm_ref,
                      w0_ref, b0_ref, w1_ref, b1_ref, w2_ref, b2_ref,
                      out_ref, xg_ref, hseq_ref):
    """Single-invocation kernel: LSTM recurrence + MLP + log_softmax.

    x_ref:    (T, EMB_PAD)       input sequence (zero-padded 372 -> 384)
    wih_ref:  (EMB_PAD, 4*128)   LSTM input weights, gate g in lanes [g*128, g*128+H)
    whh_ref:  (128, 4*128)       LSTM recurrent weights (rows >= H are zero)
    blstm_ref:(1, 4*128)         b_ih + b_hh (zero in padded lanes)
    w0_ref:   (128, 128)  b0_ref: (1, 128)    (zero-padded Linear0)
    w1_ref:   (128, 128)  b1_ref: (1, 128)    (zero-padded Linear1)
    w2_ref:   (128, 128)  b2_ref: (1, 128)    (zero-padded Linear2; valid cols 0..2)
    out_ref:  (T, 128)           log-softmax, valid in lanes 0..NCLASS-1
    xg_ref:   (T, 4*128)         scratch: hoisted input projection
    hseq_ref: (T, 128)           scratch: LSTM hidden states (lanes >= H stay 0)
    """
    seq_len = x_ref.shape[0]

    # ---- Hoisted input projection: one (T, EMB_PAD) @ (EMB_PAD, 512) matmul ----
    xg_ref[...] = (jnp.dot(x_ref[...], wih_ref[...],
                           preferred_element_type=jnp.float32)
                   + blstm_ref[...])

    # ---- Serial LSTM recurrence (fully unrolled, T is static) ----
    def step(t, carry):
        h, c = carry                                        # each (1, 128)
        gates = (xg_ref[pl.ds(t, 1), :]
                 + jnp.dot(h, whh_ref[...],
                           preferred_element_type=jnp.float32))   # (1, 512)
        # Whole-vreg gate slices (lane-aligned layout).
        i_g = jax.nn.sigmoid(gates[:, 0 * LANE:1 * LANE])
        f_g = jax.nn.sigmoid(gates[:, 1 * LANE:2 * LANE])
        g_g = jnp.tanh(gates[:, 2 * LANE:3 * LANE])
        o_g = jax.nn.sigmoid(gates[:, 3 * LANE:4 * LANE])
        # Padded lanes: gate pre-activations are 0 -> sigmoid=0.5, tanh=0, so
        # c_pad = 0.5*0 + 0.5*0 = 0 and h_pad = 0.5*tanh(0) = 0 stay exactly 0.
        c_new = f_g * c + i_g * g_g
        h_new = o_g * jnp.tanh(c_new)
        hseq_ref[pl.ds(t, 1), :] = h_new                    # full-vreg store
        return (h_new, c_new)

    h0 = jnp.zeros((1, LANE), jnp.float32)   # initializeHiddenState(): zeros
    c0 = jnp.zeros((1, LANE), jnp.float32)
    lax.fori_loop(0, seq_len, step, (h0, c0), unroll=True)

    # ---- Dense head (lane-dense, all 128-wide) ----
    hs = hseq_ref[...]                                      # (T, 128)
    z = jnp.maximum(
        jnp.dot(hs, w0_ref[...], preferred_element_type=jnp.float32) + b0_ref[...],
        0.0)
    z = jnp.maximum(
        jnp.dot(z, w1_ref[...], preferred_element_type=jnp.float32) + b1_ref[...],
        0.0)
    # TODO(synk): Dropout(p=0.5) treated as identity (eval/inference semantics).
    logits = (jnp.dot(z, w2_ref[...], preferred_element_type=jnp.float32)
              + b2_ref[...])                                # (T, 128); cols >= 3 invalid

    # Masked, numerically stable log_softmax over the first NCLASS lanes.
    lane_idx = lax.broadcasted_iota(jnp.int32, logits.shape, 1)
    valid = lane_idx < NCLASS
    neg = jnp.float32(-1e30)
    logits_m = jnp.where(valid, logits, neg)
    m = jnp.max(logits_m, axis=1, keepdims=True)
    s = logits_m - m
    lse = jnp.log(jnp.sum(jnp.exp(s), axis=1, keepdims=True))
    out_ref[...] = s - lse            # lanes >= NCLASS are garbage, sliced off outside


def _pad_params(params):
    """Wrapper-side layout plumbing: lane-align all weights (pure XLA, no kernel cost)."""
    wih, whh, blstm, w0, b0, w1, b1, w2, b2 = params

    wih_p = jnp.zeros((EMB_PAD, GPAD), jnp.float32)
    whh_p = jnp.zeros((LANE, GPAD), jnp.float32)
    blstm_p = jnp.zeros((1, GPAD), jnp.float32)
    for g in range(4):   # gate g -> lanes [g*128, g*128 + H)
        wih_p = wih_p.at[:EMB, g * LANE:g * LANE + H].set(wih[:, g * H:(g + 1) * H])
        whh_p = whh_p.at[:H, g * LANE:g * LANE + H].set(whh[:, g * H:(g + 1) * H])
        blstm_p = blstm_p.at[:, g * LANE:g * LANE + H].set(blstm[:, g * H:(g + 1) * H])

    w0_p = jnp.zeros((LANE, LANE), jnp.float32).at[:H, :R].set(w0)
    b0_p = jnp.zeros((1, LANE), jnp.float32).at[:, :R].set(b0)
    w1_p = jnp.zeros((LANE, LANE), jnp.float32).at[:R, :R].set(w1)
    b1_p = jnp.zeros((1, LANE), jnp.float32).at[:, :R].set(b1)
    w2_p = jnp.zeros((LANE, LANE), jnp.float32).at[:R, :NCLASS].set(w2)
    b2_p = jnp.zeros((1, LANE), jnp.float32).at[:, :NCLASS].set(b2)
    return (wih_p, whh_p, blstm_p, w0_p, b0_p, w1_p, b1_p, w2_p, b2_p)


@jax.jit
def quote_lstm_forward(x, params):
    seq_len = x.shape[0]
    x_p = jnp.zeros((seq_len, EMB_PAD), jnp.float32).at[:, :EMB].set(x)
    padded = _pad_params(params)

    vmem = pl.BlockSpec(memory_space=pltpu.MemorySpace.VMEM)
    out_padded = pl.pallas_call(
        quote_lstm_kernel,
        out_shape=jax.ShapeDtypeStruct((seq_len, LANE), jnp.float32),
        in_specs=[vmem] * 10,
        out_specs=vmem,
        scratch_shapes=[
            pltpu.VMEM((seq_len, GPAD), jnp.float32),   # hoisted input projection
            pltpu.VMEM((seq_len, LANE), jnp.float32),   # hidden-state sequence
        ],
    )(x_p, *padded)
    return out_padded[:, :NCLASS]


def init_params(key):
    """Deterministic init mimicking PyTorch's default uniform(-1/sqrt(fan), 1/sqrt(fan))."""
    ks = jax.random.split(key, 10)
    k_lstm = 1.0 / jnp.sqrt(H)

    def u(k, shape, bound):
        return jax.random.uniform(k, shape, jnp.float32, -bound, bound)

    wih = u(ks[0], (EMB, 4 * H), k_lstm)          # transposed weight_ih_l0
    whh = u(ks[1], (H, 4 * H), k_lstm)            # transposed weight_hh_l0
    blstm = (u(ks[2], (1, 4 * H), k_lstm) + u(ks[3], (1, 4 * H), k_lstm))  # b_ih + b_hh

    k0 = 1.0 / jnp.sqrt(H)
    w0 = u(ks[4], (H, R), k0)
    b0 = u(ks[5], (1, R), k0)
    k1 = 1.0 / jnp.sqrt(R)
    w1 = u(ks[6], (R, R), k1)
    b1 = u(ks[7], (1, R), k1)
    w2 = u(ks[8], (R, NCLASS), k1)
    b2 = u(ks[9], (1, NCLASS), k1)
    return (wih, whh, blstm, w0, b0, w1, b1, w2, b2)


def reference_forward(x, params):
    """Pure-JAX reference of the same forward pass (unpadded, for correctness check)."""
    wih, whh, blstm, w0, b0, w1, b1, w2, b2 = params

    def step(carry, x_t):
        h, c = carry
        gates = x_t[None, :] @ wih + h @ whh + blstm
        i_g = jax.nn.sigmoid(gates[:, 0 * H:1 * H])
        f_g = jax.nn.sigmoid(gates[:, 1 * H:2 * H])
        g_g = jnp.tanh(gates[:, 2 * H:3 * H])
        o_g = jax.nn.sigmoid(gates[:, 3 * H:4 * H])
        c_new = f_g * c + i_g * g_g
        h_new = o_g * jnp.tanh(c_new)
        return (h_new, c_new), h_new[0]

    init = (jnp.zeros((1, H), jnp.float32), jnp.zeros((1, H), jnp.float32))
    _, hs = lax.scan(step, init, x)
    z = jnp.maximum(hs @ w0 + b0, 0.0)
    z = jnp.maximum(z @ w1 + b1, 0.0)
    logits = z @ w2 + b2
    return jax.nn.log_softmax(logits, axis=1)


if __name__ == "__main__":
    key = jax.random.PRNGKey(0)
    k_x, k_p = jax.random.split(key)
    # quote: (T, embSize) -> PyTorch views it as (T, 1, embSize) for the LSTM
    x = jax.random.normal(k_x, (T, EMB), jnp.float32)
    params = init_params(k_p)

    out = quote_lstm_forward(x, params)
    out = jax.block_until_ready(out)

    ref = reference_forward(x, params)
    assert out.shape == (T, NCLASS)
    assert jnp.allclose(out, ref, rtol=1e-4, atol=1e-4), "mismatch vs. pure-JAX reference"

    print("KERNEL_OK")
</pallas_src>

<mosaic_0001>
module attributes {stable_mosaic.version = 11 : i64} {
  func.func @quote_lstm_kernel(%arg0: memref<8x384xf32, #tpu.memory_space<vmem>>, %arg1: memref<384x512xf32, #tpu.memory_space<vmem>>, %arg2: memref<128x512xf32, #tpu.memory_space<vmem>>, %arg3: memref<1x512xf32, #tpu.memory_space<vmem>>, %arg4: memref<128x128xf32, #tpu.memory_space<vmem>>, %arg5: memref<1x128xf32, #tpu.memory_space<vmem>>, %arg6: memref<128x128xf32, #tpu.memory_space<vmem>>, %arg7: memref<1x128xf32, #tpu.memory_space<vmem>>, %arg8: memref<128x128xf32, #tpu.memory_space<vmem>>, %arg9: memref<1x128xf32, #tpu.memory_space<vmem>>, %arg10: memref<8x128xf32, #tpu.memory_space<vmem>>, %arg11: memref<8x512xf32, #tpu.memory_space<vmem>>, %arg12: memref<8x128xf32, #tpu.memory_space<vmem>>) attributes {dimension_semantics = [], scalar_prefetch = 0 : i64, scratch_operands = 2 : i64, tpu.core_type = #tpu.core_type<tc>} {
    %c0 = arith.constant 0 : index
    %c0_0 = arith.constant 0 : index
    %0 = vector.load %arg0[%c0, %c0_0] : memref<8x384xf32, #tpu.memory_space<vmem>>, vector<8x384xf32>
    %c0_1 = arith.constant 0 : index
    %c0_2 = arith.constant 0 : index
    %1 = vector.load %arg1[%c0_1, %c0_2] : memref<384x512xf32, #tpu.memory_space<vmem>>, vector<384x512xf32>
    %cst = arith.constant dense<0.000000e+00> : vector<8x512xf32>
    %2 = tpu.matmul %0, %1, %cst {dimension_numbers = #tpu.dot_dimension_numbers<[1], [0], [0], [1], [0, 0, 1, 1], [], []>} : vector<8x384xf32>, vector<384x512xf32>, vector<8x512xf32> -> vector<8x512xf32>
    %c0_3 = arith.constant 0 : index
    %c0_4 = arith.constant 0 : index
    %3 = vector.load %arg3[%c0_3, %c0_4] : memref<1x512xf32, #tpu.memory_space<vmem>>, vector<1x512xf32>
    %4 = vector.broadcast %3 : vector<1x512xf32> to vector<8x512xf32>
    %5 = arith.addf %2, %4 : vector<8x512xf32>
    %c0_5 = arith.constant 0 : index
    %c0_6 = arith.constant 0 : index
    %6 = vector.load %arg11[%c0_5, %c0_6] : memref<8x512xf32, #tpu.memory_space<vmem>>, vector<8x512xf32>
    tpu.vector_store %arg11[%c0_5, %c0_6], %5 {strides = array<i32>} : memref<8x512xf32, #tpu.memory_space<vmem>>, vector<8x512xf32>,
    %cst_7 = arith.constant 0.000000e+00 : f32
    %7 = vector.broadcast %cst_7 : f32 to vector<1x128xf32>
    %cst_8 = arith.constant 0.000000e+00 : f32
    %8 = vector.broadcast %cst_8 : f32 to vector<1x128xf32>
    %c0_i32 = arith.constant 0 : i32
    %9 = arith.index_cast %c0_i32 : i32 to index
    %c0_9 = arith.constant 0 : index
    %10 = vector.load %arg11[%9, %c0_9] : memref<8x512xf32, #tpu.memory_space<vmem>>, vector<1x512xf32>
    %c0_10 = arith.constant 0 : index
    %c0_11 = arith.constant 0 : index
    %11 = vector.load %arg2[%c0_10, %c0_11] : memref<128x512xf32, #tpu.memory_space<vmem>>, vector<128x512xf32>
    %cst_12 = arith.constant dense<0.000000e+00> : vector<1x512xf32>
    %12 = tpu.matmul %7, %11, %cst_12 {dimension_numbers = #tpu.dot_dimension_numbers<[1], [0], [0], [1], [0, 0, 1, 1], [], []>} : vector<1x128xf32>, vector<128x512xf32>, vector<1x512xf32> -> vector<1x512xf32>
    %13 = arith.addf %10, %12 : vector<1x512xf32>
    %14 = vector.extract_strided_slice %13 {offsets = [0, 0], sizes = [1, 128], strides = [1, 1]} : vector<1x512xf32> to vector<1x128xf32>
    %15 = arith.negf %14 : vector<1x128xf32>
    %16 = math.exp %15 : vector<1x128xf32>
    %cst_13 = arith.constant 1.000000e+00 : f32
    %17 = vector.broadcast %cst_13 : f32 to vector<1x128xf32>
    %18 = arith.addf %17, %16 : vector<1x128xf32>
    %19 = arith.divf %17, %18 : vector<1x128xf32>
    %20 = vector.extract_strided_slice %13 {offsets = [0, 128], sizes = [1, 128], strides = [1, 1]} : vector<1x512xf32> to vector<1x128xf32>
    %21 = arith.negf %20 : vector<1x128xf32>
    %22 = math.exp %21 : vector<1x128xf32>
    %cst_14 = arith.constant 1.000000e+00 : f32
    %23 = vector.broadcast %cst_14 : f32 to vector<1x128xf32>
    %24 = arith.addf %23, %22 : vector<1x128xf32>
    %25 = arith.divf %23, %24 : vector<1x128xf32>
    %26 = vector.extract_strided_slice %13 {offsets = [0, 256], sizes = [1, 128], strides = [1, 1]} : vector<1x512xf32> to vector<1x128xf32>
    %27 = math.tanh %26 : vector<1x128xf32>
    %28 = vector.extract_strided_slice %13 {offsets = [0, 384], sizes = [1, 128], strides = [1, 1]} : vector<1x512xf32> to vector<1x128xf32>
    %29 = arith.negf %28 : vector<1x128xf32>
    %30 = math.exp %29 : vector<1x128xf32>
    %cst_15 = arith.constant 1.000000e+00 : f32
    %31 = vector.broadcast %cst_15 : f32 to vector<1x128xf32>
    %32 = arith.addf %31, %30 : vector<1x128xf32>
    %33 = arith.divf %31, %32 : vector<1x128xf32>
    %34 = arith.mulf %25, %8 : vector<1x128xf32>
    %35 = arith.mulf %19, %27 : vector<1x128xf32>
    %36 = arith.addf %34, %35 : vector<1x128xf32>
    %37 = math.tanh %36 : vector<1x128xf32>
    %38 = arith.mulf %33, %37 : vector<1x128xf32>
    %39 = arith.index_cast %c0_i32 : i32 to index
    %c0_16 = arith.constant 0 : index
    %40 = vector.load %arg12[%39, %c0_16] : memref<8x128xf32, #tpu.memory_space<vmem>>, vector<1x128xf32>
    tpu.vector_store %arg12[%39, %c0_16], %38 {strides = array<i32>} : memref<8x128xf32, #tpu.memory_space<vmem>>, vector<1x128xf32>,
    %c1_i32 = arith.constant 1 : i32
    %41 = arith.index_cast %c1_i32 : i32 to index
    %c0_17 = arith.constant 0 : index
    %42 = vector.load %arg11[%41, %c0_17] : memref<8x512xf32, #tpu.memory_space<vmem>>, vector<1x512xf32>
    %c0_18 = arith.constant 0 : index
    %c0_19 = arith.constant 0 : index
    %43 = vector.load %arg2[%c0_18, %c0_19] : memref<128x512xf32, #tpu.memory_space<vmem>>, vector<128x512xf32>
    %cst_20 = arith.constant dense<0.000000e+00> : vector<1x512xf32>
    %44 = tpu.matmul %38, %43, %cst_20 {dimension_numbers = #tpu.dot_dimension_numbers<[1], [0], [0], [1], [0, 0, 1, 1], [], []>} : vector<1x128xf32>, vector<128x512xf32>, vector<1x512xf32> -> vector<1x512xf32>
    %45 = arith.addf %42, %44 : vector<1x512xf32>
    %46 = vector.extract_strided_slice %45 {offsets = [0, 0], sizes = [1, 128], strides = [1, 1]} : vector<1x512xf32> to vector<1x128xf32>
    %47 = arith.negf %46 : vector<1x128xf32>
    %48 = math.exp %47 : vector<1x128xf32>
    %cst_21 = arith.constant 1.000000e+00 : f32
    %49 = vector.broadcast %cst_21 : f32 to vector<1x128xf32>
    %50 = arith.addf %49, %48 : vector<1x128xf32>
    %51 = arith.divf %49, %50 : vector<1x128xf32>
    %52 = vector.extract_strided_slice %45 {offsets = [0, 128], sizes = [1, 128], strides = [1, 1]} : vector<1x512xf32> to vector<1x128xf32>
    %53 = arith.negf %52 : vector<1x128xf32>
    %54 = math.exp %53 : vector<1x128xf32>
    %cst_22 = arith.constant 1.000000e+00 : f32
    %55 = vector.broadcast %cst_22 : f32 to vector<1x128xf32>
    %56 = arith.addf %55, %54 : vector<1x128xf32>
    %57 = arith.divf %55, %56 : vector<1x128xf32>
    %58 = vector.extract_strided_slice %45 {offsets = [0, 256], sizes = [1, 128], strides = [1, 1]} : vector<1x512xf32> to vector<1x128xf32>
    %59 = math.tanh %58 : vector<1x128xf32>
    %60 = vector.extract_strided_slice %45 {offsets = [0, 384], sizes = [1, 128], strides = [1, 1]} : vector<1x512xf32> to vector<1x128xf32>
    %61 = arith.negf %60 : vector<1x128xf32>
    %62 = math.exp %61 : vector<1x128xf32>
    %cst_23 = arith.constant 1.000000e+00 : f32
    %63 = vector.broadcast %cst_23 : f32 to vector<1x128xf32>
    %64 = arith.addf %63, %62 : vector<1x128xf32>
    %65 = arith.divf %63, %64 : vector<1x128xf32>
    %66 = arith.mulf %57, %36 : vector<1x128xf32>
    %67 = arith.mulf %51, %59 : vector<1x128xf32>
    %68 = arith.addf %66, %67 : vector<1x128xf32>
    %69 = math.tanh %68 : vector<1x128xf32>
    %70 = arith.mulf %65, %69 : vector<1x128xf32>
    %71 = arith.index_cast %c1_i32 : i32 to index
    %c0_24 = arith.constant 0 : index
    %72 = vector.load %arg12[%71, %c0_24] : memref<8x128xf32, #tpu.memory_space<vmem>>, vector<1x128xf32>
    tpu.vector_store %arg12[%71, %c0_24], %70 {strides = array<i32>} : memref<8x128xf32, #tpu.memory_space<vmem>>, vector<1x128xf32>,
    %c2_i32 = arith.constant 2 : i32
    %73 = arith.index_cast %c2_i32 : i32 to index
    %c0_25 = arith.constant 0 : index
    %74 = vector.load %arg11[%73, %c0_25] : memref<8x512xf32, #tpu.memory_space<vmem>>, vector<1x512xf32>
    %c0_26 = arith.constant 0 : index
    %c0_27 = arith.constant 0 : index
    %75 = vector.load %arg2[%c0_26, %c0_27] : memref<128x512xf32, #tpu.memory_space<vmem>>, vector<128x512xf32>
    %cst_28 = arith.constant dense<0.000000e+00> : vector<1x512xf32>
    %76 = tpu.matmul %70, %75, %cst_28 {dimension_numbers = #tpu.dot_dimension_numbers<[1], [0], [0], [1], [0, 0, 1, 1], [], []>} : vector<1x128xf32>, vector<128x512xf32>, vector<1x512xf32> -> vector<1x512xf32>
    %77 = arith.addf %74, %76 : vector<1x512xf32>
    %78 = vector.extract_strided_slice %77 {offsets = [0, 0], sizes = [1, 128], strides = [1, 1]} : vector<1x512xf32> to vector<1x128xf32>
    %79 = arith.negf %78 : vector<1x128xf32>
    %80 = math.exp %79 : vector<1x128xf32>
    %cst_29 = arith.constant 1.000000e+00 : f32
    %81 = vector.broadcast %cst_29 : f32 to vector<1x128xf32>
    %82 = arith.addf %81, %80 : vector<1x128xf32>
    %83 = arith.divf %81, %82 : vector<1x128xf32>
    %84 = vector.extract_strided_slice %77 {offsets = [0, 128], sizes = [1, 128], strides = [1, 1]} : vector<1x512xf32> to vector<1x128xf32>
    %85 = arith.negf %84 : vector<1x128xf32>
    %86 = math.exp %85 : vector<1x128xf32>
    %cst_30 = arith.constant 1.000000e+00 : f32
    %87 = vector.broadcast %cst_30 : f32 to vector<1x128xf32>
    %88 = arith.addf %87, %86 : vector<1x128xf32>
    %89 = arith.divf %87, %88 : vector<1x128xf32>
    %90 = vector.extract_strided_slice %77 {offsets = [0, 256], sizes = [1, 128], strides = [1, 1]} : vector<1x512xf32> to vector<1x128xf32>
    %91 = math.tanh %90 : vector<1x128xf32>
    %92 = vector.extract_strided_slice %77 {offsets = [0, 384], sizes = [1, 128], strides = [1, 1]} : vector<1x512xf32> to vector<1x128xf32>
    %93 = arith.negf %92 : vector<1x128xf32>
    %94 = math.exp %93 : vector<1x128xf32>
    %cst_31 = arith.constant 1.000000e+00 : f32
    %95 = vector.broadcast %cst_31 : f32 to vector<1x128xf32>
    %96 = arith.addf %95, %94 : vector<1x128xf32>
    %97 = arith.divf %95, %96 : vector<1x128xf32>
    %98 = arith.mulf %89, %68 : vector<1x128xf32>
    %99 = arith.mulf %83, %91 : vector<1x128xf32>
    %100 = arith.addf %98, %99 : vector<1x128xf32>
    %101 = math.tanh %100 : vector<1x128xf32>
    %102 = arith.mulf %97, %101 : vector<1x128xf32>
    %103 = arith.index_cast %c2_i32 : i32 to index
    %c0_32 = arith.constant 0 : index
    %104 = vector.load %arg12[%103, %c0_32] : memref<8x128xf32, #tpu.memory_space<vmem>>, vector<1x128xf32>
    tpu.vector_store %arg12[%103, %c0_32], %102 {strides = array<i32>} : memref<8x128xf32, #tpu.memory_space<vmem>>, vector<1x128xf32>,
    %c3_i32 = arith.constant 3 : i32
    %105 = arith.index_cast %c3_i32 : i32 to index
    %c0_33 = arith.constant 0 : index
    %106 = vector.load %arg11[%105, %c0_33] : memref<8x512xf32, #tpu.memory_space<vmem>>, vector<1x512xf32>
    %c0_34 = arith.constant 0 : index
    %c0_35 = arith.constant 0 : index
    %107 = vector.load %arg2[%c0_34, %c0_35] : memref<128x512xf32, #tpu.memory_space<vmem>>, vector<128x512xf32>
    %cst_36 = arith.constant dense<0.000000e+00> : vector<1x512xf32>
    %108 = tpu.matmul %102, %107, %cst_36 {dimension_numbers = #tpu.dot_dimension_numbers<[1], [0], [0], [1], [0, 0, 1, 1], [], []>} : vector<1x128xf32>, vector<128x512xf32>, vector<1x512xf32> -> vector<1x512xf32>
    %109 = arith.addf %106, %108 : vector<1x512xf32>
    %110 = vector.extract_strided_slice %109 {offsets = [0, 0], sizes = [1, 128], strides = [1, 1]} : vector<1x512xf32> to vector<1x128xf32>
    %111 = arith.negf %110 : vector<1x128xf32>
    %112 = math.exp %111 : vector<1x128xf32>
    %cst_37 = arith.constant 1.000000e+00 : f32
    %113 = vector.broadcast %cst_37 : f32 to vector<1x128xf32>
    %114 = arith.addf %113, %112 : vector<1x128xf32>
    %115 = arith.divf %113, %114 : vector<1x128xf32>
    %116 = vector.extract_strided_slice %109 {offsets = [0, 128], sizes = [1, 128], strides = [1, 1]} : vector<1x512xf32> to vector<1x128xf32>
    %117 = arith.negf %116 : vector<1x128xf32>
    %118 = math.exp %117 : vector<1x128xf32>
    %cst_38 = arith.constant 1.000000e+00 : f32
    %119 = vector.broadcast %cst_38 : f32 to vector<1x128xf32>
    %120 = arith.addf %119, %118 : vector<1x128xf32>
    %121 = arith.divf %119, %120 : vector<1x128xf32>
    %122 = vector.extract_strided_slice %109 {offsets = [0, 256], sizes = [1, 128], strides = [1, 1]} : vector<1x512xf32> to vector<1x128xf32>
    %123 = math.tanh %122 : vector<1x128xf32>
    %124 = vector.extract_strided_slice %109 {offsets = [0, 384], sizes = [1, 128], strides = [1, 1]} : vector<1x512xf32> to vector<1x128xf32>
    %125 = arith.negf %124 : vector<1x128xf32>
    %126 = math.exp %125 : vector<1x128xf32>
    %cst_39 = arith.constant 1.000000e+00 : f32
    %127 = vector.broadcast %cst_39 : f32 to vector<1x128xf32>
    %128 = arith.addf %127, %126 : vector<1x128xf32>
    %129 = arith.divf %127, %128 : vector<1x128xf32>
    %130 = arith.mulf %121, %100 : vector<1x128xf32>
    %131 = arith.mulf %115, %123 : vector<1x128xf32>
    %132 = arith.addf %130, %131 : vector<1x128xf32>
    %133 = math.tanh %132 : vector<1x128xf32>
    %134 = arith.mulf %129, %133 : vector<1x128xf32>
    %135 = arith.index_cast %c3_i32 : i32 to index
    %c0_40 = arith.constant 0 : index
    %136 = vector.load %arg12[%135, %c0_40] : memref<8x128xf32, #tpu.memory_space<vmem>>, vector<1x128xf32>
    tpu.vector_store %arg12[%135, %c0_40], %134 {strides = array<i32>} : memref<8x128xf32, #tpu.memory_space<vmem>>, vector<1x128xf32>,
    %c4_i32 = arith.constant 4 : i32
    %137 = arith.index_cast %c4_i32 : i32 to index
    %c0_41 = arith.constant 0 : index
    %138 = vector.load %arg11[%137, %c0_41] : memref<8x512xf32, #tpu.memory_space<vmem>>, vector<1x512xf32>
    %c0_42 = arith.constant 0 : index
    %c0_43 = arith.constant 0 : index
    %139 = vector.load %arg2[%c0_42, %c0_43] : memref<128x512xf32, #tpu.memory_space<vmem>>, vector<128x512xf32>
    %cst_44 = arith.constant dense<0.000000e+00> : vector<1x512xf32>
    %140 = tpu.matmul %134, %139, %cst_44 {dimension_numbers = #tpu.dot_dimension_numbers<[1], [0], [0], [1], [0, 0, 1, 1], [], []>} : vector<1x128xf32>, vector<128x512xf32>, vector<1x512xf32> -> vector<1x512xf32>
    %141 = arith.addf %138, %140 : vector<1x512xf32>
    %142 = vector.extract_strided_slice %141 {offsets = [0, 0], sizes = [1, 128], strides = [1, 1]} : vector<1x512xf32> to vector<1x128xf32>
    %143 = arith.negf %142 : vector<1x128xf32>
    %144 = math.exp %143 : vector<1x128xf32>
    %cst_45 = arith.constant 1.000000e+00 : f32
    %145 = vector.broadcast %cst_45 : f32 to vector<1x128xf32>
    %146 = arith.addf %145, %144 : vector<1x128xf32>
    %147 = arith.divf %145, %146 : vector<1x128xf32>
    %148 = vector.extract_strided_slice %141 {offsets = [0, 128], sizes = [1, 128], strides = [1, 1]} : vector<1x512xf32> to vector<1x128xf32>
    %149 = arith.negf %148 : vector<1x128xf32>
    %150 = math.exp %149 : vector<1x128xf32>
    %cst_46 = arith.constant 1.000000e+00 : f32
    %151 = vector.broadcast %cst_46 : f32 to vector<1x128xf32>
    %152 = arith.addf %151, %150 : vector<1x128xf32>
    %153 = arith.divf %151, %152 : vector<1x128xf32>
    %154 = vector.extract_strided_slice %141 {offsets = [0, 256], sizes = [1, 128], strides = [1, 1]} : vector<1x512xf32> to vector<1x128xf32>
    %155 = math.tanh %154 : vector<1x128xf32>
    %156 = vector.extract_strided_slice %141 {offsets = [0, 384], sizes = [1, 128], strides = [1, 1]} : vector<1x512xf32> to vector<1x128xf32>
    %157 = arith.negf %156 : vector<1x128xf32>
    %158 = math.exp %157 : vector<1x128xf32>
    %cst_47 = arith.constant 1.000000e+00 : f32
    %159 = vector.broadcast %cst_47 : f32 to vector<1x128xf32>
    %160 = arith.addf %159, %158 : vector<1x128xf32>
    %161 = arith.divf %159, %160 : vector<1x128xf32>
    %162 = arith.mulf %153, %132 : vector<1x128xf32>
    %163 = arith.mulf %147, %155 : vector<1x128xf32>
    %164 = arith.addf %162, %163 : vector<1x128xf32>
    %165 = math.tanh %164 : vector<1x128xf32>
    %166 = arith.mulf %161, %165 : vector<1x128xf32>
    %167 = arith.index_cast %c4_i32 : i32 to index
    %c0_48 = arith.constant 0 : index
    %168 = vector.load %arg12[%167, %c0_48] : memref<8x128xf32, #tpu.memory_space<vmem>>, vector<1x128xf32>
    tpu.vector_store %arg12[%167, %c0_48], %166 {strides = array<i32>} : memref<8x128xf32, #tpu.memory_space<vmem>>, vector<1x128xf32>,
    %c5_i32 = arith.constant 5 : i32
    %169 = arith.index_cast %c5_i32 : i32 to index
    %c0_49 = arith.constant 0 : index
    %170 = vector.load %arg11[%169, %c0_49] : memref<8x512xf32, #tpu.memory_space<vmem>>, vector<1x512xf32>
    %c0_50 = arith.constant 0 : index
    %c0_51 = arith.constant 0 : index
    %171 = vector.load %arg2[%c0_50, %c0_51] : memref<128x512xf32, #tpu.memory_space<vmem>>, vector<128x512xf32>
    %cst_52 = arith.constant dense<0.000000e+00> : vector<1x512xf32>
    %172 = tpu.matmul %166, %171, %cst_52 {dimension_numbers = #tpu.dot_dimension_numbers<[1], [0], [0], [1], [0, 0, 1, 1], [], []>} : vector<1x128xf32>, vector<128x512xf32>, vector<1x512xf32> -> vector<1x512xf32>
    %173 = arith.addf %170, %172 : vector<1x512xf32>
    %174 = vector.extract_strided_slice %173 {offsets = [0, 0], sizes = [1, 128], strides = [1, 1]} : vector<1x512xf32> to vector<1x128xf32>
    %175 = arith.negf %174 : vector<1x128xf32>
    %176 = math.exp %175 : vector<1x128xf32>
    %cst_53 = arith.constant 1.000000e+00 : f32
    %177 = vector.broadcast %cst_53 : f32 to vector<1x128xf32>
    %178 = arith.addf %177, %176 : vector<1x128xf32>
    %179 = arith.divf %177, %178 : vector<1x128xf32>
    %180 = vector.extract_strided_slice %173 {offsets = [0, 128], sizes = [1, 128], strides = [1, 1]} : vector<1x512xf32> to vector<1x128xf32>
    %181 = arith.negf %180 : vector<1x128xf32>
    %182 = math.exp %181 : vector<1x128xf32>
    %cst_54 = arith.constant 1.000000e+00 : f32
    %183 = vector.broadcast %cst_54 : f32 to vector<1x128xf32>
    %184 = arith.addf %183, %182 : vector<1x128xf32>
    %185 = arith.divf %183, %184 : vector<1x128xf32>
    %186 = vector.extract_strided_slice %173 {offsets = [0, 256], sizes = [1, 128], strides = [1, 1]} : vector<1x512xf32> to vector<1x128xf32>
    %187 = math.tanh %186 : vector<1x128xf32>
    %188 = vector.extract_strided_slice %173 {offsets = [0, 384], sizes = [1, 128], strides = [1, 1]} : vector<1x512xf32> to vector<1x128xf32>
    %189 = arith.negf %188 : vector<1x128xf32>
    %190 = math.exp %189 : vector<1x128xf32>
    %cst_55 = arith.constant 1.000000e+00 : f32
    %191 = vector.broadcast %cst_55 : f32 to vector<1x128xf32>
    %192 = arith.addf %191, %190 : vector<1x128xf32>
    %193 = arith.divf %191, %192 : vector<1x128xf32>
    %194 = arith.mulf %185, %164 : vector<1x128xf32>
    %195 = arith.mulf %179, %187 : vector<1x128xf32>
    %196 = arith.addf %194, %195 : vector<1x128xf32>
    %197 = math.tanh %196 : vector<1x128xf32>
    %198 = arith.mulf %193, %197 : vector<1x128xf32>
    %199 = arith.index_cast %c5_i32 : i32 to index
    %c0_56 = arith.constant 0 : index
    %200 = vector.load %arg12[%199, %c0_56] : memref<8x128xf32, #tpu.memory_space<vmem>>, vector<1x128xf32>
    tpu.vector_store %arg12[%199, %c0_56], %198 {strides = array<i32>} : memref<8x128xf32, #tpu.memory_space<vmem>>, vector<1x128xf32>,
    %c6_i32 = arith.constant 6 : i32
    %201 = arith.index_cast %c6_i32 : i32 to index
    %c0_57 = arith.constant 0 : index
    %202 = vector.load %arg11[%201, %c0_57] : memref<8x512xf32, #tpu.memory_space<vmem>>, vector<1x512xf32>
    %c0_58 = arith.constant 0 : index
    %c0_59 = arith.constant 0 : index
    %203 = vector.load %arg2[%c0_58, %c0_59] : memref<128x512xf32, #tpu.memory_space<vmem>>, vector<128x512xf32>
    %cst_60 = arith.constant dense<0.000000e+00> : vector<1x512xf32>
    %204 = tpu.matmul %198, %203, %cst_60 {dimension_numbers = #tpu.dot_dimension_numbers<[1], [0], [0], [1], [0, 0, 1, 1], [], []>} : vector<1x128xf32>, vector<128x512xf32>, vector<1x512xf32> -> vector<1x512xf32>
    %205 = arith.addf %202, %204 : vector<1x512xf32>
    %206 = vector.extract_strided_slice %205 {offsets = [0, 0], sizes = [1, 128], strides = [1, 1]} : vector<1x512xf32> to vector<1x128xf32>
    %207 = arith.negf %206 : vector<1x128xf32>
    %208 = math.exp %207 : vector<1x128xf32>
    %cst_61 = arith.constant 1.000000e+00 : f32
    %209 = vector.broadcast %cst_61 : f32 to vector<1x128xf32>
    %210 = arith.addf %209, %208 : vector<1x128xf32>
    %211 = arith.divf %209, %210 : vector<1x128xf32>
    %212 = vector.extract_strided_slice %205 {offsets = [0, 128], sizes = [1, 128], strides = [1, 1]} : vector<1x512xf32> to vector<1x128xf32>
    %213 = arith.negf %212 : vector<1x128xf32>
    %214 = math.exp %213 : vector<1x128xf32>
    %cst_62 = arith.constant 1.000000e+00 : f32
    %215 = vector.broadcast %cst_62 : f32 to vector<1x128xf32>
    %216 = arith.addf %215, %214 : vector<1x128xf32>
    %217 = arith.divf %215, %216 : vector<1x128xf32>
    %218 = vector.extract_strided_slice %205 {offsets = [0, 256], sizes = [1, 128], strides = [1, 1]} : vector<1x512xf32> to vector<1x128xf32>
    %219 = math.tanh %218 : vector<1x128xf32>
    %220 = vector.extract_strided_slice %205 {offsets = [0, 384], sizes = [1, 128], strides = [1, 1]} : vector<1x512xf32> to vector<1x128xf32>
    %221 = arith.negf %220 : vector<1x128xf32>
    %222 = math.exp %221 : vector<1x128xf32>
    %cst_63 = arith.constant 1.000000e+00 : f32
    %223 = vector.broadcast %cst_63 : f32 to vector<1x128xf32>
    %224 = arith.addf %223, %222 : vector<1x128xf32>
    %225 = arith.divf %223, %224 : vector<1x128xf32>
    %226 = arith.mulf %217, %196 : vector<1x128xf32>
    %227 = arith.mulf %211, %219 : vector<1x128xf32>
    %228 = arith.addf %226, %227 : vector<1x128xf32>
    %229 = math.tanh %228 : vector<1x128xf32>
    %230 = arith.mulf %225, %229 : vector<1x128xf32>
    %231 = arith.index_cast %c6_i32 : i32 to index
    %c0_64 = arith.constant 0 : index
    %232 = vector.load %arg12[%231, %c0_64] : memref<8x128xf32, #tpu.memory_space<vmem>>, vector<1x128xf32>
    tpu.vector_store %arg12[%231, %c0_64], %230 {strides = array<i32>} : memref<8x128xf32, #tpu.memory_space<vmem>>, vector<1x128xf32>,
    %c7_i32 = arith.constant 7 : i32
    %233 = arith.index_cast %c7_i32 : i32 to index
    %c0_65 = arith.constant 0 : index
    %234 = vector.load %arg11[%233, %c0_65] : memref<8x512xf32, #tpu.memory_space<vmem>>, vector<1x512xf32>
    %c0_66 = arith.constant 0 : index
    %c0_67 = arith.constant 0 : index
    %235 = vector.load %arg2[%c0_66, %c0_67] : memref<128x512xf32, #tpu.memory_space<vmem>>, vector<128x512xf32>
    %cst_68 = arith.constant dense<0.000000e+00> : vector<1x512xf32>
    %236 = tpu.matmul %230, %235, %cst_68 {dimension_numbers = #tpu.dot_dimension_numbers<[1], [0], [0], [1], [0, 0, 1, 1], [], []>} : vector<1x128xf32>, vector<128x512xf32>, vector<1x512xf32> -> vector<1x512xf32>
    %237 = arith.addf %234, %236 : vector<1x512xf32>
    %238 = vector.extract_strided_slice %237 {offsets = [0, 0], sizes = [1, 128], strides = [1, 1]} : vector<1x512xf32> to vector<1x128xf32>
    %239 = arith.negf %238 : vector<1x128xf32>
    %240 = math.exp %239 : vector<1x128xf32>
    %cst_69 = arith.constant 1.000000e+00 : f32
    %241 = vector.broadcast %cst_69 : f32 to vector<1x128xf32>
    %242 = arith.addf %241, %240 : vector<1x128xf32>
    %243 = arith.divf %241, %242 : vector<1x128xf32>
    %244 = vector.extract_strided_slice %237 {offsets = [0, 128], sizes = [1, 128], strides = [1, 1]} : vector<1x512xf32> to vector<1x128xf32>
    %245 = arith.negf %244 : vector<1x128xf32>
    %246 = math.exp %245 : vector<1x128xf32>
    %cst_70 = arith.constant 1.000000e+00 : f32
    %247 = vector.broadcast %cst_70 : f32 to vector<1x128xf32>
    %248 = arith.addf %247, %246 : vector<1x128xf32>
    %249 = arith.divf %247, %248 : vector<1x128xf32>
    %250 = vector.extract_strided_slice %237 {offsets = [0, 256], sizes = [1, 128], strides = [1, 1]} : vector<1x512xf32> to vector<1x128xf32>
    %251 = math.tanh %250 : vector<1x128xf32>
    %252 = vector.extract_strided_slice %237 {offsets = [0, 384], sizes = [1, 128], strides = [1, 1]} : vector<1x512xf32> to vector<1x128xf32>
    %253 = arith.negf %252 : vector<1x128xf32>
    %254 = math.exp %253 : vector<1x128xf32>
    %cst_71 = arith.constant 1.000000e+00 : f32
    %255 = vector.broadcast %cst_71 : f32 to vector<1x128xf32>
    %256 = arith.addf %255, %254 : vector<1x128xf32>
    %257 = arith.divf %255, %256 : vector<1x128xf32>
    %258 = arith.mulf %249, %228 : vector<1x128xf32>
    %259 = arith.mulf %243, %251 : vector<1x128xf32>
    %260 = arith.addf %258, %259 : vector<1x128xf32>
    %261 = math.tanh %260 : vector<1x128xf32>
    %262 = arith.mulf %257, %261 : vector<1x128xf32>
    %263 = arith.index_cast %c7_i32 : i32 to index
    %c0_72 = arith.constant 0 : index
    %264 = vector.load %arg12[%263, %c0_72] : memref<8x128xf32, #tpu.memory_space<vmem>>, vector<1x128xf32>
    tpu.vector_store %arg12[%263, %c0_72], %262 {strides = array<i32>} : memref<8x128xf32, #tpu.memory_space<vmem>>, vector<1x128xf32>,
    %c8_i32 = arith.constant 8 : i32
    %c0_73 = arith.constant 0 : index
    %c0_74 = arith.constant 0 : index
    %265 = vector.load %arg12[%c0_73, %c0_74] : memref<8x128xf32, #tpu.memory_space<vmem>>, vector<8x128xf32>
    %c0_75 = arith.constant 0 : index
    %c0_76 = arith.constant 0 : index
    %266 = vector.load %arg4[%c0_75, %c0_76] : memref<128x128xf32, #tpu.memory_space<vmem>>, vector<128x128xf32>
    %cst_77 = arith.constant dense<0.000000e+00> : vector<8x128xf32>
    %267 = tpu.matmul %265, %266, %cst_77 {dimension_numbers = #tpu.dot_dimension_numbers<[1], [0], [0], [1], [0, 0, 1, 1], [], []>} : vector<8x128xf32>, vector<128x128xf32>, vector<8x128xf32> -> vector<8x128xf32>
    %c0_78 = arith.constant 0 : index
    %c0_79 = arith.constant 0 : index
    %268 = vector.load %arg5[%c0_78, %c0_79] : memref<1x128xf32, #tpu.memory_space<vmem>>, vector<1x128xf32>
    %269 = vector.broadcast %268 : vector<1x128xf32> to vector<8x128xf32>
    %270 = arith.addf %267, %269 : vector<8x128xf32>
    %cst_80 = arith.constant 0.000000e+00 : f32
    %271 = vector.broadcast %cst_80 : f32 to vector<8x128xf32>
    %272 = arith.maximumf %270, %271 : vector<8x128xf32>
    %c0_81 = arith.constant 0 : index
    %c0_82 = arith.constant 0 : index
    %273 = vector.load %arg6[%c0_81, %c0_82] : memref<128x128xf32, #tpu.memory_space<vmem>>, vector<128x128xf32>
    %cst_83 = arith.constant dense<0.000000e+00> : vector<8x128xf32>
    %274 = tpu.matmul %272, %273, %cst_83 {dimension_numbers = #tpu.dot_dimension_numbers<[1], [0], [0], [1], [0, 0, 1, 1], [], []>} : vector<8x128xf32>, vector<128x128xf32>, vector<8x128xf32> -> vector<8x128xf32>
    %c0_84 = arith.constant 0 : index
    %c0_85 = arith.constant 0 : index
    %275 = vector.load %arg7[%c0_84, %c0_85] : memref<1x128xf32, #tpu.memory_space<vmem>>, vector<1x128xf32>
    %276 = vector.broadcast %275 : vector<1x128xf32> to vector<8x128xf32>
    %277 = arith.addf %274, %276 : vector<8x128xf32>
    %cst_86 = arith.constant 0.000000e+00 : f32
    %278 = vector.broadcast %cst_86 : f32 to vector<8x128xf32>
    %279 = arith.maximumf %277, %278 : vector<8x128xf32>
    %c0_87 = arith.constant 0 : index
    %c0_88 = arith.constant 0 : index
    %280 = vector.load %arg8[%c0_87, %c0_88] : memref<128x128xf32, #tpu.memory_space<vmem>>, vector<128x128xf32>
    %cst_89 = arith.constant dense<0.000000e+00> : vector<8x128xf32>
    %281 = tpu.matmul %279, %280, %cst_89 {dimension_numbers = #tpu.dot_dimension_numbers<[1], [0], [0], [1], [0, 0, 1, 1], [], []>} : vector<8x128xf32>, vector<128x128xf32>, vector<8x128xf32> -> vector<8x128xf32>
    %c0_90 = arith.constant 0 : index
    %c0_91 = arith.constant 0 : index
    %282 = vector.load %arg9[%c0_90, %c0_91] : memref<1x128xf32, #tpu.memory_space<vmem>>, vector<1x128xf32>
    %283 = vector.broadcast %282 : vector<1x128xf32> to vector<8x128xf32>
    %284 = arith.addf %281, %283 : vector<8x128xf32>
    %285 = tpu.iota {dimensions = array<i32: 1>} : vector<8x128xi32>
    %c3_i32_92 = arith.constant 3 : i32
    %286 = vector.broadcast %c3_i32_92 : i32 to vector<8x128xi32>
    %287 = arith.cmpi slt, %285, %286 : vector<8x128xi32>
    %cst_93 = arith.constant -1.000000e+30 : f32
    %288 = vector.broadcast %cst_93 : f32 to vector<8x128xf32>
    %289 = arith.select %287, %284, %288 : vector<8x128xi1>, vector<8x128xf32>
    %cst_94 = arith.constant dense<0xFF800000> : vector<8xf32>
    %290 = vector.multi_reduction <maximumf>, %289, %cst_94 [1] : vector<8x128xf32> to vector<8xf32>
    %291 = vector.shape_cast %290 : vector<8xf32> to vector<8x1xf32>
    %292 = vector.broadcast %291 : vector<8x1xf32> to vector<8x128xf32>
    %293 = arith.subf %289, %292 : vector<8x128xf32>
    %294 = math.exp %293 : vector<8x128xf32>
    %cst_95 = arith.constant dense<0.000000e+00> : vector<8xf32>
    %295 = vector.multi_reduction <add>, %294, %cst_95 [1] : vector<8x128xf32> to vector<8xf32>
    %296 = vector.shape_cast %295 : vector<8xf32> to vector<8x1xf32>
    %297 = math.log %296 : vector<8x1xf32>
    %298 = vector.broadcast %297 : vector<8x1xf32> to vector<8x128xf32>
    %299 = arith.subf %293, %298 : vector<8x128xf32>
    %c0_96 = arith.constant 0 : index
    %c0_97 = arith.constant 0 : index
    %300 = vector.load %arg10[%c0_96, %c0_97] : memref<8x128xf32, #tpu.memory_space<vmem>>, vector<8x128xf32>
    tpu.vector_store %arg10[%c0_96, %c0_97], %299 {strides = array<i32>} : memref<8x128xf32, #tpu.memory_space<vmem>>, vector<8x128xf32>,
    return
  }
}

</mosaic_0001>

<bundles_post_ra>
// kernel: quote_lstm_forward.1
= control target key start
LH: loop header
LB: loop body
LE: loop exit
PB: predicated region body
PF: predicated region fallthrough
CT: control target
= control target key end

     0   :  { %vm636_vm0 = vcmask 1040384   ;;  %vm638_vm1 = vcmask 1042434   ;;  %vm640_vm2 = vcmask 1041408   ;;  %s5060_s1 = inlined_call_operand.vmem [shape: f32[384,512], index: 1, kind: input, shape index: {}]   ;;  %s5061_s0 = inlined_call_operand.vmem [shape: f32[8,384], index: 0, kind: input, shape index: {}]   ;;  %s5062_s2 = inlined_call_operand.vmem [shape: f32[128,512], index: 2, kind: input, shape index: {}]   ;;  %s5063_s3 = inlined_call_operand.vmem [shape: f32[1,512], index: 3, kind: input, shape index: {}]   ;;  %s5064_s5 = inlined_call_operand.vmem [shape: f32[1,128], index: 5, kind: input, shape index: {}]   ;;  %s5065_s4 = inlined_call_operand.vmem [shape: f32[128,128], index: 4, kind: input, shape index: {}]   ;;  %s5066_s6 = inlined_call_operand.vmem [shape: f32[128,128], index: 6, kind: input, shape index: {}]   ;;  %s5067_s7 = inlined_call_operand.vmem [shape: f32[1,128], index: 7, kind: input, shape index: {}]   ;;  %s5068_s8 = inlined_call_operand.vmem [shape: f32[128,128], index: 8, kind: input, shape index: {}]   ;;  %s5069_s9 = inlined_call_operand.vmem [shape: f32[1,128], index: 9, kind: input, shape index: {}]   ;;  %s5070_s10 = inlined_call_operand.vmem [shape: f32[8,128], index: 10, kind: output, shape index: {}]  }
   0x1   :  { %v226_v0 = vld [vmem:[%s5060_s1 + $0x5e0] sm:$0xff]  ;;  %v99_v1 = vld [vmem:[%s5060_s1 + $0x1e8] sm:$0xff]  ;;  %v100_v61 = vld [vmem:[%s5060_s1 + $0x1f0] sm:$0xff] }
   0x2   :  { %v222_v2 = vld [vmem:[%s5060_s1 + $0x5c0] sm:$0xff]  ;;  %280 = vmatpush.msra.mxu2 %v226_v0  ;;  %300 = vmatpush.msra.mxu3 %v99_v1  ;;  %v95_v3 = vld [vmem:[%s5060_s1 + $0x1c8] sm:$0xff]  ;;  %v164_v62 = vld [vmem:[%s5060_s1 + $0x3f0] sm:$0xff] }
   0x3   :  { %v162_v4 = vld [vmem:[%s5060_s1 + $0x3e0] sm:$0xff]  ;;  %v91_v6 = vld [vmem:[%s5060_s1 + $0x1a8] sm:$0xff]  ;;  %v96_v1 = vld [vmem:[%s5060_s1 + $0x1d0] sm:$0xff] }
   0x4   :  { %260 = vmatpush.msra.mxu1 %v162_v4  ;;  %v218_v5 = vld [vmem:[%s5060_s1 + $0x5a0] sm:$0xff]  ;;  %281 = vmatpush.msra.mxu2 %v222_v2  ;;  %v87_v11 = vld [vmem:[%s5060_s1 + $0x188] sm:$0xff]  ;;  %v160_v2 = vld [vmem:[%s5060_s1 + $0x3d0] sm:$0xff] }
   0x5   :  { %v158_v7 = vld [vmem:[%s5060_s1 + $0x3c0] sm:$0xff]  ;;  %301 = vmatpush.msra.mxu3 %v95_v3  ;;  %v83_v15 = vld [vmem:[%s5060_s1 + $0x168] sm:$0xff] }
   0x6   :  { %v98_v8 = vld [vmem:[%s5060_s1 + $0x1e0] sm:$0xff]  ;;  %261 = vmatpush.msra.mxu1 %v158_v7  ;;  %282 = vmatpush.msra.mxu2 %v218_v5  ;;  %v79_v20 = vld [vmem:[%s5060_s1 + $0x148] sm:$0xff]  ;;  %v92_v5 = vld [vmem:[%s5060_s1 + $0x1b0] sm:$0xff] }
   0x7   :  { %v154_v9 = vld [vmem:[%s5060_s1 + $0x3a0] sm:$0xff]  ;;  %240 = vmatpush.msra.mxu0 %v98_v8  ;;  %302 = vmatpush.msra.mxu3 %v91_v6  ;;  %v75_v24 = vld [vmem:[%s5060_s1 + $0x128] sm:$0xff]  ;;  %v156_v6 = vld [vmem:[%s5060_s1 + $0x3b0] sm:$0xff] }
   0x8   :  { %v214_v10 = vld [vmem:[%s5060_s1 + $0x580] sm:$0xff]  ;;  %262 = vmatpush.msra.mxu1 %v154_v9  ;;  %v71_v28 = vld [vmem:[%s5060_s1 + $0x108] sm:$0xff]  ;;  %v88_v9 = vld [vmem:[%s5060_s1 + $0x190] sm:$0xff] }
   0x9   :  { %v94_v12 = vld [vmem:[%s5060_s1 + $0x1c0] sm:$0xff]  ;;  %283 = vmatpush.msra.mxu2 %v214_v10  ;;  %303 = vmatpush.msra.mxu3 %v87_v11  ;;  %v67_v32 = vld [vmem:[%s5060_s1 + $0xe8] sm:$0xff]  ;;  %v152_v10 = vld [vmem:[%s5060_s1 + $0x390] sm:$0xff] }
   0xa   :  { %v150_v13 = vld [vmem:[%s5060_s1 + $0x380] sm:$0xff]  ;;  %241 = vmatpush.msra.mxu0 %v94_v12  ;;  %v63_v36 = vld [vmem:[%s5060_s1 + $0xc8] sm:$0xff] }
   0xb   :  { %v210_v14 = vld [vmem:[%s5060_s1 + $0x560] sm:$0xff]  ;;  %263 = vmatpush.msra.mxu1 %v150_v13  ;;  %304 = vmatpush.msra.mxu3 %v83_v15  ;;  %v59_v40 = vld [vmem:[%s5060_s1 + $0xa8] sm:$0xff]  ;;  %v84_v13 = vld [vmem:[%s5060_s1 + $0x170] sm:$0xff] }
   0xc   :  { %v90_v16 = vld [vmem:[%s5060_s1 + $0x1a0] sm:$0xff]  ;;  %284 = vmatpush.msra.mxu2 %v210_v14  ;;  %v55_v44 = vld [vmem:[%s5060_s1 + $0x88] sm:$0xff]  ;;  %v148_v14 = vld [vmem:[%s5060_s1 + $0x370] sm:$0xff] }
   0xd   :  { %v146_v17 = vld [vmem:[%s5060_s1 + $0x360] sm:$0xff]  ;;  %242 = vmatpush.msra.mxu0 %v90_v16  ;;  %305 = vmatpush.msra.mxu3 %v79_v20  ;;  %v51_v48 = vld [vmem:[%s5060_s1 + $0x68] sm:$0xff] }
   0xe   :  { %v86_v18 = vld [vmem:[%s5060_s1 + $0x180] sm:$0xff]  ;;  %264 = vmatpush.msra.mxu1 %v146_v17  ;;  %v47_v52 = vld [vmem:[%s5060_s1 + $0x48] sm:$0xff]  ;;  %v80_v17 = vld [vmem:[%s5060_s1 + $0x150] sm:$0xff] }
   0xf   :  { %v206_v19 = vld [vmem:[%s5060_s1 + $0x540] sm:$0xff]  ;;  %243 = vmatpush.msra.mxu0 %v86_v18  ;;  %306 = vmatpush.msra.mxu3 %v75_v24  ;;  %v43_v56 = vld [vmem:[%s5060_s1 + $0x28] sm:$0xff]  ;;  %v144_v18 = vld [vmem:[%s5060_s1 + $0x350] sm:$0xff] }
  0x10   :  { %v142_v21 = vld [vmem:[%s5060_s1 + $0x340] sm:$0xff]  ;;  %285 = vmatpush.msra.mxu2 %v206_v19  ;;  %v39_v60 = vld [vmem:[%s5060_s1 + $0x8] sm:$0xff] }
  0x11   :  { %v82_v22 = vld [vmem:[%s5060_s1 + $0x160] sm:$0xff]  ;;  %265 = vmatpush.msra.mxu1 %v142_v21  ;;  %307 = vmatpush.msra.mxu3 %v71_v28  ;;  %v227_v3 = vld [vmem:[%s5060_s1 + $0x5e8] sm:$0xff]  ;;  %v76_v21 = vld [vmem:[%s5060_s1 + $0x130] sm:$0xff] }
  0x12   :  { %v202_v23 = vld [vmem:[%s5060_s1 + $0x520] sm:$0xff]  ;;  %244 = vmatpush.msra.mxu0 %v82_v22  ;;  %v223_v7 = vld [vmem:[%s5060_s1 + $0x5c8] sm:$0xff]  ;;  %v140_v22 = vld [vmem:[%s5060_s1 + $0x330] sm:$0xff] }
  0x13   :  { %v138_v25 = vld [vmem:[%s5060_s1 + $0x320] sm:$0xff]  ;;  %286 = vmatpush.msra.mxu2 %v202_v23  ;;  %308 = vmatpush.msra.mxu3 %v67_v32  ;;  %v163_v8 = vld [vmem:[%s5060_s1 + $0x3e8] sm:$0xff] }
  0x14   :  { %v78_v26 = vld [vmem:[%s5060_s1 + $0x140] sm:$0xff]  ;;  %266 = vmatpush.msra.mxu1 %v138_v25  ;;  %v219_v11 = vld [vmem:[%s5060_s1 + $0x5a8] sm:$0xff]  ;;  %v72_v25 = vld [vmem:[%s5060_s1 + $0x110] sm:$0xff] }
  0x15   :  { %v198_v27 = vld [vmem:[%s5060_s1 + $0x500] sm:$0xff]  ;;  %245 = vmatpush.msra.mxu0 %v78_v26  ;;  %309 = vmatpush.msra.mxu3 %v63_v36  ;;  %v159_v12 = vld [vmem:[%s5060_s1 + $0x3c8] sm:$0xff]  ;;  %v136_v26 = vld [vmem:[%s5060_s1 + $0x310] sm:$0xff] }
  0x16   :  { %v134_v29 = vld [vmem:[%s5060_s1 + $0x300] sm:$0xff]  ;;  %287 = vmatpush.msra.mxu2 %v198_v27  ;;  %v215_v15 = vld [vmem:[%s5060_s1 + $0x588] sm:$0xff] }
  0x17   :  { %v74_v30 = vld [vmem:[%s5060_s1 + $0x120] sm:$0xff]  ;;  %267 = vmatpush.msra.mxu1 %v134_v29  ;;  %310 = vmatpush.msra.mxu3 %v59_v40  ;;  %v155_v16 = vld [vmem:[%s5060_s1 + $0x3a8] sm:$0xff]  ;;  %v68_v29 = vld [vmem:[%s5060_s1 + $0xf0] sm:$0xff] }
  0x18   :  { %v194_v31 = vld [vmem:[%s5060_s1 + $0x4e0] sm:$0xff]  ;;  %246 = vmatpush.msra.mxu0 %v74_v30  ;;  %v211_v19 = vld [vmem:[%s5060_s1 + $0x568] sm:$0xff]  ;;  %v132_v30 = vld [vmem:[%s5060_s1 + $0x2f0] sm:$0xff] }
  0x19   :  { %v130_v33 = vld [vmem:[%s5060_s1 + $0x2e0] sm:$0xff]  ;;  %288 = vmatpush.msra.mxu2 %v194_v31  ;;  %311 = vmatpush.msra.mxu3 %v55_v44  ;;  %v151_v20 = vld [vmem:[%s5060_s1 + $0x388] sm:$0xff] }
  0x1a   :  { %v70_v34 = vld [vmem:[%s5060_s1 + $0x100] sm:$0xff]  ;;  %268 = vmatpush.msra.mxu1 %v130_v33  ;;  %v207_v23 = vld [vmem:[%s5060_s1 + $0x548] sm:$0xff]  ;;  %v64_v33 = vld [vmem:[%s5060_s1 + $0xd0] sm:$0xff] }
  0x1b   :  { %v190_v35 = vld [vmem:[%s5060_s1 + $0x4c0] sm:$0xff]  ;;  %247 = vmatpush.msra.mxu0 %v70_v34  ;;  %312 = vmatpush.msra.mxu3 %v51_v48  ;;  %v147_v24 = vld [vmem:[%s5060_s1 + $0x368] sm:$0xff]  ;;  %v128_v34 = vld [vmem:[%s5060_s1 + $0x2d0] sm:$0xff] }
  0x1c   :  { %v126_v37 = vld [vmem:[%s5060_s1 + $0x2c0] sm:$0xff]  ;;  %289 = vmatpush.msra.mxu2 %v190_v35  ;;  %v203_v27 = vld [vmem:[%s5060_s1 + $0x528] sm:$0xff] }
  0x1d   :  { %v66_v38 = vld [vmem:[%s5060_s1 + $0xe0] sm:$0xff]  ;;  %269 = vmatpush.msra.mxu1 %v126_v37  ;;  %313 = vmatpush.msra.mxu3 %v47_v52  ;;  %v143_v28 = vld [vmem:[%s5060_s1 + $0x348] sm:$0xff]  ;;  %v60_v37 = vld [vmem:[%s5060_s1 + $0xb0] sm:$0xff] }
  0x1e   :  { %v186_v39 = vld [vmem:[%s5060_s1 + $0x4a0] sm:$0xff]  ;;  %248 = vmatpush.msra.mxu0 %v66_v38  ;;  %v199_v31 = vld [vmem:[%s5060_s1 + $0x508] sm:$0xff]  ;;  %v124_v38 = vld [vmem:[%s5060_s1 + $0x2b0] sm:$0xff] }
  0x1f   :  { %v122_v41 = vld [vmem:[%s5060_s1 + $0x2a0] sm:$0xff]  ;;  %290 = vmatpush.msra.mxu2 %v186_v39  ;;  %314 = vmatpush.msra.mxu3 %v43_v56  ;;  %v139_v32 = vld [vmem:[%s5060_s1 + $0x328] sm:$0xff] }
  0x20   :  { %v62_v42 = vld [vmem:[%s5060_s1 + $0xc0] sm:$0xff]  ;;  %270 = vmatpush.msra.mxu1 %v122_v41  ;;  %v195_v35 = vld [vmem:[%s5060_s1 + $0x4e8] sm:$0xff]  ;;  %v56_v41 = vld [vmem:[%s5060_s1 + $0x90] sm:$0xff] }
  0x21   :  { %v182_v43 = vld [vmem:[%s5060_s1 + $0x480] sm:$0xff]  ;;  %249 = vmatpush.msra.mxu0 %v62_v42  ;;  %315 = vmatpush.msra.mxu3 %v39_v60  ;;  %v135_v36 = vld [vmem:[%s5060_s1 + $0x308] sm:$0xff]  ;;  %v120_v42 = vld [vmem:[%s5060_s1 + $0x290] sm:$0xff] }
  0x22   :  { %v118_v45 = vld [vmem:[%s5060_s1 + $0x280] sm:$0xff]  ;;  %291 = vmatpush.msra.mxu2 %v182_v43  ;;  %v191_v39 = vld [vmem:[%s5060_s1 + $0x4c8] sm:$0xff]  ;;  %v165_v60 = vld [vmem:[%s5060_s1 + $0x3f8] sm:$0xff] }
  0x23   :  { %v58_v46 = vld [vmem:[%s5060_s1 + $0xa0] sm:$0xff]  ;;  %271 = vmatpush.msra.mxu1 %v118_v45  ;;  %380 = vmatpush.msrb.mxu3 %v164_v62  ;;  %v131_v40 = vld [vmem:[%s5060_s1 + $0x2e8] sm:$0xff]  ;;  %v52_v45 = vld [vmem:[%s5060_s1 + $0x70] sm:$0xff] }
  0x24   :  { %v178_v47 = vld [vmem:[%s5060_s1 + $0x460] sm:$0xff]  ;;  %250 = vmatpush.msra.mxu0 %v58_v46  ;;  %v187_v43 = vld [vmem:[%s5060_s1 + $0x4a8] sm:$0xff]  ;;  %v116_v46 = vld [vmem:[%s5060_s1 + $0x270] sm:$0xff] }
  0x25   :  { %v114_v49 = vld [vmem:[%s5060_s1 + $0x260] sm:$0xff]  ;;  %292 = vmatpush.msra.mxu2 %v178_v47  ;;  %381 = vmatpush.msrb.mxu3 %v160_v2  ;;  %v127_v44 = vld [vmem:[%s5060_s1 + $0x2c8] sm:$0xff]  ;;  %v225_v2 = vld [vmem:[%s5060_s1 + $0x5d8] sm:$0xff] }
  0x26   :  { %v54_v50 = vld [vmem:[%s5060_s1 + $0x80] sm:$0xff]  ;;  %272 = vmatpush.msra.mxu1 %v114_v49  ;;  %v183_v47 = vld [vmem:[%s5060_s1 + $0x488] sm:$0xff]  ;;  %v48_v49 = vld [vmem:[%s5060_s1 + $0x50] sm:$0xff] }
  0x27   :  { %v174_v51 = vld [vmem:[%s5060_s1 + $0x440] sm:$0xff]  ;;  %251 = vmatpush.msra.mxu0 %v54_v50  ;;  %382 = vmatpush.msrb.mxu3 %v156_v6  ;;  %v123_v48 = vld [vmem:[%s5060_s1 + $0x2a8] sm:$0xff]  ;;  %v112_v50 = vld [vmem:[%s5060_s1 + $0x250] sm:$0xff] }
  0x28   :  { %v110_v53 = vld [vmem:[%s5060_s1 + $0x240] sm:$0xff]  ;;  %293 = vmatpush.msra.mxu2 %v174_v51  ;;  %v179_v51 = vld [vmem:[%s5060_s1 + $0x468] sm:$0xff]  ;;  %v101_v6 = vld [vmem:[%s5060_s1 + $0x1f8] sm:$0xff] }
  0x29   :  { %v50_v54 = vld [vmem:[%s5060_s1 + $0x60] sm:$0xff]  ;;  %273 = vmatpush.msra.mxu1 %v110_v53  ;;  %383 = vmatpush.msrb.mxu3 %v152_v10  ;;  %v119_v52 = vld [vmem:[%s5060_s1 + $0x288] sm:$0xff]  ;;  %v44_v53 = vld [vmem:[%s5060_s1 + $0x30] sm:$0xff] }
  0x2a   :  { %v170_v55 = vld [vmem:[%s5060_s1 + $0x420] sm:$0xff]  ;;  %252 = vmatpush.msra.mxu0 %v50_v54  ;;  %v108_v54 = vld [vmem:[%s5060_s1 + $0x230] sm:$0xff]  ;;  %v115_v62 = vld [vmem:[%s5060_s1 + $0x268] sm:$0xff] }
  0x2b   :  { %v106_v57 = vld [vmem:[%s5060_s1 + $0x220] sm:$0xff]  ;;  %294 = vmatpush.msra.mxu2 %v170_v55  ;;  %384 = vmatpush.msrb.mxu3 %v148_v14  ;;  %v175_v55 = vld [vmem:[%s5060_s1 + $0x448] sm:$0xff]  ;;  %v97_v10 = vld [vmem:[%s5060_s1 + $0x1d8] sm:$0xff] }
  0x2c   :  { %v46_v58 = vld [vmem:[%s5060_s1 + $0x40] sm:$0xff]  ;;  %274 = vmatpush.msra.mxu1 %v106_v57  ;;  %v40_v57 = vld [vmem:[%s5060_s1 + $0x10] sm:$0xff]  ;;  %v93_v14 = vld [vmem:[%s5060_s1 + $0x1b8] sm:$0xff] }
  0x2d   :  { %v166_v59 = vld [vmem:[%s5060_s1 + $0x400] sm:$0xff]  ;;  %253 = vmatpush.msra.mxu0 %v46_v58  ;;  %385 = vmatpush.msrb.mxu3 %v144_v18  ;;  %v104_v58 = vld [vmem:[%s5060_s1 + $0x210] sm:$0xff] }
  0x2e   :  { %v102_v63 = vld [vmem:[%s5060_s1 + $0x200] sm:$0xff]  ;;  %295 = vmatpush.msra.mxu2 %v166_v59  ;;  %v3050_v59 = vld [vmem:[%s5061_s0 + $0x10] sm:$0xff] }
  0x2f   :  { %v42_v0 = vld [vmem:[%s5060_s1 + $0x20] sm:$0xff]  ;;  %275 = vmatpush.msra.mxu1 %v102_v63  ;;  %386 = vmatpush.msrb.mxu3 %v140_v22  ;;  %v171_v63 = vld [vmem:[%s5060_s1 + $0x428] sm:$0xff]  ;;  %v224_v18 = vld [vmem:[%s5060_s1 + $0x5d0] sm:$0xff] }
  0x30   :  { %360 = vmatpush.msrb.mxu2 %v100_v61  ;;  %v38_v4 = vld [vmem:[%s5060_s1] sm:$0xff]  ;;  %254 = vmatpush.msra.mxu0 %v42_v0  ;;  %v229_v61 = vld [vmem:[%s5060_s1 + $0x5f8] sm:$0xff]  ;;  %v3070_v0 = vld [vmem:[%s5061_s0 + $0x8] sm:$0xff] }
  0x31   :  { %340 = vmatpush.msrb.mxu1 %v227_v3  ;;  %387 = vmatpush.msrb.mxu3 %v136_v26  ;;  %v3039_v56 = vld [vmem:[%s5061_s0] sm:$0xff]  ;;  %v111_v3 = vld [vmem:[%s5060_s1 + $0x248] sm:$0xff]  ;;  %v220_v22 = vld [vmem:[%s5060_s1 + $0x5b0] sm:$0xff] }
  0x32   :  { %361 = vmatpush.msrb.mxu2 %v96_v1  ;;  %255 = vmatpush.msra.mxu0 %v38_v4  ;;  %v161_v1 = vld [vmem:[%s5060_s1 + $0x3d8] sm:$0xff]  ;;  %v167_v4 = vld [vmem:[%s5060_s1 + $0x408] sm:$0xff]  ;;  %v216_v26 = vld [vmem:[%s5060_s1 + $0x590] sm:$0xff] }
  0x33   :  { %341 = vmatpush.msrb.mxu1 %v223_v7  ;;  %388 = vmatpush.msrb.mxu3 %v132_v30  ;;  %v221_v7 = vld [vmem:[%s5060_s1 + $0x5b8] sm:$0xff]  ;;  %v212_v30 = vld [vmem:[%s5060_s1 + $0x570] sm:$0xff] }
  0x34   :  { %362 = vmatpush.msrb.mxu2 %v92_v5  ;;  %320 = vmatpush.msrb.mxu0 %v163_v8  ;;  %v157_v5 = vld [vmem:[%s5060_s1 + $0x3b8] sm:$0xff]  ;;  %v107_v8 = vld [vmem:[%s5060_s1 + $0x228] sm:$0xff] }
  0x35   :  { %342 = vmatpush.msrb.mxu1 %v219_v11  ;;  %389 = vmatpush.msrb.mxu3 %v128_v34  ;;  %v217_v11 = vld [vmem:[%s5060_s1 + $0x598] sm:$0xff]  ;;  %v208_v34 = vld [vmem:[%s5060_s1 + $0x550] sm:$0xff] }
  0x36   :  { %363 = vmatpush.msrb.mxu2 %v88_v9  ;;  %321 = vmatpush.msrb.mxu0 %v159_v12  ;;  %v153_v9 = vld [vmem:[%s5060_s1 + $0x398] sm:$0xff]  ;;  %v103_v12 = vld [vmem:[%s5060_s1 + $0x208] sm:$0xff] }
  0x37   :  { %343 = vmatpush.msrb.mxu1 %v215_v15  ;;  %390 = vmatpush.msrb.mxu3 %v124_v38  ;;  %v228_v15 = vld [vmem:[%s5060_s1 + $0x5f0] sm:$0xff] }
  0x38   :  { %364 = vmatpush.msrb.mxu2 %v84_v13  ;;  %322 = vmatpush.msrb.mxu0 %v155_v16  ;;  %v149_v13 = vld [vmem:[%s5060_s1 + $0x378] sm:$0xff]  ;;  %v204_v38 = vld [vmem:[%s5060_s1 + $0x530] sm:$0xff] }
  0x39   :  { %344 = vmatpush.msrb.mxu1 %v211_v19  ;;  %391 = vmatpush.msrb.mxu3 %v120_v42  ;;  %v213_v16 = vld [vmem:[%s5060_s1 + $0x578] sm:$0xff]  ;;  %v200_v42 = vld [vmem:[%s5060_s1 + $0x510] sm:$0xff] }
  0x3a   :  { %365 = vmatpush.msrb.mxu2 %v80_v17  ;;  %323 = vmatpush.msrb.mxu0 %v151_v20  ;;  %v145_v17 = vld [vmem:[%s5060_s1 + $0x358] sm:$0xff] }
  0x3b   :  { %345 = vmatpush.msrb.mxu1 %v207_v23  ;;  %392 = vmatpush.msrb.mxu3 %v116_v46  ;;  %v89_v19 = vld [vmem:[%s5060_s1 + $0x198] sm:$0xff] }
  0x3c   :  { %366 = vmatpush.msrb.mxu2 %v76_v21  ;;  %324 = vmatpush.msrb.mxu0 %v147_v24  ;;  %v209_v20 = vld [vmem:[%s5060_s1 + $0x558] sm:$0xff] }
  0x3d   :  { %346 = vmatpush.msrb.mxu1 %v203_v27  ;;  %393 = vmatpush.msrb.mxu3 %v112_v50  ;;  %v141_v21 = vld [vmem:[%s5060_s1 + $0x338] sm:$0xff] }
  0x3e   :  { %367 = vmatpush.msrb.mxu2 %v72_v25  ;;  %325 = vmatpush.msrb.mxu0 %v143_v28  ;;  %v85_v23 = vld [vmem:[%s5060_s1 + $0x178] sm:$0xff] }
  0x3f   :  { %347 = vmatpush.msrb.mxu1 %v199_v31  ;;  %394 = vmatpush.msrb.mxu3 %v108_v54  ;;  %v205_v24 = vld [vmem:[%s5060_s1 + $0x538] sm:$0xff] }
  0x40   :  { %368 = vmatpush.msrb.mxu2 %v68_v29  ;;  %326 = vmatpush.msrb.mxu0 %v139_v32  ;;  %v137_v25 = vld [vmem:[%s5060_s1 + $0x318] sm:$0xff] }
  0x41   :  { %348 = vmatpush.msrb.mxu1 %v195_v35  ;;  %256 = vmatmul.f32.vlgmr.msra.gmra.mxu0 %v3039_v56  ;;  %v81_v27 = vld [vmem:[%s5060_s1 + $0x158] sm:$0xff] }
  0x42   :  { %369 = vmatpush.msrb.mxu2 %v64_v33  ;;  %327 = vmatpush.msrb.mxu0 %v135_v36  ;;  %v201_v28 = vld [vmem:[%s5060_s1 + $0x518] sm:$0xff] }
  0x43   :  { %349 = vmatpush.msrb.mxu1 %v191_v39  ;;  %395 = vmatpush.msrb.mxu3 %v104_v58  ;;  %v133_v29 = vld [vmem:[%s5060_s1 + $0x2f8] sm:$0xff]  ;;  %v184_v58 = vld [vmem:[%s5060_s1 + $0x490] sm:$0xff] }
  0x44   :  { %370 = vmatpush.msrb.mxu2 %v60_v37  ;;  %328 = vmatpush.msrb.mxu0 %v131_v40  ;;  %v77_v31 = vld [vmem:[%s5060_s1 + $0x138] sm:$0xff] }
  0x45   :  { %350 = vmatpush.msrb.mxu1 %v187_v43  ;;  %296 = vmatmul.f32.vlgmr.msra.gmra.mxu2 %v3050_v59  ;;  %v197_v32 = vld [vmem:[%s5060_s1 + $0x4f8] sm:$0xff] }
  0x46   :  { %371 = vmatpush.msrb.mxu2 %v56_v41  ;;  %329 = vmatpush.msrb.mxu0 %v127_v44  ;;  %v129_v33 = vld [vmem:[%s5060_s1 + $0x2d8] sm:$0xff] }
  0x47   :  { %351 = vmatpush.msrb.mxu1 %v183_v47  ;;  %316 = vmatmul.f32.vlgmr.msra.gmra.mxu3 %v3039_v56  ;;  %v73_v35 = vld [vmem:[%s5060_s1 + $0x118] sm:$0xff] }
  0x48   :  { %372 = vmatpush.msrb.mxu2 %v52_v45  ;;  %330 = vmatpush.msrb.mxu0 %v123_v48  ;;  %v193_v36 = vld [vmem:[%s5060_s1 + $0x4d8] sm:$0xff]  ;;  %v196_v45 = vld [vmem:[%s5060_s1 + $0x4f0] sm:$0xff] }
  0x49   :  { %352 = vmatpush.msrb.mxu1 %v179_v51  ;;  %460 = vmatpush.msra.mxu3 %v229_v61  ;;  %v125_v37 = vld [vmem:[%s5060_s1 + $0x2b8] sm:$0xff] }
  0x4a   :  { %373 = vmatpush.msrb.mxu2 %v48_v49  ;;  %331 = vmatpush.msrb.mxu0 %v119_v52  ;;  %v69_v39 = vld [vmem:[%s5060_s1 + $0xf8] sm:$0xff]  ;;  %v192_v49 = vld [vmem:[%s5060_s1 + $0x4d0] sm:$0xff] }
  0x4b   :  { %353 = vmatpush.msrb.mxu1 %v175_v55  ;;  %461 = vmatpush.msra.mxu3 %v225_v2  ;;  %v189_v40 = vld [vmem:[%s5060_s1 + $0x4b8] sm:$0xff]  ;;  %v180_v2 = vld [vmem:[%s5060_s1 + $0x470] sm:$0xff] }
  0x4c   :  { %374 = vmatpush.msrb.mxu2 %v44_v53  ;;  %332 = vmatpush.msrb.mxu0 %v115_v62  ;;  %v121_v41 = vld [vmem:[%s5060_s1 + $0x298] sm:$0xff]  ;;  %v188_v53 = vld [vmem:[%s5060_s1 + $0x4b0] sm:$0xff] }
  0x4d   :  { %354 = vmatpush.msrb.mxu1 %v171_v63  ;;  %462 = vmatpush.msra.mxu3 %v221_v7  ;;  %v65_v43 = vld [vmem:[%s5060_s1 + $0xd8] sm:$0xff]  ;;  %v3260_v63 = vld [vmem:[%s5062_s2 + $0x1f0] sm:$0xff] }
  0x4e   :  { %375 = vmatpush.msrb.mxu2 %v40_v57  ;;  %276 = vmatmul.f32.vlgmr.msra.gmra.mxu1 %v3070_v0  ;;  %v185_v44 = vld [vmem:[%s5060_s1 + $0x498] sm:$0xff]  ;;  %v3295_v7 = vld [vmem:[%s5062_s2 + $0x1b0] sm:$0xff] }
  0x4f   :  { %333 = vmatpush.msrb.mxu0 %v111_v3  ;;  %355 = vmatpush.msrb.mxu1 %v167_v4  ;;  %v61_v46 = vld [vmem:[%s5060_s1 + $0xb8] sm:$0xff]  ;;  %v3277_v4 = vld [vmem:[%s5062_s2 + $0x1d0] sm:$0xff] }
  0x50   :  { %440 = vmatpush.msra.mxu2 %v165_v60  ;;  %463 = vmatpush.msra.mxu3 %v217_v11  ;;  %v117_v47 = vld [vmem:[%s5060_s1 + $0x278] sm:$0xff]  ;;  %v3317_v11 = vld [vmem:[%s5062_s2 + $0x190] sm:$0xff] }
  0x51   :  { %420 = vmatpush.msra.mxu1 %v101_v6  ;;  %334 = vmatpush.msrb.mxu0 %v107_v8  ;;  %v181_v48 = vld [vmem:[%s5060_s1 + $0x478] sm:$0xff]  ;;  %v176_v6 = vld [vmem:[%s5060_s1 + $0x450] sm:$0xff] }
  0x52   :  { %441 = vmatpush.msra.mxu2 %v161_v1  ;;  %464 = vmatpush.msra.mxu3 %v213_v16  ;;  %v57_v50 = vld [vmem:[%s5060_s1 + $0x98] sm:$0xff] }
  0x53   :  { %421 = vmatpush.msra.mxu1 %v97_v10  ;;  %335 = vmatpush.msrb.mxu0 %v103_v12  ;;  %v113_v51 = vld [vmem:[%s5060_s1 + $0x258] sm:$0xff]  ;;  %v3311_v10 = vld [vmem:[%s5062_s2 + $0x1e8] sm:$0xff] }
  0x54   :  { %442 = vmatpush.msra.mxu2 %v157_v5  ;;  %336 = vmatmul.f32.vlgmr.msrb.gmra.mxu0 %v3070_v0  ;;  %v177_v52 = vld [vmem:[%s5060_s1 + $0x458] sm:$0xff] }
  0x55   :  { %422 = vmatpush.msra.mxu1 %v93_v14  ;;  %400 = vmatpush.msra.mxu0 %v228_v15  ;;  %v53_v54 = vld [vmem:[%s5060_s1 + $0x78] sm:$0xff]  ;;  %v3332_v14 = vld [vmem:[%s5062_s2 + $0x1c8] sm:$0xff]  ;;  %v3338_v15 = vld [vmem:[%s5062_s2 + $0x170] sm:$0xff] }
  0x56   :  { %443 = vmatpush.msra.mxu2 %v153_v9  ;;  %356 = vmatmul.f32.vlgmr.msrb.gmra.mxu1 %v3050_v59  ;;  %v109_v55 = vld [vmem:[%s5060_s1 + $0x238] sm:$0xff]  ;;  %v172_v9 = vld [vmem:[%s5060_s1 + $0x430] sm:$0xff] }
  0x57   :  { %401 = vmatpush.msra.mxu0 %v224_v18  ;;  %423 = vmatpush.msra.mxu1 %v89_v19  ;;  %v173_v57 = vld [vmem:[%s5060_s1 + $0x438] sm:$0xff]  ;;  %v3361_v18 = vld [vmem:[%s5062_s2 + $0x150] sm:$0xff]  ;;  %v3368_v19 = vld [vmem:[%s5062_s2 + $0x1c0] sm:$0xff] }
  0x58   :  { %444 = vmatpush.msra.mxu2 %v149_v13  ;;  %465 = vmatpush.msra.mxu3 %v209_v20  ;;  %v49_v60 = vld [vmem:[%s5060_s1 + $0x58] sm:$0xff]  ;;  %v168_v13 = vld [vmem:[%s5060_s1 + $0x410] sm:$0xff] }
  0x59   :  { %402 = vmatpush.msra.mxu0 %v220_v22  ;;  %424 = vmatpush.msra.mxu1 %v85_v23  ;;  %v105_v61 = vld [vmem:[%s5060_s1 + $0x218] sm:$0xff]  ;;  %v3392_v22 = vld [vmem:[%s5062_s2 + $0x1a0] sm:$0xff] }
  0x5a   :  { %445 = vmatpush.msra.mxu2 %v145_v17  ;;  %466 = vmatpush.msra.mxu3 %v205_v24  ;;  %v169_v62 = vld [vmem:[%s5060_s1 + $0x418] sm:$0xff]  ;;  %v3356_v17 = vld [vmem:[%s5062_s2 + $0x1a8] sm:$0xff] }
  0x5b   :  { %403 = vmatpush.msra.mxu0 %v216_v26  ;;  %425 = vmatpush.msra.mxu1 %v81_v27  ;;  %v3265_v1 = vld [vmem:[%s5062_s2 + $0x1f8] sm:$0xff]  ;;  %v3404_v24 = vld [vmem:[%s5062_s2 + $0x168] sm:$0xff]  ;;  %v3416_v26 = vld [vmem:[%s5062_s2 + $0x180] sm:$0xff] }
  0x5c   :  { %446 = vmatpush.msra.mxu2 %v141_v21  ;;  %467 = vmatpush.msra.mxu3 %v201_v28  ;;  %v45_v3 = vld [vmem:[%s5060_s1 + $0x38] sm:$0xff]  ;;  %v3385_v21 = vld [vmem:[%s5062_s2 + $0x130] sm:$0xff]  ;;  %v3428_v28 = vld [vmem:[%s5062_s2 + $0x148] sm:$0xff] }
  0x5d   :  { %404 = vmatpush.msra.mxu0 %v212_v30  ;;  %426 = vmatpush.msra.mxu1 %v77_v31  ;;  %v3284_v5 = vld [vmem:[%s5062_s2 + $0x1d8] sm:$0xff]  ;;  %v3440_v30 = vld [vmem:[%s5062_s2 + $0x160] sm:$0xff] }
  0x5e   :  { %447 = vmatpush.msra.mxu2 %v137_v25  ;;  %468 = vmatpush.msra.mxu3 %v197_v32  ;;  %v3302_v8 = vld [vmem:[%s5062_s2 + $0x1b8] sm:$0xff]  ;;  %v3409_v25 = vld [vmem:[%s5062_s2 + $0x110] sm:$0xff]  ;;  %v3452_v32 = vld [vmem:[%s5062_s2 + $0x128] sm:$0xff] }
  0x5f   :  { %405 = vmatpush.msra.mxu0 %v208_v34  ;;  %427 = vmatpush.msra.mxu1 %v73_v35  ;;  %v3322_v12 = vld [vmem:[%s5062_s2 + $0x198] sm:$0xff]  ;;  %v3464_v34 = vld [vmem:[%s5062_s2 + $0x140] sm:$0xff] }
  0x60   :  { %448 = vmatpush.msra.mxu2 %v133_v29  ;;  %469 = vmatpush.msra.mxu3 %v193_v36  ;;  %v3350_v16 = vld [vmem:[%s5062_s2 + $0x178] sm:$0xff]  ;;  %v3433_v29 = vld [vmem:[%s5062_s2 + $0xf0] sm:$0xff]  ;;  %v3476_v36 = vld [vmem:[%s5062_s2 + $0x108] sm:$0xff] }
  0x61   :  { %406 = vmatpush.msra.mxu0 %v204_v38  ;;  %428 = vmatpush.msra.mxu1 %v69_v39  ;;  %v3373_v20 = vld [vmem:[%s5062_s2 + $0x158] sm:$0xff]  ;;  %v3488_v38 = vld [vmem:[%s5062_s2 + $0x120] sm:$0xff] }
  0x62   :  { %449 = vmatpush.msra.mxu2 %v129_v33  ;;  %470 = vmatpush.msra.mxu3 %v189_v40  ;;  %v3397_v23 = vld [vmem:[%s5062_s2 + $0x138] sm:$0xff]  ;;  %v3457_v33 = vld [vmem:[%s5062_s2 + $0xd0] sm:$0xff]  ;;  %v3500_v40 = vld [vmem:[%s5062_s2 + $0xe8] sm:$0xff] }
  0x63   :  { %407 = vmatpush.msra.mxu0 %v200_v42  ;;  %429 = vmatpush.msra.mxu1 %v65_v43  ;;  %v3421_v27 = vld [vmem:[%s5062_s2 + $0x118] sm:$0xff]  ;;  %v3512_v42 = vld [vmem:[%s5062_s2 + $0x100] sm:$0xff] }
  0x64   :  { %450 = vmatpush.msra.mxu2 %v125_v37  ;;  %471 = vmatpush.msra.mxu3 %v185_v44  ;;  %v3445_v31 = vld [vmem:[%s5062_s2 + $0xf8] sm:$0xff]  ;;  %v3481_v37 = vld [vmem:[%s5062_s2 + $0xb0] sm:$0xff]  ;;  %v3524_v44 = vld [vmem:[%s5062_s2 + $0xc8] sm:$0xff] }
  0x65   :  { %376 = vmatmul.f32.vlgmr.msrb.gmra.mxu2 %v3039_v56  ;;  %408 = vmatpush.msra.mxu0 %v196_v45  ;;  %v3469_v35 = vld [vmem:[%s5062_s2 + $0xd8] sm:$0xff]  ;;  %v3529_v45 = vld [vmem:[%s5062_s2 + $0x70] sm:$0xff] }
  0x66   :  { %451 = vmatpush.msra.mxu2 %v121_v41  ;;  %430 = vmatpush.msra.mxu1 %v61_v46  ;;  %v3493_v39 = vld [vmem:[%s5062_s2 + $0xb8] sm:$0xff]  ;;  %v3505_v41 = vld [vmem:[%s5062_s2 + $0x90] sm:$0xff]  ;;  %v3536_v46 = vld [vmem:[%s5062_s2 + $0xe0] sm:$0xff] }
  0x67   :  { %472 = vmatpush.msra.mxu3 %v181_v48  ;;  %409 = vmatpush.msra.mxu0 %v192_v49  ;;  %v3517_v43 = vld [vmem:[%s5062_s2 + $0x98] sm:$0xff]  ;;  %v3548_v48 = vld [vmem:[%s5062_s2 + $0xa8] sm:$0xff]  ;;  %v3553_v49 = vld [vmem:[%s5062_s2 + $0x50] sm:$0xff] }
  0x68   :  { %452 = vmatpush.msra.mxu2 %v117_v47  ;;  %396 = vmatmul.f32.vlgmr.msrb.gmra.mxu3 %v3070_v0  ;;  %v3541_v47 = vld [vmem:[%s5062_s2 + $0x78] sm:$0xff] }
  0x69   :  { %431 = vmatpush.msra.mxu1 %v57_v50  ;;  %473 = vmatpush.msra.mxu3 %v177_v52  ;;  %v3560_v50 = vld [vmem:[%s5062_s2 + $0xc0] sm:$0xff]  ;;  %v3572_v52 = vld [vmem:[%s5062_s2 + $0x88] sm:$0xff] }
  0x6a   :  { %453 = vmatpush.msra.mxu2 %v113_v51  ;;  %410 = vmatpush.msra.mxu0 %v188_v53  ;;  %v3565_v51 = vld [vmem:[%s5062_s2 + $0x58] sm:$0xff]  ;;  %v3577_v53 = vld [vmem:[%s5062_s2 + $0x30] sm:$0xff] }
  0x6b   :  { %432 = vmatpush.msra.mxu1 %v53_v54  ;;  %474 = vmatpush.msra.mxu3 %v173_v57  ;;  %v3584_v54 = vld [vmem:[%s5062_s2 + $0xa0] sm:$0xff]  ;;  %v3596_v57 = vld [vmem:[%s5062_s2 + $0x68] sm:$0xff] }
  0x6c   :  { %454 = vmatpush.msra.mxu2 %v109_v55  ;;  %411 = vmatpush.msra.mxu0 %v184_v58  ;;  %v3589_v55 = vld [vmem:[%s5062_s2 + $0x38] sm:$0xff]  ;;  %v3601_v58 = vld [vmem:[%s5062_s2 + $0x10] sm:$0xff] }
  0x6d   :  { %433 = vmatpush.msra.mxu1 %v49_v60  ;;  %475 = vmatpush.msra.mxu3 %v169_v62  ;;  %v3608_v60 = vld [vmem:[%s5062_s2 + $0x80] sm:$0xff] }
  0x6e   :  { %455 = vmatpush.msra.mxu2 %v105_v61  ;;  %412 = vmatpush.msra.mxu0 %v180_v2  ;;  %v3613_v61 = vld [vmem:[%s5062_s2 + $0x18] sm:$0xff]  ;;  %v3622_v62 = vld [vmem:[%s5062_s2 + $0x60] sm:$0xff]  ;;  %v3627_v2 = vld [vmem:[%s5062_s2 + $0x48] sm:$0xff] }
  0x6f   :  { %456 = vmatmul.f32.vlgmr.msra.gmra.mxu2 %v3070_v0  ;;  %609 = vmatpush.msrb.mxu3 %v3265_v1  ;;  %v41_v0 = vld [vmem:[%s5060_s1 + $0x18] sm:$0xff]  ;;  %5106 = vst [vmem:[#allocation4_spill] sm:$0xff] %v3613_v61 }
  0x70   :  { %589 = vmatpush.msrb.mxu2 %v3260_v63  ;;  %434 = vmatpush.msra.mxu1 %v45_v3  ;;  %v2620_v3 = vmov 0.0  }
  0x71   :  { %476 = vmatmul.f32.vlgmr.msra.gmra.mxu3 %v3050_v59  ;;  %413 = vmatpush.msra.mxu0 %v176_v6  ;;  %v3634_v6 = vld [vmem:[%s5062_s2 + $0x40] sm:$0xff] }
  0x72   :  { %590 = vmatpush.msrb.mxu2 %v3277_v4  ;;  %610 = vmatpush.msrb.mxu3 %v3284_v5 }
  0x73   :  { %435 = vmatpush.msra.mxu1 %v41_v0  ;;  %414 = vmatpush.msra.mxu0 %v172_v9  ;;  %v3639_v0 = vld [vmem:[%s5062_s2 + $0x28] sm:$0xff]  ;;  %v3646_v9 = vld [vmem:[%s5062_s2 + $0x20] sm:$0xff] }
  0x74   :  { %591 = vmatpush.msrb.mxu2 %v3295_v7  ;;  %436 = vmatmul.f32.vlgmr.msra.gmra.mxu1 %v3039_v56  ;;  %v3345_v56 = vld [vmem:[%s5062_s2 + $0x1e0] sm:$0xff] }
  0x75   :  { %611 = vmatpush.msrb.mxu3 %v3302_v8  ;;  %569 = vmatpush.msrb.mxu1 %v3311_v10 }
  0x76   :  { %592 = vmatpush.msrb.mxu2 %v3317_v11  ;;  %415 = vmatpush.msra.mxu0 %v168_v13  ;;  %v3651_v13 = vld [vmem:[%s5062_s2 + $0x8] sm:$0xff] }
  0x77   :  { %612 = vmatpush.msrb.mxu3 %v3322_v12  ;;  %570 = vmatpush.msrb.mxu1 %v3332_v14 }
  0x78   :  { %416 = vmatmul.f32.vlgmr.msra.gmra.mxu0 %v3050_v59  ;;  %593 = vmatpush.msrb.mxu2 %v3338_v15  ;;  %v3380_v59 = vld [vmem:[%s5062_s2 + $0x188] sm:$0xff] }
  0x79   :  { %549 = vmatpush.msrb.mxu0 %v3345_v56  ;;  %613 = vmatpush.msrb.mxu3 %v3350_v16 }
  0x7a   :  { %571 = vmatpush.msrb.mxu1 %v3356_v17  ;;  %594 = vmatpush.msrb.mxu2 %v3361_v18 }
  0x7b   :  { %550 = vmatpush.msrb.mxu0 %v3368_v19  ;;  %614 = vmatpush.msrb.mxu3 %v3373_v20 }
  0x7c   :  { %572 = vmatpush.msrb.mxu1 %v3380_v59  ;;  %595 = vmatpush.msrb.mxu2 %v3385_v21 }
  0x7d   :  { %551 = vmatpush.msrb.mxu0 %v3392_v22  ;;  %615 = vmatpush.msrb.mxu3 %v3397_v23 }
  0x7e   :  { %573 = vmatpush.msrb.mxu1 %v3404_v24  ;;  %596 = vmatpush.msrb.mxu2 %v3409_v25 }
  0x7f   :  { %552 = vmatpush.msrb.mxu0 %v3416_v26  ;;  %616 = vmatpush.msrb.mxu3 %v3421_v27 }
  0x80   :  { %574 = vmatpush.msrb.mxu1 %v3428_v28  ;;  %597 = vmatpush.msrb.mxu2 %v3433_v29 }
  0x81   :  { %553 = vmatpush.msrb.mxu0 %v3440_v30  ;;  %617 = vmatpush.msrb.mxu3 %v3445_v31 }
  0x82   :  { %575 = vmatpush.msrb.mxu1 %v3452_v32  ;;  %598 = vmatpush.msrb.mxu2 %v3457_v33 }
  0x83   :  { %554 = vmatpush.msrb.mxu0 %v3464_v34  ;;  %618 = vmatpush.msrb.mxu3 %v3469_v35 }
  0x84   :  { %576 = vmatpush.msrb.mxu1 %v3476_v36  ;;  %599 = vmatpush.msrb.mxu2 %v3481_v37 }
  0x85   :  { %555 = vmatpush.msrb.mxu0 %v3488_v38  ;;  %619 = vmatpush.msrb.mxu3 %v3493_v39 }
  0x86   :  { %577 = vmatpush.msrb.mxu1 %v3500_v40  ;;  %600 = vmatpush.msrb.mxu2 %v3505_v41 }
  0x87   :  { %556 = vmatpush.msrb.mxu0 %v3512_v42  ;;  %620 = vmatpush.msrb.mxu3 %v3517_v43 }
  0x88   :  { %578 = vmatpush.msrb.mxu1 %v3524_v44  ;;  %601 = vmatpush.msrb.mxu2 %v3529_v45 }
  0x89   :  { %557 = vmatpush.msrb.mxu0 %v3536_v46  ;;  %621 = vmatpush.msrb.mxu3 %v3541_v47 }
  0x8a   :  { %579 = vmatpush.msrb.mxu1 %v3548_v48  ;;  %602 = vmatpush.msrb.mxu2 %v3553_v49 }
  0x8b   :  { %558 = vmatpush.msrb.mxu0 %v3560_v50  ;;  %622 = vmatpush.msrb.mxu3 %v3565_v51 }
  0x8c   :  { %580 = vmatpush.msrb.mxu1 %v3572_v52  ;;  %603 = vmatpush.msrb.mxu2 %v3577_v53 }
  0x8d   :  { %559 = vmatpush.msrb.mxu0 %v3584_v54  ;;  %623 = vmatpush.msrb.mxu3 %v3589_v55 }
  0x8e   :  { %581 = vmatpush.msrb.mxu1 %v3596_v57  ;;  %604 = vmatpush.msrb.mxu2 %v3601_v58 }
  0x8f   :  { %560 = vmatpush.msrb.mxu0 %v3608_v60  ;;  %624 = vmatpush.msrb.mxu3 %v3613_v61  ;;  %v3660_v61 = vld [vmem:[%s5062_s2] sm:$0xff] }
  0x90   :  { %605 = vmatmul.f32.vlgmr.msrb.gmra.mxu2 %v2620_v3  ;;  %625 = vmatmul.f32.vlgmr.msrb.gmra.mxu3 %v2620_v3 }
  0x91   :  { %561 = vmatpush.msrb.mxu0 %v3622_v62  ;;  %582 = vmatpush.msrb.mxu1 %v3627_v2 }
  0x92   :  { %821 = vmatpush.msra.mxu2 %v3260_v63  ;;  %841 = vmatpush.msra.mxu3 %v3265_v1 }
  0x93   :  { %562 = vmatpush.msrb.mxu0 %v3634_v6  ;;  %583 = vmatpush.msrb.mxu1 %v3639_v0 }
  0x94   :  { %822 = vmatpush.msra.mxu2 %v3277_v4  ;;  %842 = vmatpush.msra.mxu3 %v3284_v5 }
  0x95   :  { %563 = vmatpush.msrb.mxu0 %v3646_v9  ;;  %584 = vmatpush.msrb.mxu1 %v3651_v13 }
  0x96   :  { %585 = vmatmul.f32.vlgmr.msrb.gmra.mxu1 %v2620_v3  ;;  %823 = vmatpush.msra.mxu2 %v3295_v7 }
  0x97   :  { %564 = vmatpush.msrb.mxu0 %v3660_v61  ;;  %801 = vmatpush.msra.mxu1 %v3311_v10 }
  0x98   :  { %565 = vmatmul.f32.vlgmr.msrb.gmra.mxu0 %v2620_v3  ;;  %843 = vmatpush.msra.mxu3 %v3302_v8  ;;  %v5107_v3 = vld [vmem:[#allocation4_spill] sm:$0xff] }
  0x99   :  { %781 = vmatpush.msra.mxu0 %v3345_v56  ;;  %802 = vmatpush.msra.mxu1 %v3332_v14 }
  0x9a   :  { %824 = vmatpush.msra.mxu2 %v3317_v11  ;;  %844 = vmatpush.msra.mxu3 %v3322_v12 }
  0x9b   :  { %782 = vmatpush.msra.mxu0 %v3368_v19  ;;  %803 = vmatpush.msra.mxu1 %v3356_v17 }
  0x9c   :  { %825 = vmatpush.msra.mxu2 %v3338_v15  ;;  %845 = vmatpush.msra.mxu3 %v3350_v16 }
  0x9d   :  { %783 = vmatpush.msra.mxu0 %v3392_v22  ;;  %804 = vmatpush.msra.mxu1 %v3380_v59 }
  0x9e   :  { %826 = vmatpush.msra.mxu2 %v3361_v18  ;;  %846 = vmatpush.msra.mxu3 %v3373_v20 }
  0x9f   :  { %784 = vmatpush.msra.mxu0 %v3416_v26  ;;  %805 = vmatpush.msra.mxu1 %v3404_v24 }
  0xa0   :  { %827 = vmatpush.msra.mxu2 %v3385_v21  ;;  %847 = vmatpush.msra.mxu3 %v3397_v23 }
  0xa1   :  { %785 = vmatpush.msra.mxu0 %v3440_v30  ;;  %806 = vmatpush.msra.mxu1 %v3428_v28 }
  0xa2   :  { %828 = vmatpush.msra.mxu2 %v3409_v25  ;;  %848 = vmatpush.msra.mxu3 %v3421_v27 }
  0xa3   :  { %786 = vmatpush.msra.mxu0 %v3464_v34  ;;  %807 = vmatpush.msra.mxu1 %v3452_v32 }
  0xa4   :  { %829 = vmatpush.msra.mxu2 %v3433_v29  ;;  %849 = vmatpush.msra.mxu3 %v3445_v31 }
  0xa5   :  { %787 = vmatpush.msra.mxu0 %v3488_v38  ;;  %808 = vmatpush.msra.mxu1 %v3476_v36 }
  0xa6   :  { %830 = vmatpush.msra.mxu2 %v3457_v33  ;;  %850 = vmatpush.msra.mxu3 %v3469_v35 }
  0xa7   :  { %788 = vmatpush.msra.mxu0 %v3512_v42  ;;  %809 = vmatpush.msra.mxu1 %v3500_v40 }
  0xa8   :  { %831 = vmatpush.msra.mxu2 %v3481_v37  ;;  %851 = vmatpush.msra.mxu3 %v3493_v39 }
  0xa9   :  { %789 = vmatpush.msra.mxu0 %v3536_v46  ;;  %810 = vmatpush.msra.mxu1 %v3524_v44 }
  0xaa   :  { %832 = vmatpush.msra.mxu2 %v3505_v41  ;;  %852 = vmatpush.msra.mxu3 %v3517_v43 }
  0xab   :  { %790 = vmatpush.msra.mxu0 %v3560_v50  ;;  %811 = vmatpush.msra.mxu1 %v3548_v48 }
  0xac   :  { %833 = vmatpush.msra.mxu2 %v3529_v45  ;;  %853 = vmatpush.msra.mxu3 %v3541_v47 }
  0xad   :  { %791 = vmatpush.msra.mxu0 %v3584_v54  ;;  %812 = vmatpush.msra.mxu1 %v3572_v52 }
  0xae   :  { %834 = vmatpush.msra.mxu2 %v3553_v49  ;;  %854 = vmatpush.msra.mxu3 %v3565_v51 }
  0xaf   :  { %792 = vmatpush.msra.mxu0 %v3608_v60  ;;  %813 = vmatpush.msra.mxu1 %v3596_v57 }
  0xb0   :  { %835 = vmatpush.msra.mxu2 %v3577_v53  ;;  %855 = vmatpush.msra.mxu3 %v3589_v55 }
  0xb1   :  { %793 = vmatpush.msra.mxu0 %v3622_v62  ;;  %814 = vmatpush.msra.mxu1 %v3627_v2 }
  0xb2   :  { %836 = vmatpush.msra.mxu2 %v3601_v58  ;;  %856 = vmatpush.msra.mxu3 %v5107_v3 }
  0xb3   :  { %794 = vmatpush.msra.mxu0 %v3634_v6  ;;  %815 = vmatpush.msra.mxu1 %v3639_v0 }
  0xb4   :  { %1050 = vmatpush.msrb.mxu2 %v3260_v63  ;;  %1070 = vmatpush.msrb.mxu3 %v3265_v1  ;;  %v3753_v63 = vld [vmem:[%s5063_s3] sm:$0xf] }
  0xb5   :  { %795 = vmatpush.msra.mxu0 %v3646_v9  ;;  %816 = vmatpush.msra.mxu1 %v3651_v13  ;;  %v232_v1 = vperm.slane %v3753_v63, 0 }
  0xb6   :  { %1051 = vmatpush.msrb.mxu2 %v3277_v4  ;;  %1071 = vmatpush.msrb.mxu3 %v3284_v5 }
  0xb7   :  { %1030 = vmatpush.msrb.mxu1 %v3311_v10  ;;  %796 = vmatpush.msra.mxu0 %v3660_v61 }
  0xb8   :  { %1052 = vmatpush.msrb.mxu2 %v3295_v7  ;;  %1072 = vmatpush.msrb.mxu3 %v3302_v8  ;;  %v233_v8 = vperm.slane %v3753_v63, 1 }
  0xb9   :  { %1010 = vmatpush.msrb.mxu0 %v3345_v56  ;;  %1031 = vmatpush.msrb.mxu1 %v3332_v14 }
  0xba   :  { %1053 = vmatpush.msrb.mxu2 %v3317_v11  ;;  %1073 = vmatpush.msrb.mxu3 %v3322_v12 }
  0xbb   :  { %1011 = vmatpush.msrb.mxu0 %v3368_v19  ;;  %1032 = vmatpush.msrb.mxu1 %v3356_v17 }
  0xbc   :  { %1054 = vmatpush.msrb.mxu2 %v3338_v15  ;;  %1074 = vmatpush.msrb.mxu3 %v3350_v16 }
  0xbd   :  { %1012 = vmatpush.msrb.mxu0 %v3392_v22  ;;  %1033 = vmatpush.msrb.mxu1 %v3380_v59  ;;  %v235_v22 = vperm.slane %v3753_v63, 3 }
  0xbe   :  { %1055 = vmatpush.msrb.mxu2 %v3361_v18  ;;  %1075 = vmatpush.msrb.mxu3 %v3373_v20  ;;  %v257_v4 = vpop.f32.mrf.mxu0  ;;  %v234_v20 = vperm.slane %v3753_v63, 2 }
  0xbf   :  { %1013 = vmatpush.msrb.mxu0 %v3416_v26  ;;  %1034 = vmatpush.msrb.mxu1 %v3404_v24  ;;  %v258_v5 = vadd.f32 %v257_v4, %v232_v1 }
  0xc0   :  { %1056 = vmatpush.msrb.mxu2 %v3385_v21  ;;  %1076 = vmatpush.msrb.mxu3 %v3397_v23 }
  0xc1   :  { %1014 = vmatpush.msrb.mxu0 %v3440_v30  ;;  %1035 = vmatpush.msrb.mxu1 %v3428_v28 }
  0xc2   :  { %1057 = vmatpush.msrb.mxu2 %v3409_v25  ;;  %1077 = vmatpush.msrb.mxu3 %v3421_v27 }
  0xc3   :  { %1015 = vmatpush.msrb.mxu0 %v3464_v34  ;;  %1036 = vmatpush.msrb.mxu1 %v3452_v32 }
  0xc4   :  { %1058 = vmatpush.msrb.mxu2 %v3433_v29  ;;  %1078 = vmatpush.msrb.mxu3 %v3445_v31 }
  0xc5   :  { %1016 = vmatpush.msrb.mxu0 %v3488_v38  ;;  %1037 = vmatpush.msrb.mxu1 %v3476_v36 }
  0xc6   :  { %1059 = vmatpush.msrb.mxu2 %v3457_v33  ;;  %1079 = vmatpush.msrb.mxu3 %v3469_v35 }
  0xc7   :  { %1017 = vmatpush.msrb.mxu0 %v3512_v42  ;;  %1038 = vmatpush.msrb.mxu1 %v3500_v40 }
  0xc8   :  { %1060 = vmatpush.msrb.mxu2 %v3481_v37  ;;  %1080 = vmatpush.msrb.mxu3 %v3493_v39  ;;  %v297_v11 = vpop.f32.mrf.mxu2 }
  0xc9   :  { %1018 = vmatpush.msrb.mxu0 %v3536_v46  ;;  %1039 = vmatpush.msrb.mxu1 %v3524_v44 }
  0xca   :  { %1061 = vmatpush.msrb.mxu2 %v3505_v41  ;;  %1081 = vmatpush.msrb.mxu3 %v3517_v43  ;;  %v317_v12 = vpop.f32.mrf.mxu3 }
  0xcb   :  { %1019 = vmatpush.msrb.mxu0 %v3560_v50  ;;  %1040 = vmatpush.msrb.mxu1 %v3548_v48  ;;  %v277_v7 = vpop.f32.mrf.mxu1  ;;  %v318_v15 = vadd.f32 %v317_v12, %v233_v8 }
  0xcc   :  { %v278_v10 = vadd.f32 %v277_v7, %v258_v5  ;;  %1062 = vmatpush.msrb.mxu2 %v3529_v45  ;;  %1082 = vmatpush.msrb.mxu3 %v3541_v47 }
  0xcd   :  { %1020 = vmatpush.msrb.mxu0 %v3584_v54  ;;  %1041 = vmatpush.msrb.mxu1 %v3572_v52 }
  0xce   :  { %v298_v14 = vadd.f32 %v297_v11, %v278_v10  ;;  %1063 = vmatpush.msrb.mxu2 %v3553_v49  ;;  %1083 = vmatpush.msrb.mxu3 %v3565_v51 }
  0xcf   :  { %1021 = vmatpush.msrb.mxu0 %v3608_v60  ;;  %1042 = vmatpush.msrb.mxu1 %v3596_v57 }
  0xd0   :  { %480 = vst [vmem:[#allocation2] sm:$0xff] %v298_v14  ;;  %1064 = vmatpush.msrb.mxu2 %v3577_v53  ;;  %1084 = vmatpush.msrb.mxu3 %v3589_v55 }
  0xd1   :  { %1022 = vmatpush.msrb.mxu0 %v3622_v62  ;;  %1043 = vmatpush.msrb.mxu1 %v3627_v2  ;;  %v337_v56 = vpop.f32.mrf.mxu0 }
  0xd2   :  { %v338_v16 = vadd.f32 %v337_v56, %v318_v15  ;;  %1065 = vmatpush.msrb.mxu2 %v3601_v58  ;;  %1085 = vmatpush.msrb.mxu3 %v5107_v3 }
  0xd3   :  { %1023 = vmatpush.msrb.mxu0 %v3634_v6  ;;  %1044 = vmatpush.msrb.mxu1 %v3639_v0  ;;  %v357_v17 = vpop.f32.mrf.mxu1 }
  0xd4   :  { %v358_v18 = vadd.f32 %v357_v17, %v338_v16 }
  0xd5   :  { %1024 = vmatpush.msrb.mxu0 %v3646_v9  ;;  %1045 = vmatpush.msrb.mxu1 %v3651_v13 }
  0xd6   :  { %481 = vst [vmem:[#allocation2 + $0x8] sm:$0xff] %v358_v18 }
  0xd7   :  { %1025 = vmatpush.msrb.mxu0 %v3660_v61 }
  0xe8   :  { %v377_v19 = vpop.f32.mrf.mxu2 }
  0xe9   :  { %v378_v21 = vadd.f32 %v377_v19, %v234_v20 }
  0xeb   :  { %v397_v59 = vpop.f32.mrf.mxu3 }
  0xec   :  { %v398_v25 = vadd.f32 %v397_v59, %v378_v21 }
  0xf1   :  { %v437_v23 = vpop.f32.mrf.mxu1 }
  0xf2   :  { %v457_v24 = vpop.f32.mrf.mxu2  ;;  %v438_v26 = vadd.f32 %v437_v23, %v235_v22 }
  0xf4   :  { %v458_v27 = vadd.f32 %v457_v24, %v438_v26  ;;  %v477_v28 = vpop.f32.mrf.mxu3 }
  0xf5   :  { %v417_v29 = vpop.f32.mrf.mxu0 }
  0xf6   :  { %v418_v30 = vadd.f32 %v417_v29, %v398_v25  ;;  %v478_v31 = vadd.f32 %v477_v28, %v458_v27 }
  0xf8   :  { %482 = vst [vmem:[#allocation2 + $0x10] sm:$0xff] %v418_v30 }
  0xf9   :  { %483 = vst [vmem:[#allocation2 + $0x18] sm:$0xff] %v478_v31 }
 0x100   :  { %v484_v41 = vld [vmem:[#allocation2] ss:$8 sm:$0xf] }
 0x113   :  { %v586_v32 = vpop.f32.mrf.mxu1  ;;  %v606_v33 = vpop.f32.mrf.mxu2 }
 0x114   :  { %v633_v34 = vrot.slane %v586_v32, 7  ;;  %v634_v35 = vrot.slane %v606_v33, 6  ;;  %v626_v36 = vpop.f32.mrf.mxu3 }
 0x115   :  { %v635_v37 = vrot.slane %v626_v36, 5  ;;  %v566_v38 = vpop.f32.mrf.mxu0 }
 0x116   :  { %v637_v39 = vsel %vm636_vm0, %v566_v38, %v633_v34 }
 0x117   :  { %v639_v40 = vsel %vm638_vm1, %v634_v35, %v635_v37  ;;  %v716_v37 = vld [vmem:[#allocation2 + $0x1] ss:$8 sm:$0xf] }
 0x118   :  { %v641_v42 = vsel %vm640_vm2, %v637_v39, %v639_v40 }
 0x119   :  { %v643_v43 = vadd.f32 %v641_v42, %v484_v41 }
 0x11b   :  { %v2460_v44 = vmul.f32 -1.442695, %v643_v43  ;;  %v664_v45 = vrot.slane %v643_v43, 1  ;;  %v688_v46 = vrot.slane %v643_v43, 3  ;;  %v685_v61 = vrot.slane %v643_v43, 2 }
 0x11d   :  { %2488 = vpow2.f32 %v2460_v44  ;;  %v2461_v47 = vmul.f32 -1.442695, %v664_v45  ;;  %v2462_v48 = vmul.f32 -1.442695, %v688_v46 }
 0x11f   :  { %2490 = vpow2.f32 %v2461_v47 }
 0x120   :  { %2492 = vpow2.f32 %v2462_v48 }
 0x123   :  { %v2489_v49 = vpop.eup %2488 }
 0x124   :  { %v647_v50 = vadd.f32 1.0, %v2489_v49 }
 0x125   :  { %v2491_v51 = vpop.eup %2490 }
 0x126   :  { %v2493_v52 = vpop.eup %2492  ;;  %2494 = vrcp.f32 %v647_v50  ;;  %v669_v53 = vadd.f32 1.0, %v2491_v51  ;;  %v659_v0 = vand.u32 2147483648, %v647_v50  ;;  %v657_v13 = vand.u32 2147483647, %v647_v50 }
 0x127   :  { %v693_v54 = vadd.f32 1.0, %v2493_v52  ;;  %vm653_vm4 = vweird.f32 %v647_v50 }
 0x128   :  { %2496 = vrcp.f32 %v669_v53  ;;  %v681_v1 = vand.u32 2147483648, %v669_v53  ;;  %v679_v5 = vand.u32 2147483647, %v669_v53  ;;  %v660_v8 = vor.u32 1.1754944e-38, %v659_v0 }
 0x129   :  { %2498 = vrcp.f32 %v693_v54  ;;  %vm658_vm7 = vcmp.eq.f32.partialorder %v657_v13, 8.507059e+37  ;;  %vm675_vm8 = vweird.f32 %v669_v53  ;;  %v705_v21 = vand.u32 2147483648, %v693_v54 }
 0x12a   :  { %2500 = vtanh.f32 %v685_v61  ;;  %v682_v14 = vor.u32 1.1754944e-38, %v681_v1  ;;  %vm680_vm10 = vcmp.eq.f32.partialorder %v679_v5, 8.507059e+37  ;;  %vm699_vm12 = vweird.f32 %v693_v54 }
 0x12b   :  { %v703_v22 = vand.u32 2147483647, %v693_v54  ;;  %v706_v24 = vor.u32 1.1754944e-38, %v705_v21 }
 0x12c   :  { %v2495_v55 = vpop.eup %2494 }
 0x12d   :  { %v649_v57 = vmul.f32 %v2495_v55, %v647_v50  ;;  %vm654_vm3 = vweird.f32 %v2495_v55  ;;  %vm704_vm14 = vcmp.eq.f32.partialorder %v703_v22, 8.507059e+37 }
 0x12e   :  { %v2497_v58 = vpop.eup %2496  ;;  %vm655_vm5 = vmor %vm653_vm4, %vm654_vm3 }
 0x12f   :  { %v650_v60 = vsub.f32 1.0, %v649_v57  ;;  %v2499_v62 = vpop.eup %2498  ;;  %v671_v2 = vmul.f32 %v2497_v58, %v669_v53  ;;  %vm676_vm6 = vweird.f32 %v2497_v58 }
 0x130   :  { %v695_v9 = vmul.f32 %v2499_v62, %v693_v54  ;;  %vm677_vm9 = vmor %vm675_vm8, %vm676_vm6  ;;  %v2501_v56 = vpop.eup %2500  ;;  %vm700_vm11 = vweird.f32 %v2499_v62 }
 0x131   :  { %v651_v6 = vmul.f32 %v2495_v55, %v650_v60  ;;  %v672_v3 = vsub.f32 1.0, %v671_v2  ;;  %vm701_vm13 = vmor %vm699_vm12, %vm700_vm11 }
 0x132   :  { %v696_v10 = vsub.f32 1.0, %v695_v9 }
 0x133   :  { %v652_v63 = vadd.f32 %v2495_v55, %v651_v6  ;;  %v673_v4 = vmul.f32 %v2497_v58, %v672_v3 }
 0x134   :  { %v697_v17 = vmul.f32 %v2499_v62, %v696_v10 }
 0x135   :  { %v656_v7 = vsel %vm655_vm5, %v2495_v55, %v652_v63  ;;  %v674_v11 = vadd.f32 %v2497_v58, %v673_v4 }
 0x136   :  { %v661_v12 = vsel %vm658_vm7, %v660_v8, %v656_v7  ;;  %v698_v59 = vadd.f32 %v2499_v62, %v697_v17 }
 0x137   :  { %v678_v15 = vsel %vm677_vm9, %v2497_v58, %v674_v11  ;;  %v710_v18 = vmul.f32 %v2501_v56, %v661_v12 }
 0x138   :  { %v683_v16 = vsel %vm680_vm10, %v682_v14, %v678_v15  ;;  %v702_v23 = vsel %vm701_vm13, %v2499_v62, %v698_v59 }
 0x139   :  { %v709_v19 = vmul.f32 0.0, %v683_v16  ;;  %v707_v26 = vsel %vm704_vm14, %v706_v24, %v702_v23 }
 0x13b   :  { %v3803_v20 = vadd.f32 %v710_v18, %v709_v19 }
 0x13d   :  { %2502 = vtanh.f32 %v3803_v20 }
 0x143   :  { %v2503_v25 = vpop.eup %2502 }
 0x144   :  { %v713_v27 = vmul.f32 %v2503_v25, %v707_v26  ;;  %v3821_v25 = vld [vmem:[%s5062_s2 + $0x1e8] sm:$0xff]  ;;  %v3826_v26 = vld [vmem:[%s5062_s2 + $0x1f0] sm:$0xff] }
 0x146   :  { %714 = vst [vmem:[#allocation3] sm:$0x1] %v713_v27  ;;  %797 = vmatmul.f32.vlgmr.msra.gmra.mxu0 %v713_v27  ;;  %817 = vmatmul.f32.vlgmr.msra.gmra.mxu1 %v713_v27 }
 0x147   :  { %837 = vmatmul.f32.vlgmr.msra.gmra.mxu2 %v713_v27  ;;  %857 = vmatmul.f32.vlgmr.msra.gmra.mxu3 %v713_v27  ;;  %v3833_v27 = vld [vmem:[%s5062_s2 + $0x1f8] sm:$0xff] }
 0x148   :  { %1259 = vmatpush.msra.mxu1 %v3821_v25  ;;  %5108 = vst [vmem:[#allocation4_spill] sm:$0xff] %v3833_v27  ;;  %1279 = vmatpush.msra.mxu2 %v3826_v26 }
 0x149   :  { %1299 = vmatpush.msra.mxu3 %v3833_v27 }
 0x1c3   :  { %v818_v28 = vpop.f32.mrf.mxu1  ;;  %v798_v34 = vpop.f32.mrf.mxu0 }
 0x1c4   :  { %v865_v29 = vrot.slane %v818_v28, 7  ;;  %v3840_v28 = vld [vmem:[%s5062_s2 + $0x1c0] sm:$0xff] }
 0x1c5   :  { %5109 = vst [vmem:[#allocation5_spill] sm:$0xff] %v3840_v28 }
 0x1c6   :  { %v868_v35 = vsel %vm636_vm0, %v798_v34, %v865_v29  ;;  %v3845_v29 = vld [vmem:[%s5062_s2 + $0x1c8] sm:$0xff]  ;;  %v3874_v34 = vld [vmem:[%s5062_s2 + $0x1b0] sm:$0xff] }
 0x1c7   :  { %1260 = vmatpush.msra.mxu1 %v3845_v29  ;;  %5113 = vst [vmem:[#allocation9_spill] sm:$0xff] %v3874_v34 }
 0x1ca   :  { %v838_v30 = vpop.f32.mrf.mxu2  ;;  %v858_v31 = vpop.f32.mrf.mxu3 }
 0x1cb   :  { %v866_v32 = vrot.slane %v838_v30, 6  ;;  %v867_v33 = vrot.slane %v858_v31, 5  ;;  %v3850_v30 = vld [vmem:[%s5062_s2 + $0x1d0] sm:$0xff]  ;;  %v3857_v31 = vld [vmem:[%s5062_s2 + $0x1d8] sm:$0xff] }
 0x1cc   :  { %5110 = vst [vmem:[#allocation6_spill] sm:$0xff] %v3850_v30  ;;  %1280 = vmatpush.msra.mxu2 %v3850_v30  ;;  %1300 = vmatpush.msra.mxu3 %v3857_v31 }
 0x1cd   :  { %v869_v36 = vsel %vm638_vm1, %v866_v32, %v867_v33  ;;  %5111 = vst [vmem:[#allocation7_spill] sm:$0xff] %v3857_v31  ;;  %v3864_v32 = vld [vmem:[%s5062_s2 + $0x1a0] sm:$0xff]  ;;  %v3869_v33 = vld [vmem:[%s5062_s2 + $0x1a8] sm:$0xff] }
 0x1ce   :  { %v870_v38 = vsel %vm640_vm2, %v868_v35, %v869_v36  ;;  %5112 = vst [vmem:[#allocation8_spill] sm:$0xff] %v3864_v32  ;;  %1261 = vmatpush.msra.mxu1 %v3869_v33  ;;  %v3881_v35 = vld [vmem:[%s5062_s2 + $0x1b8] sm:$0xff]  ;;  %1281 = vmatpush.msra.mxu2 %v3874_v34  ;;  %v3888_v36 = vld [vmem:[%s5062_s2 + $0x180] sm:$0xff] }
 0x1cf   :  { %v872_v39 = vadd.f32 %v870_v38, %v716_v37  ;;  %5114 = vst [vmem:[#allocation10_spill] sm:$0xff] %v3881_v35  ;;  %1301 = vmatpush.msra.mxu3 %v3881_v35  ;;  %v3893_v37 = vld [vmem:[%s5062_s2 + $0x188] sm:$0xff]  ;;  %v3898_v38 = vld [vmem:[%s5062_s2 + $0x190] sm:$0xff] }
 0x1d0   :  { %5115 = vst [vmem:[#allocation11_spill] sm:$0xff] %v3893_v37  ;;  %1262 = vmatpush.msra.mxu1 %v3893_v37  ;;  %1282 = vmatpush.msra.mxu2 %v3898_v38 }
 0x1d1   :  { %v2463_v40 = vmul.f32 -1.442695, %v872_v39  ;;  %v893_v41 = vrot.slane %v872_v39, 1  ;;  %v917_v42 = vrot.slane %v872_v39, 3  ;;  %v914_v54 = vrot.slane %v872_v39, 2  ;;  %v3905_v39 = vld [vmem:[%s5062_s2 + $0x198] sm:$0xff] }
 0x1d2   :  { %5116 = vst [vmem:[#allocation12_spill] sm:$0xff] %v3905_v39  ;;  %1302 = vmatpush.msra.mxu3 %v3905_v39 }
 0x1d3   :  { %2504 = vpow2.f32 %v2463_v40  ;;  %v2464_v43 = vmul.f32 -1.442695, %v893_v41  ;;  %v2465_v44 = vmul.f32 -1.442695, %v917_v42  ;;  %v3912_v40 = vld [vmem:[%s5062_s2 + $0x160] sm:$0xff]  ;;  %v3917_v41 = vld [vmem:[%s5062_s2 + $0x168] sm:$0xff] }
 0x1d4   :  { %5117 = vst [vmem:[#allocation13_spill] sm:$0xff] %v3912_v40  ;;  %v3922_v42 = vld [vmem:[%s5062_s2 + $0x170] sm:$0xff]  ;;  %1263 = vmatpush.msra.mxu1 %v3917_v41 }
 0x1d5   :  { %2506 = vpow2.f32 %v2464_v43  ;;  %5118 = vst [vmem:[#allocation14_spill] sm:$0xff] %v3917_v41  ;;  %1283 = vmatpush.msra.mxu2 %v3922_v42 }
 0x1d6   :  { %2508 = vpow2.f32 %v2465_v44  ;;  %v3929_v44 = vld [vmem:[%s5062_s2 + $0x178] sm:$0xff] }
 0x1d7   :  { %1303 = vmatpush.msra.mxu3 %v3929_v44 }
 0x1d9   :  { %v2505_v45 = vpop.eup %2504 }
 0x1da   :  { %v876_v46 = vadd.f32 1.0, %v2505_v45  ;;  %v3936_v45 = vld [vmem:[%s5062_s2 + $0x140] sm:$0xff] }
 0x1db   :  { %v2507_v47 = vpop.eup %2506 }
 0x1dc   :  { %v2509_v48 = vpop.eup %2508  ;;  %2510 = vrcp.f32 %v876_v46  ;;  %v898_v49 = vadd.f32 1.0, %v2507_v47  ;;  %v888_v60 = vand.u32 2147483648, %v876_v46  ;;  %v886_v6 = vand.u32 2147483647, %v876_v46  ;;  %v3946_v47 = vld [vmem:[%s5062_s2 + $0x150] sm:$0xff] }
 0x1dd   :  { %v922_v50 = vadd.f32 1.0, %v2509_v48  ;;  %vm882_vm3 = vweird.f32 %v876_v46  ;;  %v3953_v48 = vld [vmem:[%s5062_s2 + $0x158] sm:$0xff]  ;;  %1284 = vmatpush.msra.mxu2 %v3946_v47 }
 0x1de   :  { %2512 = vrcp.f32 %v898_v49  ;;  %v910_v0 = vand.u32 2147483648, %v898_v49  ;;  %v908_v3 = vand.u32 2147483647, %v898_v49  ;;  %v889_v63 = vor.u32 1.1754944e-38, %v888_v60  ;;  %1304 = vmatpush.msra.mxu3 %v3953_v48  ;;  %v3992_v60 = vld [vmem:[%s5062_s2 + $0x110] sm:$0xff] }
 0x1df   :  { %2514 = vrcp.f32 %v922_v50  ;;  %vm887_vm6 = vcmp.eq.f32.partialorder %v886_v6, 8.507059e+37  ;;  %vm904_vm7 = vweird.f32 %v898_v49  ;;  %v934_v18 = vand.u32 2147483648, %v922_v50  ;;  %v4004_v6 = vld [vmem:[%s5062_s2 + $0xe0] sm:$0xff] }
 0x1e0   :  { %2516 = vtanh.f32 %v914_v54  ;;  %v911_v8 = vor.u32 1.1754944e-38, %v910_v0  ;;  %vm909_vm9 = vcmp.eq.f32.partialorder %v908_v3, 8.507059e+37  ;;  %vm928_vm11 = vweird.f32 %v922_v50  ;;  %v3980_v54 = vld [vmem:[%s5062_s2 + $0x100] sm:$0xff]  ;;  %v4009_v0 = vld [vmem:[%s5062_s2 + $0xe8] sm:$0xff]  ;;  %v4021_v3 = vld [vmem:[%s5062_s2 + $0xf8] sm:$0xff] }
 0x1e1   :  { %v932_v19 = vand.u32 2147483647, %v922_v50  ;;  %v935_v21 = vor.u32 1.1754944e-38, %v934_v18 }
 0x1e2   :  { %v2511_v51 = vpop.eup %2510 }
 0x1e3   :  { %v878_v52 = vmul.f32 %v2511_v51, %v876_v46  ;;  %vm883_vm15 = vweird.f32 %v2511_v51  ;;  %vm933_vm13 = vcmp.eq.f32.partialorder %v932_v19, 8.507059e+37  ;;  %v3941_v46 = vld [vmem:[%s5062_s2 + $0x148] sm:$0xff] }
 0x1e4   :  { %v2513_v53 = vpop.eup %2512  ;;  %vm884_vm5 = vmor %vm882_vm3, %vm883_vm15  ;;  %5119 = vst [vmem:[#allocation15_spill] sm:$0xff] %v3941_v46  ;;  %1264 = vmatpush.msra.mxu1 %v3941_v46 }
 0x1e5   :  { %v2515_v55 = vpop.eup %2514  ;;  %v879_v57 = vsub.f32 1.0, %v878_v52  ;;  %v900_v58 = vmul.f32 %v2513_v53, %v898_v49  ;;  %vm905_vm4 = vweird.f32 %v2513_v53  ;;  %v3958_v49 = vld [vmem:[%s5062_s2 + $0x120] sm:$0xff]  ;;  %v3970_v52 = vld [vmem:[%s5062_s2 + $0x130] sm:$0xff] }
 0x1e6   :  { %v924_v61 = vmul.f32 %v2515_v55, %v922_v50  ;;  %vm906_vm8 = vmor %vm904_vm7, %vm905_vm4  ;;  %v2517_v11 = vpop.eup %2516  ;;  %vm929_vm10 = vweird.f32 %v2515_v55  ;;  %v3963_v50 = vld [vmem:[%s5062_s2 + $0x128] sm:$0xff]  ;;  %1285 = vmatpush.msra.mxu2 %v3970_v52 }
 0x1e7   :  { %v901_v62 = vsub.f32 1.0, %v900_v58  ;;  %v880_v2 = vmul.f32 %v2511_v51, %v879_v57  ;;  %vm930_vm12 = vmor %vm928_vm11, %vm929_vm10  ;;  %1265 = vmatpush.msra.mxu1 %v3963_v50  ;;  %v3987_v58 = vld [vmem:[%s5062_s2 + $0x108] sm:$0xff] }
 0x1e8   :  { %v925_v1 = vsub.f32 1.0, %v924_v61  ;;  %v3997_v61 = vld [vmem:[%s5062_s2 + $0x118] sm:$0xff]  ;;  %1286 = vmatpush.msra.mxu2 %v3992_v60 }
 0x1e9   :  { %v881_v9 = vadd.f32 %v2511_v51, %v880_v2  ;;  %v902_v13 = vmul.f32 %v2513_v53, %v901_v62  ;;  %1266 = vmatpush.msra.mxu1 %v3987_v58 }
 0x1ea   :  { %v926_v14 = vmul.f32 %v2515_v55, %v925_v1 }
 0x1eb   :  { %v885_v4 = vsel %vm884_vm5, %v2511_v51, %v881_v9  ;;  %v903_v5 = vadd.f32 %v2513_v53, %v902_v13  ;;  %v4016_v13 = vld [vmem:[%s5062_s2 + $0xf0] sm:$0xff]  ;;  %1267 = vmatpush.msra.mxu1 %v4009_v0 }
 0x1ec   :  { %v890_v7 = vsel %vm887_vm6, %v889_v63, %v885_v4  ;;  %v927_v17 = vadd.f32 %v2515_v55, %v926_v14  ;;  %v4030_v4 = vld [vmem:[%s5062_s2 + $0xc0] sm:$0xff]  ;;  %1287 = vmatpush.msra.mxu2 %v4016_v13 }
 0x1ed   :  { %v907_v10 = vsel %vm906_vm8, %v2513_v53, %v903_v5  ;;  %v939_v56 = vmul.f32 %v2517_v11, %v890_v7  ;;  %v3975_v53 = vld [vmem:[%s5062_s2 + $0x138] sm:$0xff]  ;;  %v4035_v5 = vld [vmem:[%s5062_s2 + $0xc8] sm:$0xff]  ;;  %v4057_v14 = vld [vmem:[%s5062_s2 + $0xa0] sm:$0xff] }
 0x1ee   :  { %v912_v12 = vsel %vm909_vm9, %v911_v8, %v907_v10  ;;  %v931_v59 = vsel %vm930_vm12, %v2515_v55, %v927_v17  ;;  %1305 = vmatpush.msra.mxu3 %v3975_v53  ;;  %v945_v7 = vld [vmem:[#allocation2 + $0x2] ss:$8 sm:$0xf]  ;;  %1268 = vmatpush.msra.mxu1 %v4035_v5 }
 0x1ef   :  { %v938_v15 = vmul.f32 %v912_v12, %v3803_v20  ;;  %v936_v23 = vsel %vm933_vm13, %v935_v21, %v931_v59  ;;  %v3816_v20 = vld [vmem:[%s5062_s2 + $0x1e0] sm:$0xff]  ;;  %v4043_v10 = vld [vmem:[%s5062_s2 + $0xd0] sm:$0xff]  ;;  %v4048_v11 = vld [vmem:[%s5062_s2 + $0xd8] sm:$0xff] }
 0x1f0   :  { %1239 = vmatpush.msra.mxu0 %v3816_v20  ;;  %1306 = vmatpush.msra.mxu3 %v3997_v61  ;;  %v4074_v17 = vld [vmem:[%s5062_s2 + $0xb8] sm:$0xff]  ;;  %v4084_v21 = vld [vmem:[%s5062_s2 + $0x80] sm:$0xff] }
 0x1f1   :  { %v3810_v16 = vadd.f32 %v939_v56, %v938_v15  ;;  %v4062_v15 = vld [vmem:[%s5062_s2 + $0xa8] sm:$0xff]  ;;  %v4069_v56 = vld [vmem:[%s5062_s2 + $0xb0] sm:$0xff]  ;;  %1288 = vmatpush.msra.mxu2 %v4043_v10 }
 0x1f2   :  { %1240 = vmatpush.msra.mxu0 %v3840_v28  ;;  %1307 = vmatpush.msra.mxu3 %v4021_v3 }
 0x1f3   :  { %2518 = vtanh.f32 %v3810_v16  ;;  %1269 = vmatpush.msra.mxu1 %v4062_v15  ;;  %1289 = vmatpush.msra.mxu2 %v4069_v56 }
 0x1f4   :  { %1241 = vmatpush.msra.mxu0 %v3864_v32  ;;  %1308 = vmatpush.msra.mxu3 %v4048_v11 }
 0x1f6   :  { %1242 = vmatpush.msra.mxu0 %v3888_v36  ;;  %1309 = vmatpush.msra.mxu3 %v4074_v17 }
 0x1f8   :  { %1243 = vmatpush.msra.mxu0 %v3912_v40 }
 0x1f9   :  { %v2519_v22 = vpop.eup %2518 }
 0x1fa   :  { %v942_v24 = vmul.f32 %v2519_v22, %v936_v23  ;;  %1244 = vmatpush.msra.mxu0 %v3936_v45  ;;  %v4089_v22 = vld [vmem:[%s5062_s2 + $0x88] sm:$0xff]  ;;  %v4096_v23 = vld [vmem:[%s5062_s2 + $0x90] sm:$0xff] }
 0x1fb   :  { %1270 = vmatpush.msra.mxu1 %v4089_v22  ;;  %1290 = vmatpush.msra.mxu2 %v4096_v23 }
 0x1fc   :  { %943 = vst [vmem:[#allocation3 + $0x1] sm:$0x1] %v942_v24  ;;  %1026 = vmatmul.f32.vlgmr.msrb.gmra.mxu0 %v942_v24  ;;  %1046 = vmatmul.f32.vlgmr.msrb.gmra.mxu1 %v942_v24 }
 0x1fd   :  { %1066 = vmatmul.f32.vlgmr.msrb.gmra.mxu2 %v942_v24  ;;  %1086 = vmatmul.f32.vlgmr.msrb.gmra.mxu3 %v942_v24  ;;  %v4101_v24 = vld [vmem:[%s5062_s2 + $0x98] sm:$0xff] }
 0x1fe   :  { %1245 = vmatpush.msra.mxu0 %v3958_v49  ;;  %1310 = vmatpush.msra.mxu3 %v4101_v24 }
 0x200   :  { %1246 = vmatpush.msra.mxu0 %v3980_v54 }
 0x202   :  { %1247 = vmatpush.msra.mxu0 %v4004_v6 }
 0x204   :  { %1248 = vmatpush.msra.mxu0 %v4030_v4 }
 0x206   :  { %1249 = vmatpush.msra.mxu0 %v4057_v14 }
 0x208   :  { %1250 = vmatpush.msra.mxu0 %v4084_v21 }
 0x279   :  { %v1047_v43 = vpop.f32.mrf.mxu1  ;;  %v1027_v9 = vpop.f32.mrf.mxu0 }
 0x27a   :  { %v1094_v51 = vrot.slane %v1047_v43, 7 }
 0x27c   :  { %v1097_v63 = vsel %vm636_vm0, %v1027_v9, %v1094_v51  ;;  %v4132_v9 = vld [vmem:[%s5062_s2 + $0x40] sm:$0xff] }
 0x27d   :  { %5121 = vst [vmem:[#allocation17_spill] sm:$0xff] %v4132_v9 }
 0x280   :  { %v1067_v55 = vpop.f32.mrf.mxu2  ;;  %v1087_v57 = vpop.f32.mrf.mxu3 }
 0x281   :  { %v1095_v62 = vrot.slane %v1067_v55, 6  ;;  %v1096_v2 = vrot.slane %v1087_v57, 5  ;;  %v4108_v55 = vld [vmem:[%s5062_s2 + $0x60] sm:$0xff]  ;;  %v4113_v57 = vld [vmem:[%s5062_s2 + $0x68] sm:$0xff] }
 0x282   :  { %1251 = vmatpush.msra.mxu0 %v4108_v55  ;;  %1271 = vmatpush.msra.mxu1 %v4113_v57 }
 0x283   :  { %v1098_v1 = vsel %vm638_vm1, %v1095_v62, %v1096_v2  ;;  %v4120_v62 = vld [vmem:[%s5062_s2 + $0x70] sm:$0xff]  ;;  %v4125_v2 = vld [vmem:[%s5062_s2 + $0x78] sm:$0xff] }
 0x284   :  { %v1099_v8 = vsel %vm640_vm2, %v1097_v63, %v1098_v1  ;;  %5120 = vst [vmem:[#allocation16_spill] sm:$0xff] %v4125_v2  ;;  %v4137_v63 = vld [vmem:[%s5062_s2 + $0x48] sm:$0xff]  ;;  %v4144_v1 = vld [vmem:[%s5062_s2 + $0x50] sm:$0xff]  ;;  %1291 = vmatpush.msra.mxu2 %v4120_v62  ;;  %1311 = vmatpush.msra.mxu3 %v4125_v2 }
 0x285   :  { %v4050_v12 = vadd.f32 %v1099_v8, %v945_v7  ;;  %5122 = vst [vmem:[#allocation18_spill] sm:$0xff] %v4137_v63  ;;  %v4149_v7 = vld [vmem:[%s5062_s2 + $0x58] sm:$0xff]  ;;  %v4156_v8 = vld [vmem:[%s5062_s2 + $0x20] sm:$0xff]  ;;  %1252 = vmatpush.msra.mxu0 %v4132_v9  ;;  %1272 = vmatpush.msra.mxu1 %v4137_v63  ;;  %v4185_v63 = vld [vmem:[%s5062_s2 + $0x8] sm:$0xff] }
 0x286   :  { %5123 = vst [vmem:[#allocation19_spill] sm:$0xff] %v4144_v1  ;;  %1292 = vmatpush.msra.mxu2 %v4144_v1  ;;  %1312 = vmatpush.msra.mxu3 %v4149_v7  ;;  %v4199_v1 = vld [vmem:[%s5062_s2 + $0x18] sm:$0xff] }
 0x287   :  { %v2466_v18 = vmul.f32 -1.442695, %v4050_v12  ;;  %v1122_v19 = vrot.slane %v4050_v12, 1  ;;  %v1146_v59 = vrot.slane %v4050_v12, 3  ;;  %5124 = vst [vmem:[#allocation20_spill] sm:$0xff] %v4149_v7  ;;  %1253 = vmatpush.msra.mxu0 %v4156_v8  ;;  %v4194_v7 = vld [vmem:[%s5062_s2 + $0x10] sm:$0xff] }
 0x288   :  { %5125 = vst [vmem:[#allocation21_spill] sm:$0xff] %v4156_v8 }
 0x289   :  { %2520 = vpow2.f32 %v2466_v18  ;;  %v2467_v43 = vmul.f32 -1.442695, %v1122_v19  ;;  %v2468_v51 = vmul.f32 -1.442695, %v1146_v59  ;;  %v4161_v18 = vld [vmem:[%s5062_s2 + $0x28] sm:$0xff]  ;;  %v4168_v19 = vld [vmem:[%s5062_s2 + $0x30] sm:$0xff] }
 0x28a   :  { %5126 = vst [vmem:[#allocation22_spill] sm:$0xff] %v4161_v18  ;;  %v4173_v59 = vld [vmem:[%s5062_s2 + $0x38] sm:$0xff]  ;;  %1273 = vmatpush.msra.mxu1 %v4161_v18  ;;  %1293 = vmatpush.msra.mxu2 %v4168_v19 }
 0x28b   :  { %2522 = vpow2.f32 %v2467_v43  ;;  %1313 = vmatpush.msra.mxu3 %v4173_v59 }
 0x28c   :  { %2524 = vpow2.f32 %v2468_v51  ;;  %v4180_v51 = vld [vmem:[%s5062_s2] sm:$0xff]  ;;  %1274 = vmatpush.msra.mxu1 %v4185_v63  ;;  %1294 = vmatpush.msra.mxu2 %v4194_v7 }
 0x28d   :  { %1254 = vmatpush.msra.mxu0 %v4180_v51  ;;  %1314 = vmatpush.msra.mxu3 %v4199_v1 }
 0x28e   :  { %1488 = vmatpush.msrb.mxu1 %v3821_v25  ;;  %1508 = vmatpush.msrb.mxu2 %v3826_v26 }
 0x28f   :  { %v2521_v43 = vpop.eup %2520  ;;  %1468 = vmatpush.msrb.mxu0 %v3816_v20  ;;  %1528 = vmatpush.msrb.mxu3 %v3833_v27 }
 0x290   :  { %v4187_v9 = vadd.f32 1.0, %v2521_v43  ;;  %1489 = vmatpush.msrb.mxu1 %v3845_v29  ;;  %1509 = vmatpush.msrb.mxu2 %v3850_v30 }
 0x291   :  { %v2523_v2 = vpop.eup %2522  ;;  %1469 = vmatpush.msrb.mxu0 %v3840_v28  ;;  %1529 = vmatpush.msrb.mxu3 %v3857_v31  ;;  %v1143_v28 = vrot.slane %v4050_v12, 2 }
 0x292   :  { %v2525_v43 = vpop.eup %2524  ;;  %2526 = vrcp.f32 %v4187_v9  ;;  %v4204_v8 = vadd.f32 1.0, %v2523_v2  ;;  %1490 = vmatpush.msrb.mxu1 %v3869_v33  ;;  %1510 = vmatpush.msrb.mxu2 %v3874_v34  ;;  %v1117_v34 = vand.u32 2147483648, %v4187_v9  ;;  %vm1111_vm15 = vweird.f32 %v4187_v9 }
 0x293   :  { %v4208_v18 = vadd.f32 1.0, %v2525_v43  ;;  %1470 = vmatpush.msrb.mxu0 %v3864_v32  ;;  %1530 = vmatpush.msrb.mxu3 %v3881_v35 }
 0x294   :  { %2528 = vrcp.f32 %v4204_v8  ;;  %1491 = vmatpush.msrb.mxu1 %v3893_v37  ;;  %1511 = vmatpush.msrb.mxu2 %v3898_v38  ;;  %vm1133_vm6 = vweird.f32 %v4204_v8 }
 0x295   :  { %2530 = vrcp.f32 %v4208_v18  ;;  %1471 = vmatpush.msrb.mxu0 %v3888_v36  ;;  %1531 = vmatpush.msrb.mxu3 %v3905_v39  ;;  %v1139_v39 = vand.u32 2147483648, %v4204_v8  ;;  %vm1157_vm10 = vweird.f32 %v4208_v18 }
 0x296   :  { %1492 = vmatpush.msrb.mxu1 %v3917_v41  ;;  %1512 = vmatpush.msrb.mxu2 %v3922_v42  ;;  %2532 = vtanh.f32 %v1143_v28  ;;  %v1118_v28 = vor.u32 1.1754944e-38, %v1117_v34 }
 0x297   :  { %1472 = vmatpush.msrb.mxu0 %v3912_v40  ;;  %1532 = vmatpush.msrb.mxu3 %v3929_v44 }
 0x298   :  { %v2527_v2 = vpop.eup %2526  ;;  %1493 = vmatpush.msrb.mxu1 %v3941_v46  ;;  %1513 = vmatpush.msrb.mxu2 %v3946_v47 }
 0x299   :  { %v1107_v43 = vmul.f32 %v2527_v2, %v4187_v9  ;;  %vm1112_vm14 = vweird.f32 %v2527_v2  ;;  %1473 = vmatpush.msrb.mxu0 %v3936_v45  ;;  %1533 = vmatpush.msrb.mxu3 %v3953_v48 }
 0x29a   :  { %v2529_v27 = vpop.eup %2528  ;;  %vm1113_vm4 = vmor %vm1111_vm15, %vm1112_vm14  ;;  %1494 = vmatpush.msrb.mxu1 %v3963_v50  ;;  %1514 = vmatpush.msrb.mxu2 %v3970_v52 }
 0x29b   :  { %v4230_v30 = vpop.eup %2530  ;;  %v1108_v31 = vsub.f32 1.0, %v1107_v43  ;;  %v1129_v32 = vmul.f32 %v2529_v27, %v4204_v8  ;;  %v1115_v43 = vand.u32 2147483647, %v4187_v9  ;;  %vm1134_vm3 = vweird.f32 %v2529_v27  ;;  %1474 = vmatpush.msrb.mxu0 %v3958_v49  ;;  %1534 = vmatpush.msrb.mxu3 %v3975_v53 }
 0x29c   :  { %v1153_v35 = vmul.f32 %v4230_v30, %v4208_v18  ;;  %vm1135_vm7 = vmor %vm1133_vm6, %vm1134_vm3  ;;  %1495 = vmatpush.msrb.mxu1 %v3987_v58  ;;  %1515 = vmatpush.msrb.mxu2 %v3992_v60  ;;  %vm1158_vm9 = vweird.f32 %v4230_v30 }
 0x29d   :  { %v1130_v12 = vsub.f32 1.0, %v1129_v32  ;;  %v1109_v37 = vmul.f32 %v2527_v2, %v1108_v31  ;;  %v1137_v31 = vand.u32 2147483647, %v4204_v8  ;;  %vm1116_vm5 = vcmp.eq.f32.partialorder %v1115_v43, 8.507059e+37  ;;  %1475 = vmatpush.msrb.mxu0 %v3980_v54  ;;  %1535 = vmatpush.msrb.mxu3 %v3997_v61  ;;  %vm1159_vm11 = vmor %vm1157_vm10, %vm1158_vm9 }
 0x29e   :  { %v1154_v32 = vsub.f32 1.0, %v1153_v35  ;;  %v2533_v35 = vpop.eup %2532  ;;  %1496 = vmatpush.msrb.mxu1 %v4009_v0  ;;  %1516 = vmatpush.msrb.mxu2 %v4016_v13 }
 0x29f   :  { %v1110_v40 = vadd.f32 %v2527_v2, %v1109_v37  ;;  %v1131_v41 = vmul.f32 %v2529_v27, %v1130_v12  ;;  %v1140_v12 = vor.u32 1.1754944e-38, %v1139_v39  ;;  %vm1138_vm8 = vcmp.eq.f32.partialorder %v1137_v31, 8.507059e+37  ;;  %1476 = vmatpush.msrb.mxu0 %v4004_v6  ;;  %1536 = vmatpush.msrb.mxu3 %v4021_v3 }
 0x2a0   :  { %1497 = vmatpush.msrb.mxu1 %v4035_v5  ;;  %1517 = vmatpush.msrb.mxu2 %v4043_v10 }
 0x2a1   :  { %v1114_v9 = vsel %vm1113_vm4, %v2527_v2, %v1110_v40  ;;  %v1132_v46 = vadd.f32 %v2529_v27, %v1131_v41  ;;  %v1155_v41 = vmul.f32 %v4230_v30, %v1154_v32  ;;  %1477 = vmatpush.msrb.mxu0 %v4030_v4  ;;  %1537 = vmatpush.msrb.mxu3 %v4048_v11  ;;  %v1161_v2 = vand.u32 2147483647, %v4208_v18  ;;  %v5129_v32 = vld [vmem:[#allocation18_spill] sm:$0xff] }
 0x2a2   :  { %v1119_v37 = vsel %vm1116_vm5, %v1118_v28, %v1114_v9  ;;  %1498 = vmatpush.msrb.mxu1 %v4062_v15  ;;  %1518 = vmatpush.msrb.mxu2 %v4069_v56  ;;  %v5127_v28 = vld [vmem:[#allocation16_spill] sm:$0xff] }
 0x2a3   :  { %v1136_v34 = vsel %vm1135_vm7, %v2529_v27, %v1132_v46  ;;  %v1168_v8 = vmul.f32 %v2533_v35, %v1119_v37  ;;  %v1156_v46 = vadd.f32 %v4230_v30, %v1155_v41  ;;  %1478 = vmatpush.msrb.mxu0 %v4057_v14  ;;  %1538 = vmatpush.msrb.mxu3 %v4074_v17  ;;  %vm1162_vm12 = vcmp.eq.f32.partialorder %v1161_v2, 8.507059e+37  ;;  %v5132_v35 = vld [vmem:[#allocation21_spill] sm:$0xff]  ;;  %v5134_v41 = vld [vmem:[#allocation4_spill] sm:$0xff] }
 0x2a4   :  { %v1141_v40 = vsel %vm1138_vm8, %v1140_v12, %v1136_v34  ;;  %1499 = vmatpush.msrb.mxu1 %v4089_v22  ;;  %1519 = vmatpush.msrb.mxu2 %v4096_v23  ;;  %v5130_v12 = vld [vmem:[#allocation19_spill] sm:$0xff]  ;;  %v5131_v34 = vld [vmem:[#allocation20_spill] sm:$0xff]  ;;  %v5139_v2 = vld [vmem:[#allocation9_spill] sm:$0xff] }
 0x2a5   :  { %v1167_v39 = vmul.f32 %v1141_v40, %v3810_v16  ;;  %v1163_v16 = vand.u32 2147483648, %v4208_v18  ;;  %1479 = vmatpush.msrb.mxu0 %v4084_v21  ;;  %1539 = vmatpush.msrb.mxu3 %v4101_v24  ;;  %v1160_v43 = vsel %vm1159_vm11, %v4230_v30, %v1156_v46  ;;  %v5128_v18 = vld [vmem:[#allocation17_spill] sm:$0xff]  ;;  %v5133_v40 = vld [vmem:[#allocation22_spill] sm:$0xff]  ;;  %v5137_v46 = vld [vmem:[#allocation7_spill] sm:$0xff] }
 0x2a6   :  { %1500 = vmatpush.msrb.mxu1 %v4113_v57  ;;  %1520 = vmatpush.msrb.mxu2 %v4120_v62 }
 0x2a7   :  { %v4269_v27 = vadd.f32 %v1168_v8, %v1167_v39  ;;  %1480 = vmatpush.msrb.mxu0 %v4108_v55  ;;  %v1164_v31 = vor.u32 1.1754944e-38, %v1163_v16  ;;  %1540 = vmatpush.msrb.mxu3 %v5127_v28  ;;  %v5135_v39 = vld [vmem:[#allocation5_spill] sm:$0xff]  ;;  %v5136_v8 = vld [vmem:[#allocation6_spill] sm:$0xff]  ;;  %v5138_v16 = vld [vmem:[#allocation8_spill] sm:$0xff] }
 0x2a8   :  { %1501 = vmatpush.msrb.mxu1 %v5129_v32  ;;  %1521 = vmatpush.msrb.mxu2 %v5130_v12 }
 0x2a9   :  { %2534 = vtanh.f32 %v4269_v27  ;;  %1481 = vmatpush.msrb.mxu0 %v5128_v18  ;;  %v1165_v37 = vsel %vm1162_vm12, %v1164_v31, %v1160_v43  ;;  %1541 = vmatpush.msrb.mxu3 %v5131_v34  ;;  %v5144_v43 = vld [vmem:[#allocation14_spill] sm:$0xff] }
 0x2aa   :  { %1502 = vmatpush.msrb.mxu1 %v5133_v40  ;;  %1522 = vmatpush.msrb.mxu2 %v4168_v19 }
 0x2ab   :  { %1482 = vmatpush.msrb.mxu0 %v5132_v35  ;;  %1542 = vmatpush.msrb.mxu3 %v4173_v59 }
 0x2ac   :  { %1503 = vmatpush.msrb.mxu1 %v4185_v63  ;;  %1523 = vmatpush.msrb.mxu2 %v4194_v7 }
 0x2ad   :  { %1483 = vmatpush.msrb.mxu0 %v4180_v51  ;;  %1543 = vmatpush.msrb.mxu3 %v4199_v1 }
 0x2af   :  { %v2535_v9 = vpop.eup %2534 }
 0x2b0   :  { %v1171_v30 = vmul.f32 %v2535_v9, %v1165_v37 }
 0x2b2   :  { %1172 = vst [vmem:[#allocation3 + $0x2] sm:$0x1] %v1171_v30  ;;  %1255 = vmatmul.f32.vlgmr.msra.gmra.mxu0 %v1171_v30  ;;  %1275 = vmatmul.f32.vlgmr.msra.gmra.mxu1 %v1171_v30 }
 0x2b3   :  { %1295 = vmatmul.f32.vlgmr.msra.gmra.mxu2 %v1171_v30  ;;  %1315 = vmatmul.f32.vlgmr.msra.gmra.mxu3 %v1171_v30 }
 0x2b4   :  { %1697 = vmatpush.msra.mxu0 %v3816_v20  ;;  %1717 = vmatpush.msra.mxu1 %v3821_v25  ;;  %v5140_v20 = vld [vmem:[#allocation10_spill] sm:$0xff]  ;;  %v5141_v25 = vld [vmem:[#allocation11_spill] sm:$0xff] }
 0x2b5   :  { %1737 = vmatpush.msra.mxu2 %v3826_v26  ;;  %1757 = vmatpush.msra.mxu3 %v5134_v41  ;;  %v5142_v26 = vld [vmem:[#allocation12_spill] sm:$0xff] }
 0x2b6   :  { %1698 = vmatpush.msra.mxu0 %v5135_v39  ;;  %1718 = vmatpush.msra.mxu1 %v3845_v29  ;;  %v5143_v29 = vld [vmem:[#allocation13_spill] sm:$0xff] }
 0x2b7   :  { %1738 = vmatpush.msra.mxu2 %v5136_v8  ;;  %1758 = vmatpush.msra.mxu3 %v5137_v46 }
 0x2b8   :  { %1699 = vmatpush.msra.mxu0 %v5138_v16  ;;  %1719 = vmatpush.msra.mxu1 %v3869_v33  ;;  %v5145_v33 = vld [vmem:[#allocation15_spill] sm:$0xff] }
 0x2b9   :  { %1739 = vmatpush.msra.mxu2 %v5139_v2  ;;  %1759 = vmatpush.msra.mxu3 %v5140_v20 }
 0x2ba   :  { %1700 = vmatpush.msra.mxu0 %v3888_v36  ;;  %1720 = vmatpush.msra.mxu1 %v5141_v25 }
 0x2bb   :  { %1740 = vmatpush.msra.mxu2 %v3898_v38  ;;  %1760 = vmatpush.msra.mxu3 %v5142_v26 }
 0x2bc   :  { %1701 = vmatpush.msra.mxu0 %v5143_v29  ;;  %1721 = vmatpush.msra.mxu1 %v5144_v43 }
 0x2bd   :  { %1741 = vmatpush.msra.mxu2 %v3922_v42  ;;  %1761 = vmatpush.msra.mxu3 %v3929_v44 }
 0x2be   :  { %1702 = vmatpush.msra.mxu0 %v3936_v45  ;;  %1722 = vmatpush.msra.mxu1 %v5145_v33 }
 0x2bf   :  { %1742 = vmatpush.msra.mxu2 %v3946_v47  ;;  %1762 = vmatpush.msra.mxu3 %v3953_v48 }
 0x2c0   :  { %1703 = vmatpush.msra.mxu0 %v3958_v49  ;;  %1723 = vmatpush.msra.mxu1 %v3963_v50 }
 0x2c1   :  { %1743 = vmatpush.msra.mxu2 %v3970_v52  ;;  %1763 = vmatpush.msra.mxu3 %v3975_v53  ;;  %v1174_v52 = vld [vmem:[#allocation2 + $0x3] ss:$8 sm:$0xf] }
 0x2c2   :  { %1704 = vmatpush.msra.mxu0 %v3980_v54  ;;  %1724 = vmatpush.msra.mxu1 %v3987_v58 }
 0x2c3   :  { %1744 = vmatpush.msra.mxu2 %v3992_v60  ;;  %1764 = vmatpush.msra.mxu3 %v3997_v61 }
 0x2c4   :  { %1705 = vmatpush.msra.mxu0 %v4004_v6  ;;  %1725 = vmatpush.msra.mxu1 %v4009_v0 }
 0x2c5   :  { %1745 = vmatpush.msra.mxu2 %v4016_v13  ;;  %1765 = vmatpush.msra.mxu3 %v4021_v3 }
 0x2c6   :  { %1706 = vmatpush.msra.mxu0 %v4030_v4  ;;  %1726 = vmatpush.msra.mxu1 %v4035_v5 }
 0x2c7   :  { %1746 = vmatpush.msra.mxu2 %v4043_v10  ;;  %1766 = vmatpush.msra.mxu3 %v4048_v11 }
 0x2c8   :  { %1707 = vmatpush.msra.mxu0 %v4057_v14  ;;  %1727 = vmatpush.msra.mxu1 %v4062_v15 }
 0x2c9   :  { %1747 = vmatpush.msra.mxu2 %v4069_v56  ;;  %1767 = vmatpush.msra.mxu3 %v4074_v17 }
 0x2ca   :  { %1708 = vmatpush.msra.mxu0 %v4084_v21  ;;  %1728 = vmatpush.msra.mxu1 %v4089_v22 }
 0x2cb   :  { %1748 = vmatpush.msra.mxu2 %v4096_v23  ;;  %1768 = vmatpush.msra.mxu3 %v4101_v24 }
 0x2cc   :  { %1709 = vmatpush.msra.mxu0 %v4108_v55  ;;  %1729 = vmatpush.msra.mxu1 %v4113_v57 }
 0x2cd   :  { %1749 = vmatpush.msra.mxu2 %v4120_v62  ;;  %1769 = vmatpush.msra.mxu3 %v5127_v28 }
 0x2ce   :  { %1710 = vmatpush.msra.mxu0 %v5128_v18  ;;  %1730 = vmatpush.msra.mxu1 %v5129_v32 }
 0x2cf   :  { %1750 = vmatpush.msra.mxu2 %v5130_v12  ;;  %1770 = vmatpush.msra.mxu3 %v5131_v34 }
 0x2d0   :  { %1711 = vmatpush.msra.mxu0 %v5132_v35  ;;  %1731 = vmatpush.msra.mxu1 %v5133_v40 }
 0x2d1   :  { %1751 = vmatpush.msra.mxu2 %v4168_v19  ;;  %1771 = vmatpush.msra.mxu3 %v4173_v59 }
 0x2d2   :  { %1712 = vmatpush.msra.mxu0 %v4180_v51  ;;  %1732 = vmatpush.msra.mxu1 %v4185_v63 }
 0x2d3   :  { %1752 = vmatpush.msra.mxu2 %v4194_v7  ;;  %1772 = vmatpush.msra.mxu3 %v4199_v1 }
 0x32f   :  { %v1276_v36 = vpop.f32.mrf.mxu1  ;;  %v1256_v48 = vpop.f32.mrf.mxu0 }
 0x330   :  { %v1323_v38 = vrot.slane %v1276_v36, 7 }
 0x332   :  { %v1326_v49 = vsel %vm636_vm0, %v1256_v48, %v1323_v38 }
 0x336   :  { %v1296_v42 = vpop.f32.mrf.mxu2  ;;  %v1316_v44 = vpop.f32.mrf.mxu3 }
 0x337   :  { %v1324_v45 = vrot.slane %v1296_v42, 6  ;;  %v1325_v47 = vrot.slane %v1316_v44, 5 }
 0x339   :  { %v1327_v50 = vsel %vm638_vm1, %v1324_v45, %v1325_v47  ;;  %v1403_v47 = vld [vmem:[#allocation2 + $0x4] ss:$8 sm:$0xf] }
 0x33a   :  { %v1328_v53 = vsel %vm640_vm2, %v1326_v49, %v1327_v50 }
 0x33b   :  { %v1330_v54 = vadd.f32 %v1328_v53, %v1174_v52 }
 0x33d   :  { %v2469_v58 = vmul.f32 -1.442695, %v1330_v54  ;;  %v1351_v60 = vrot.slane %v1330_v54, 1  ;;  %v1375_v61 = vrot.slane %v1330_v54, 3  ;;  %v1372_v17 = vrot.slane %v1330_v54, 2 }
 0x33f   :  { %2536 = vpow2.f32 %v2469_v58  ;;  %v2470_v6 = vmul.f32 -1.442695, %v1351_v60  ;;  %v2471_v0 = vmul.f32 -1.442695, %v1375_v61 }
 0x341   :  { %2538 = vpow2.f32 %v2470_v6 }
 0x342   :  { %2540 = vpow2.f32 %v2471_v0 }
 0x345   :  { %v2537_v13 = vpop.eup %2536 }
 0x346   :  { %v1334_v3 = vadd.f32 1.0, %v2537_v13 }
 0x347   :  { %v2539_v4 = vpop.eup %2538 }
 0x348   :  { %v2541_v5 = vpop.eup %2540  ;;  %2542 = vrcp.f32 %v1334_v3  ;;  %v1356_v10 = vadd.f32 1.0, %v2539_v4  ;;  %v1346_v24 = vand.u32 2147483648, %v1334_v3  ;;  %v1344_v63 = vand.u32 2147483647, %v1334_v3 }
 0x349   :  { %v1380_v11 = vadd.f32 1.0, %v2541_v5  ;;  %vm1340_vm14 = vweird.f32 %v1334_v3 }
 0x34a   :  { %2544 = vrcp.f32 %v1356_v10  ;;  %v1368_v1 = vand.u32 2147483648, %v1356_v10  ;;  %v1366_v59 = vand.u32 2147483647, %v1356_v10  ;;  %v1347_v51 = vor.u32 1.1754944e-38, %v1346_v24 }
 0x34b   :  { %2546 = vrcp.f32 %v1380_v11  ;;  %vm1345_vm4 = vcmp.eq.f32.partialorder %v1344_v63, 8.507059e+37  ;;  %vm1362_vm5 = vweird.f32 %v1356_v10  ;;  %v1392_v8 = vand.u32 2147483648, %v1380_v11 }
 0x34c   :  { %2548 = vtanh.f32 %v1372_v17  ;;  %v1369_v9 = vor.u32 1.1754944e-38, %v1368_v1  ;;  %vm1367_vm7 = vcmp.eq.f32.partialorder %v1366_v59, 8.507059e+37  ;;  %vm1386_vm9 = vweird.f32 %v1380_v11 }
 0x34d   :  { %v1390_v46 = vand.u32 2147483647, %v1380_v11  ;;  %v1393_v2 = vor.u32 1.1754944e-38, %v1392_v8 }
 0x34e   :  { %v2543_v14 = vpop.eup %2542 }
 0x34f   :  { %v1336_v15 = vmul.f32 %v2543_v14, %v1334_v3  ;;  %vm1341_vm13 = vweird.f32 %v2543_v14  ;;  %vm1391_vm11 = vcmp.eq.f32.partialorder %v1390_v46, 8.507059e+37 }
 0x350   :  { %v2545_v56 = vpop.eup %2544  ;;  %vm1342_vm3 = vmor %vm1340_vm14, %vm1341_vm13 }
 0x351   :  { %v2547_v21 = vpop.eup %2546  ;;  %v1337_v22 = vsub.f32 1.0, %v1336_v15  ;;  %v1358_v23 = vmul.f32 %v2545_v56, %v1356_v10  ;;  %vm1363_vm15 = vweird.f32 %v2545_v56 }
 0x352   :  { %v1382_v55 = vmul.f32 %v2547_v21, %v1380_v11  ;;  %vm1364_vm6 = vmor %vm1362_vm5, %vm1363_vm15  ;;  %v2549_v12 = vpop.eup %2548  ;;  %vm1387_vm8 = vweird.f32 %v2547_v21 }
 0x353   :  { %v1359_v57 = vsub.f32 1.0, %v1358_v23  ;;  %v1338_v62 = vmul.f32 %v2543_v14, %v1337_v22  ;;  %vm1388_vm10 = vmor %vm1386_vm9, %vm1387_vm8 }
 0x354   :  { %v1383_v31 = vsub.f32 1.0, %v1382_v55 }
 0x355   :  { %v1339_v7 = vadd.f32 %v2543_v14, %v1338_v62  ;;  %v1360_v19 = vmul.f32 %v2545_v56, %v1359_v57 }
 0x356   :  { %v1384_v30 = vmul.f32 %v2547_v21, %v1383_v31 }
 0x357   :  { %v1343_v28 = vsel %vm1342_vm3, %v2543_v14, %v1339_v7  ;;  %v1361_v18 = vadd.f32 %v2545_v56, %v1360_v19 }
 0x358   :  { %v1348_v32 = vsel %vm1345_vm4, %v1347_v51, %v1343_v28  ;;  %v1385_v39 = vadd.f32 %v2547_v21, %v1384_v30 }
 0x359   :  { %v1365_v37 = vsel %vm1364_vm6, %v2545_v56, %v1361_v18  ;;  %v1397_v40 = vmul.f32 %v2549_v12, %v1348_v32 }
 0x35a   :  { %v1370_v34 = vsel %vm1367_vm7, %v1369_v9, %v1365_v37  ;;  %v1389_v16 = vsel %vm1388_vm10, %v2547_v21, %v1385_v39 }
 0x35b   :  { %v1396_v35 = vmul.f32 %v1370_v34, %v4269_v27  ;;  %v1394_v25 = vsel %vm1391_vm11, %v1393_v2, %v1389_v16 }
 0x35d   :  { %v4372_v41 = vadd.f32 %v1397_v40, %v1396_v35 }
 0x35f   :  { %2550 = vtanh.f32 %v4372_v41 }
 0x365   :  { %v2551_v20 = vpop.eup %2550 }
 0x366   :  { %v1400_v26 = vmul.f32 %v2551_v20, %v1394_v25  ;;  %v4390_v20 = vld [vmem:[%s5062_s2 + $0x1e8] sm:$0xff]  ;;  %v4395_v25 = vld [vmem:[%s5062_s2 + $0x1f0] sm:$0xff] }
 0x368   :  { %1401 = vst [vmem:[#allocation3 + $0x3] sm:$0x1] %v1400_v26  ;;  %1484 = vmatmul.f32.vlgmr.msrb.gmra.mxu0 %v1400_v26  ;;  %1504 = vmatmul.f32.vlgmr.msrb.gmra.mxu1 %v1400_v26 }
 0x369   :  { %1524 = vmatmul.f32.vlgmr.msrb.gmra.mxu2 %v1400_v26  ;;  %1544 = vmatmul.f32.vlgmr.msrb.gmra.mxu3 %v1400_v26  ;;  %v4402_v26 = vld [vmem:[%s5062_s2 + $0x1f8] sm:$0xff] }
 0x36a   :  { %1946 = vmatpush.msrb.mxu1 %v4390_v20  ;;  %1966 = vmatpush.msrb.mxu2 %v4395_v25 }
 0x36b   :  { %1986 = vmatpush.msrb.mxu3 %v4402_v26 }
 0x3e5   :  { %v1505_v27 = vpop.f32.mrf.mxu1  ;;  %v1485_v42 = vpop.f32.mrf.mxu0 }
 0x3e6   :  { %v1552_v29 = vrot.slane %v1505_v27, 7  ;;  %v4409_v27 = vld [vmem:[%s5062_s2 + $0x1c0] sm:$0xff] }
 0x3e8   :  { %v1555_v44 = vsel %vm636_vm0, %v1485_v42, %v1552_v29  ;;  %v4414_v29 = vld [vmem:[%s5062_s2 + $0x1c8] sm:$0xff]  ;;  %v4443_v42 = vld [vmem:[%s5062_s2 + $0x1b0] sm:$0xff] }
 0x3e9   :  { %1947 = vmatpush.msrb.mxu1 %v4414_v29 }
 0x3ec   :  { %v1525_v43 = vpop.f32.mrf.mxu2  ;;  %v1545_v33 = vpop.f32.mrf.mxu3 }
 0x3ed   :  { %v1553_v36 = vrot.slane %v1525_v43, 6  ;;  %v1554_v38 = vrot.slane %v1545_v33, 5  ;;  %v4419_v43 = vld [vmem:[%s5062_s2 + $0x1d0] sm:$0xff]  ;;  %v4426_v33 = vld [vmem:[%s5062_s2 + $0x1d8] sm:$0xff] }
 0x3ee   :  { %1967 = vmatpush.msrb.mxu2 %v4419_v43  ;;  %1987 = vmatpush.msrb.mxu3 %v4426_v33 }
 0x3ef   :  { %v1556_v45 = vsel %vm638_vm1, %v1553_v36, %v1554_v38  ;;  %v4433_v36 = vld [vmem:[%s5062_s2 + $0x1a0] sm:$0xff]  ;;  %v4438_v38 = vld [vmem:[%s5062_s2 + $0x1a8] sm:$0xff] }
 0x3f0   :  { %v1557_v48 = vsel %vm640_vm2, %v1555_v44, %v1556_v45  ;;  %1948 = vmatpush.msrb.mxu1 %v4438_v38  ;;  %v4450_v44 = vld [vmem:[%s5062_s2 + $0x1b8] sm:$0xff]  ;;  %1968 = vmatpush.msrb.mxu2 %v4443_v42  ;;  %v4457_v45 = vld [vmem:[%s5062_s2 + $0x180] sm:$0xff] }
 0x3f1   :  { %v1559_v49 = vadd.f32 %v1557_v48, %v1403_v47  ;;  %1988 = vmatpush.msrb.mxu3 %v4450_v44  ;;  %v4462_v47 = vld [vmem:[%s5062_s2 + $0x188] sm:$0xff]  ;;  %v4467_v48 = vld [vmem:[%s5062_s2 + $0x190] sm:$0xff] }
 0x3f2   :  { %1949 = vmatpush.msrb.mxu1 %v4462_v47  ;;  %1969 = vmatpush.msrb.mxu2 %v4467_v48 }
 0x3f3   :  { %v2472_v50 = vmul.f32 -1.442695, %v1559_v49  ;;  %v1580_v52 = vrot.slane %v1559_v49, 1  ;;  %v1604_v53 = vrot.slane %v1559_v49, 3  ;;  %v1601_v11 = vrot.slane %v1559_v49, 2  ;;  %v4474_v49 = vld [vmem:[%s5062_s2 + $0x198] sm:$0xff] }
 0x3f4   :  { %1989 = vmatpush.msrb.mxu3 %v4474_v49 }
 0x3f5   :  { %2552 = vpow2.f32 %v2472_v50  ;;  %v2473_v54 = vmul.f32 -1.442695, %v1580_v52  ;;  %v2474_v58 = vmul.f32 -1.442695, %v1604_v53  ;;  %v4481_v50 = vld [vmem:[%s5062_s2 + $0x160] sm:$0xff]  ;;  %v4486_v52 = vld [vmem:[%s5062_s2 + $0x168] sm:$0xff] }
 0x3f6   :  { %v4491_v53 = vld [vmem:[%s5062_s2 + $0x170] sm:$0xff]  ;;  %1950 = vmatpush.msrb.mxu1 %v4486_v52 }
 0x3f7   :  { %2554 = vpow2.f32 %v2473_v54  ;;  %1970 = vmatpush.msrb.mxu2 %v4491_v53 }
 0x3f8   :  { %2556 = vpow2.f32 %v2474_v58  ;;  %v4498_v58 = vld [vmem:[%s5062_s2 + $0x178] sm:$0xff] }
 0x3f9   :  { %1990 = vmatpush.msrb.mxu3 %v4498_v58 }
 0x3fb   :  { %v2553_v60 = vpop.eup %2552 }
 0x3fc   :  { %v1563_v61 = vadd.f32 1.0, %v2553_v60  ;;  %v4505_v60 = vld [vmem:[%s5062_s2 + $0x140] sm:$0xff] }
 0x3fd   :  { %v2555_v6 = vpop.eup %2554 }
 0x3fe   :  { %v2557_v0 = vpop.eup %2556  ;;  %2558 = vrcp.f32 %v1563_v61  ;;  %v1585_v13 = vadd.f32 1.0, %v2555_v6  ;;  %v1575_v17 = vand.u32 2147483648, %v1563_v61  ;;  %v1573_v24 = vand.u32 2147483647, %v1563_v61  ;;  %v4515_v6 = vld [vmem:[%s5062_s2 + $0x150] sm:$0xff] }
 0x3ff   :  { %v1609_v3 = vadd.f32 1.0, %v2557_v0  ;;  %vm1569_vm13 = vweird.f32 %v1563_v61  ;;  %v4522_v0 = vld [vmem:[%s5062_s2 + $0x158] sm:$0xff]  ;;  %1971 = vmatpush.msrb.mxu2 %v4515_v6 }
 0x400   :  { %2560 = vrcp.f32 %v1585_v13  ;;  %v1597_v55 = vand.u32 2147483648, %v1585_v13  ;;  %v1595_v63 = vand.u32 2147483647, %v1585_v13  ;;  %v1576_v1 = vor.u32 1.1754944e-38, %v1575_v17  ;;  %1991 = vmatpush.msrb.mxu3 %v4522_v0  ;;  %v4561_v17 = vld [vmem:[%s5062_s2 + $0x110] sm:$0xff] }
 0x401   :  { %2562 = vrcp.f32 %v1609_v3  ;;  %vm1574_vm3 = vcmp.eq.f32.partialorder %v1573_v24, 8.507059e+37  ;;  %vm1591_vm4 = vweird.f32 %v1585_v13  ;;  %v1621_v35 = vand.u32 2147483648, %v1609_v3  ;;  %v4573_v24 = vld [vmem:[%s5062_s2 + $0xe0] sm:$0xff] }
 0x402   :  { %2564 = vtanh.f32 %v1601_v11  ;;  %v1598_v31 = vor.u32 1.1754944e-38, %v1597_v55  ;;  %vm1596_vm6 = vcmp.eq.f32.partialorder %v1595_v63, 8.507059e+37  ;;  %vm1615_vm8 = vweird.f32 %v1609_v3  ;;  %v4549_v11 = vld [vmem:[%s5062_s2 + $0x100] sm:$0xff]  ;;  %v4578_v55 = vld [vmem:[%s5062_s2 + $0xe8] sm:$0xff]  ;;  %v4590_v63 = vld [vmem:[%s5062_s2 + $0xf8] sm:$0xff] }
 0x403   :  { %v1619_v40 = vand.u32 2147483647, %v1609_v3  ;;  %v1622_v8 = vor.u32 1.1754944e-38, %v1621_v35 }
 0x404   :  { %v2559_v4 = vpop.eup %2558 }
 0x405   :  { %v1565_v5 = vmul.f32 %v2559_v4, %v1563_v61  ;;  %vm1570_vm12 = vweird.f32 %v2559_v4  ;;  %vm1620_vm10 = vcmp.eq.f32.partialorder %v1619_v40, 8.507059e+37  ;;  %v4510_v61 = vld [vmem:[%s5062_s2 + $0x148] sm:$0xff] }
 0x406   :  { %v2561_v10 = vpop.eup %2560  ;;  %vm1571_vm15 = vmor %vm1569_vm13, %vm1570_vm12  ;;  %1951 = vmatpush.msrb.mxu1 %v4510_v61 }
 0x407   :  { %v2563_v14 = vpop.eup %2562  ;;  %v1566_v15 = vsub.f32 1.0, %v1565_v5  ;;  %v1587_v56 = vmul.f32 %v2561_v10, %v1585_v13  ;;  %vm1592_vm14 = vweird.f32 %v2561_v10  ;;  %v4527_v13 = vld [vmem:[%s5062_s2 + $0x120] sm:$0xff]  ;;  %v4539_v5 = vld [vmem:[%s5062_s2 + $0x130] sm:$0xff] }
 0x408   :  { %v1611_v21 = vmul.f32 %v2563_v14, %v1609_v3  ;;  %vm1593_vm5 = vmor %vm1591_vm4, %vm1592_vm14  ;;  %v2565_v18 = vpop.eup %2564  ;;  %vm1616_vm7 = vweird.f32 %v2563_v14  ;;  %v4532_v3 = vld [vmem:[%s5062_s2 + $0x128] sm:$0xff]  ;;  %1972 = vmatpush.msrb.mxu2 %v4539_v5 }
 0x409   :  { %v1588_v22 = vsub.f32 1.0, %v1587_v56  ;;  %v1567_v23 = vmul.f32 %v2559_v4, %v1566_v15  ;;  %vm1617_vm9 = vmor %vm1615_vm8, %vm1616_vm7  ;;  %1952 = vmatpush.msrb.mxu1 %v4532_v3  ;;  %v4556_v56 = vld [vmem:[%s5062_s2 + $0x108] sm:$0xff] }
 0x40a   :  { %v1612_v7 = vsub.f32 1.0, %v1611_v21  ;;  %v4566_v21 = vld [vmem:[%s5062_s2 + $0x118] sm:$0xff]  ;;  %1973 = vmatpush.msrb.mxu2 %v4561_v17 }
 0x40b   :  { %v1568_v57 = vadd.f32 %v2559_v4, %v1567_v23  ;;  %v1589_v62 = vmul.f32 %v2561_v10, %v1588_v22  ;;  %1953 = vmatpush.msrb.mxu1 %v4556_v56 }
 0x40c   :  { %v1613_v9 = vmul.f32 %v2563_v14, %v1612_v7 }
 0x40d   :  { %v1572_v19 = vsel %vm1571_vm15, %v2559_v4, %v1568_v57  ;;  %v1590_v59 = vadd.f32 %v2561_v10, %v1589_v62  ;;  %v4585_v62 = vld [vmem:[%s5062_s2 + $0xf0] sm:$0xff]  ;;  %1954 = vmatpush.msrb.mxu1 %v4578_v55 }
 0x40e   :  { %v1577_v51 = vsel %vm1574_vm3, %v1576_v1, %v1572_v19  ;;  %v1614_v30 = vadd.f32 %v2563_v14, %v1613_v9  ;;  %v4599_v19 = vld [vmem:[%s5062_s2 + $0xc0] sm:$0xff]  ;;  %1974 = vmatpush.msrb.mxu2 %v4585_v62 }
 0x40f   :  { %v1594_v28 = vsel %vm1593_vm5, %v2561_v10, %v1590_v59  ;;  %v1626_v12 = vmul.f32 %v2565_v18, %v1577_v51  ;;  %v4544_v10 = vld [vmem:[%s5062_s2 + $0x138] sm:$0xff]  ;;  %v4604_v59 = vld [vmem:[%s5062_s2 + $0xc8] sm:$0xff]  ;;  %v4626_v9 = vld [vmem:[%s5062_s2 + $0xa0] sm:$0xff] }
 0x410   :  { %v1599_v32 = vsel %vm1596_vm6, %v1598_v31, %v1594_v28  ;;  %v1618_v39 = vsel %vm1617_vm9, %v2563_v14, %v1614_v30  ;;  %1992 = vmatpush.msrb.mxu3 %v4544_v10  ;;  %v1632_v51 = vld [vmem:[#allocation2 + $0x5] ss:$8 sm:$0xf]  ;;  %1955 = vmatpush.msrb.mxu1 %v4604_v59 }
 0x411   :  { %v1625_v37 = vmul.f32 %v1599_v32, %v4372_v41  ;;  %v1623_v16 = vsel %vm1620_vm10, %v1622_v8, %v1618_v39  ;;  %v4385_v41 = vld [vmem:[%s5062_s2 + $0x1e0] sm:$0xff]  ;;  %v4612_v28 = vld [vmem:[%s5062_s2 + $0xd0] sm:$0xff]  ;;  %v4617_v18 = vld [vmem:[%s5062_s2 + $0xd8] sm:$0xff] }
 0x412   :  { %1926 = vmatpush.msrb.mxu0 %v4385_v41  ;;  %1993 = vmatpush.msrb.mxu3 %v4566_v21  ;;  %v4643_v30 = vld [vmem:[%s5062_s2 + $0xb8] sm:$0xff]  ;;  %v4653_v8 = vld [vmem:[%s5062_s2 + $0x80] sm:$0xff] }
 0x413   :  { %v4379_v34 = vadd.f32 %v1626_v12, %v1625_v37  ;;  %v4631_v37 = vld [vmem:[%s5062_s2 + $0xa8] sm:$0xff]  ;;  %v4638_v12 = vld [vmem:[%s5062_s2 + $0xb0] sm:$0xff]  ;;  %1975 = vmatpush.msrb.mxu2 %v4612_v28 }
 0x414   :  { %1927 = vmatpush.msrb.mxu0 %v4409_v27  ;;  %1994 = vmatpush.msrb.mxu3 %v4590_v63 }
 0x415   :  { %2566 = vtanh.f32 %v4379_v34  ;;  %1956 = vmatpush.msrb.mxu1 %v4631_v37  ;;  %1976 = vmatpush.msrb.mxu2 %v4638_v12 }
 0x416   :  { %1928 = vmatpush.msrb.mxu0 %v4433_v36  ;;  %1995 = vmatpush.msrb.mxu3 %v4617_v18 }
 0x418   :  { %1929 = vmatpush.msrb.mxu0 %v4457_v45  ;;  %1996 = vmatpush.msrb.mxu3 %v4643_v30 }
 0x41a   :  { %1930 = vmatpush.msrb.mxu0 %v4481_v50 }
 0x41b   :  { %v2567_v46 = vpop.eup %2566 }
 0x41c   :  { %v1629_v2 = vmul.f32 %v2567_v46, %v1623_v16  ;;  %1931 = vmatpush.msrb.mxu0 %v4505_v60  ;;  %v4658_v46 = vld [vmem:[%s5062_s2 + $0x88] sm:$0xff]  ;;  %v4665_v16 = vld [vmem:[%s5062_s2 + $0x90] sm:$0xff] }
 0x41d   :  { %1957 = vmatpush.msrb.mxu1 %v4658_v46  ;;  %1977 = vmatpush.msrb.mxu2 %v4665_v16 }
 0x41e   :  { %1630 = vst [vmem:[#allocation3 + $0x4] sm:$0x1] %v1629_v2  ;;  %1713 = vmatmul.f32.vlgmr.msra.gmra.mxu0 %v1629_v2  ;;  %1733 = vmatmul.f32.vlgmr.msra.gmra.mxu1 %v1629_v2 }
 0x41f   :  { %1753 = vmatmul.f32.vlgmr.msra.gmra.mxu2 %v1629_v2  ;;  %1773 = vmatmul.f32.vlgmr.msra.gmra.mxu3 %v1629_v2  ;;  %v4670_v2 = vld [vmem:[%s5062_s2 + $0x98] sm:$0xff] }
 0x420   :  { %1932 = vmatpush.msrb.mxu0 %v4527_v13  ;;  %1997 = vmatpush.msrb.mxu3 %v4670_v2 }
 0x422   :  { %1933 = vmatpush.msrb.mxu0 %v4549_v11 }
 0x424   :  { %1934 = vmatpush.msrb.mxu0 %v4573_v24 }
 0x426   :  { %1935 = vmatpush.msrb.mxu0 %v4599_v19 }
 0x428   :  { %1936 = vmatpush.msrb.mxu0 %v4626_v9 }
 0x42a   :  { %1937 = vmatpush.msrb.mxu0 %v4653_v8 }
 0x49b   :  { %v1734_v54 = vpop.f32.mrf.mxu1  ;;  %v1714_v57 = vpop.f32.mrf.mxu0 }
 0x49c   :  { %v1781_v4 = vrot.slane %v1734_v54, 7 }
 0x49e   :  { %v1784_v1 = vsel %vm636_vm0, %v1714_v57, %v1781_v4  ;;  %v4701_v57 = vld [vmem:[%s5062_s2 + $0x40] sm:$0xff] }
 0x49f   :  { %5147 = vst [vmem:[#allocation17_spill] sm:$0xff] %v4701_v57 }
 0x4a2   :  { %v1754_v14 = vpop.f32.mrf.mxu2  ;;  %v1774_v15 = vpop.f32.mrf.mxu3 }
 0x4a3   :  { %v1782_v22 = vrot.slane %v1754_v14, 6  ;;  %v1783_v23 = vrot.slane %v1774_v15, 5  ;;  %v4677_v14 = vld [vmem:[%s5062_s2 + $0x60] sm:$0xff]  ;;  %v4682_v15 = vld [vmem:[%s5062_s2 + $0x68] sm:$0xff] }
 0x4a4   :  { %1938 = vmatpush.msrb.mxu0 %v4677_v14  ;;  %1958 = vmatpush.msrb.mxu1 %v4682_v15 }
 0x4a5   :  { %v1785_v7 = vsel %vm638_vm1, %v1782_v22, %v1783_v23  ;;  %v4689_v22 = vld [vmem:[%s5062_s2 + $0x70] sm:$0xff]  ;;  %v4694_v23 = vld [vmem:[%s5062_s2 + $0x78] sm:$0xff] }
 0x4a6   :  { %v1786_v31 = vsel %vm640_vm2, %v1784_v1, %v1785_v7  ;;  %5146 = vst [vmem:[#allocation16_spill] sm:$0xff] %v4694_v23  ;;  %v4706_v1 = vld [vmem:[%s5062_s2 + $0x48] sm:$0xff]  ;;  %v4713_v7 = vld [vmem:[%s5062_s2 + $0x50] sm:$0xff]  ;;  %1978 = vmatpush.msrb.mxu2 %v4689_v22  ;;  %1998 = vmatpush.msrb.mxu3 %v4694_v23 }
 0x4a7   :  { %v4619_v32 = vadd.f32 %v1786_v31, %v1632_v51  ;;  %5148 = vst [vmem:[#allocation18_spill] sm:$0xff] %v4706_v1  ;;  %v4718_v51 = vld [vmem:[%s5062_s2 + $0x58] sm:$0xff]  ;;  %v4725_v31 = vld [vmem:[%s5062_s2 + $0x20] sm:$0xff]  ;;  %1939 = vmatpush.msrb.mxu0 %v4701_v57  ;;  %1959 = vmatpush.msrb.mxu1 %v4706_v1  ;;  %v4754_v1 = vld [vmem:[%s5062_s2 + $0x8] sm:$0xff] }
 0x4a8   :  { %5149 = vst [vmem:[#allocation19_spill] sm:$0xff] %v4713_v7  ;;  %1979 = vmatpush.msrb.mxu2 %v4713_v7  ;;  %1999 = vmatpush.msrb.mxu3 %v4718_v51  ;;  %v4768_v7 = vld [vmem:[%s5062_s2 + $0x18] sm:$0xff] }
 0x4a9   :  { %v2475_v35 = vmul.f32 -1.442695, %v4619_v32  ;;  %v1809_v40 = vrot.slane %v4619_v32, 1  ;;  %v1833_v39 = vrot.slane %v4619_v32, 3  ;;  %5150 = vst [vmem:[#allocation20_spill] sm:$0xff] %v4718_v51  ;;  %1940 = vmatpush.msrb.mxu0 %v4725_v31  ;;  %v4763_v51 = vld [vmem:[%s5062_s2 + $0x10] sm:$0xff] }
 0x4aa   :  { %5151 = vst [vmem:[#allocation21_spill] sm:$0xff] %v4725_v31 }
 0x4ab   :  { %2568 = vpow2.f32 %v2475_v35  ;;  %v2476_v54 = vmul.f32 -1.442695, %v1809_v40  ;;  %v2477_v4 = vmul.f32 -1.442695, %v1833_v39  ;;  %v4730_v35 = vld [vmem:[%s5062_s2 + $0x28] sm:$0xff]  ;;  %v4737_v40 = vld [vmem:[%s5062_s2 + $0x30] sm:$0xff] }
 0x4ac   :  { %5152 = vst [vmem:[#allocation22_spill] sm:$0xff] %v4730_v35  ;;  %v4742_v39 = vld [vmem:[%s5062_s2 + $0x38] sm:$0xff]  ;;  %1960 = vmatpush.msrb.mxu1 %v4730_v35  ;;  %1980 = vmatpush.msrb.mxu2 %v4737_v40 }
 0x4ad   :  { %2570 = vpow2.f32 %v2476_v54  ;;  %2000 = vmatpush.msrb.mxu3 %v4742_v39 }
 0x4ae   :  { %2572 = vpow2.f32 %v2477_v4  ;;  %v4749_v4 = vld [vmem:[%s5062_s2] sm:$0xff]  ;;  %1961 = vmatpush.msrb.mxu1 %v4754_v1  ;;  %1981 = vmatpush.msrb.mxu2 %v4763_v51 }
 0x4af   :  { %1941 = vmatpush.msrb.mxu0 %v4749_v4  ;;  %2001 = vmatpush.msrb.mxu3 %v4768_v7 }
 0x4b0   :  { %2175 = vmatpush.msra.mxu1 %v4390_v20  ;;  %2195 = vmatpush.msra.mxu2 %v4395_v25  ;;  %v1830_v25 = vrot.slane %v4619_v32, 2 }
 0x4b1   :  { %v2569_v54 = vpop.eup %2568  ;;  %2155 = vmatpush.msra.mxu0 %v4385_v41  ;;  %2215 = vmatpush.msra.mxu3 %v4402_v26  ;;  %v5158_v32 = vld [vmem:[#allocation21_spill] sm:$0xff] }
 0x4b2   :  { %v4756_v57 = vadd.f32 1.0, %v2569_v54  ;;  %2176 = vmatpush.msra.mxu1 %v4414_v29  ;;  %2196 = vmatpush.msra.mxu2 %v4419_v43 }
 0x4b3   :  { %v2571_v23 = vpop.eup %2570  ;;  %2156 = vmatpush.msra.mxu0 %v4409_v27  ;;  %2216 = vmatpush.msra.mxu3 %v4426_v33 }
 0x4b4   :  { %v2573_v54 = vpop.eup %2572  ;;  %2574 = vrcp.f32 %v4756_v57  ;;  %v4773_v31 = vadd.f32 1.0, %v2571_v23  ;;  %2177 = vmatpush.msra.mxu1 %v4438_v38  ;;  %2197 = vmatpush.msra.mxu2 %v4443_v42  ;;  %v1804_v43 = vand.u32 2147483648, %v4756_v57  ;;  %v1802_v42 = vand.u32 2147483647, %v4756_v57 }
 0x4b5   :  { %v4777_v35 = vadd.f32 1.0, %v2573_v54  ;;  %2157 = vmatpush.msra.mxu0 %v4433_v36  ;;  %2217 = vmatpush.msra.mxu3 %v4450_v44  ;;  %vm1798_vm12 = vweird.f32 %v4756_v57 }
 0x4b6   :  { %2576 = vrcp.f32 %v4773_v31  ;;  %2178 = vmatpush.msra.mxu1 %v4462_v47  ;;  %2198 = vmatpush.msra.mxu2 %v4467_v48  ;;  %v1826_v44 = vand.u32 2147483648, %v4773_v31  ;;  %v1824_v48 = vand.u32 2147483647, %v4773_v31  ;;  %vm1803_vm15 = vcmp.eq.f32.partialorder %v1802_v42, 8.507059e+37 }
 0x4b7   :  { %2578 = vrcp.f32 %v4777_v35  ;;  %2158 = vmatpush.msra.mxu0 %v4457_v45  ;;  %2218 = vmatpush.msra.mxu3 %v4474_v49  ;;  %v1805_v49 = vor.u32 1.1754944e-38, %v1804_v43  ;;  %vm1820_vm3 = vweird.f32 %v4773_v31  ;;  %vm1844_vm7 = vweird.f32 %v4777_v35 }
 0x4b8   :  { %2179 = vmatpush.msra.mxu1 %v4486_v52  ;;  %2199 = vmatpush.msra.mxu2 %v4491_v53  ;;  %2580 = vtanh.f32 %v1830_v25  ;;  %vm1825_vm5 = vcmp.eq.f32.partialorder %v1824_v48, 8.507059e+37 }
 0x4b9   :  { %2159 = vmatpush.msra.mxu0 %v4481_v50  ;;  %2219 = vmatpush.msra.mxu3 %v4498_v58 }
 0x4ba   :  { %v2575_v23 = vpop.eup %2574  ;;  %2180 = vmatpush.msra.mxu1 %v4510_v61  ;;  %2200 = vmatpush.msra.mxu2 %v4515_v6 }
 0x4bb   :  { %v1794_v41 = vmul.f32 %v2575_v23, %v4756_v57  ;;  %vm1799_vm11 = vweird.f32 %v2575_v23  ;;  %2160 = vmatpush.msra.mxu0 %v4505_v60  ;;  %2220 = vmatpush.msra.mxu3 %v4522_v0  ;;  %v1827_v60 = vor.u32 1.1754944e-38, %v1826_v44 }
 0x4bc   :  { %v2577_v20 = vpop.eup %2576  ;;  %vm1800_vm14 = vmor %vm1798_vm12, %vm1799_vm11  ;;  %2181 = vmatpush.msra.mxu1 %v4532_v3  ;;  %2201 = vmatpush.msra.mxu2 %v4539_v5 }
 0x4bd   :  { %v4799_v26 = vpop.eup %2578  ;;  %v1795_v27 = vsub.f32 1.0, %v1794_v41  ;;  %v1816_v29 = vmul.f32 %v2577_v20, %v4773_v31  ;;  %vm1821_vm13 = vweird.f32 %v2577_v20  ;;  %2161 = vmatpush.msra.mxu0 %v4527_v13  ;;  %2221 = vmatpush.msra.mxu3 %v4544_v10 }
 0x4be   :  { %v1840_v33 = vmul.f32 %v4799_v26, %v4777_v35  ;;  %vm1822_vm4 = vmor %vm1820_vm3, %vm1821_vm13  ;;  %2182 = vmatpush.msra.mxu1 %v4556_v56  ;;  %2202 = vmatpush.msra.mxu2 %v4561_v17  ;;  %v2581_v6 = vpop.eup %2580  ;;  %vm1845_vm6 = vweird.f32 %v4799_v26  ;;  %v1848_v56 = vand.u32 2147483647, %v4777_v35 }
 0x4bf   :  { %v1817_v36 = vsub.f32 1.0, %v1816_v29  ;;  %v1796_v38 = vmul.f32 %v2575_v23, %v1795_v27  ;;  %2162 = vmatpush.msra.mxu0 %v4549_v11  ;;  %2222 = vmatpush.msra.mxu3 %v4566_v21  ;;  %vm1846_vm8 = vmor %vm1844_vm7, %vm1845_vm6 }
 0x4c0   :  { %v1841_v50 = vsub.f32 1.0, %v1840_v33  ;;  %2183 = vmatpush.msra.mxu1 %v4578_v55  ;;  %2203 = vmatpush.msra.mxu2 %v4585_v62  ;;  %vm1849_vm9 = vcmp.eq.f32.partialorder %v1848_v56, 8.507059e+37  ;;  %v5154_v55 = vld [vmem:[#allocation17_spill] sm:$0xff]  ;;  %v5155_v62 = vld [vmem:[#allocation18_spill] sm:$0xff] }
 0x4c1   :  { %v1797_v45 = vadd.f32 %v2575_v23, %v1796_v38  ;;  %v1818_v47 = vmul.f32 %v2577_v20, %v1817_v36  ;;  %2163 = vmatpush.msra.mxu0 %v4573_v24  ;;  %2223 = vmatpush.msra.mxu3 %v4590_v63  ;;  %v5153_v24 = vld [vmem:[#allocation16_spill] sm:$0xff] }
 0x4c2   :  { %v1842_v13 = vmul.f32 %v4799_v26, %v1841_v50  ;;  %2184 = vmatpush.msra.mxu1 %v4604_v59  ;;  %2204 = vmatpush.msra.mxu2 %v4612_v28  ;;  %v5156_v59 = vld [vmem:[#allocation19_spill] sm:$0xff]  ;;  %v5157_v28 = vld [vmem:[#allocation20_spill] sm:$0xff] }
 0x4c3   :  { %v1801_v52 = vsel %vm1800_vm14, %v2575_v23, %v1797_v45  ;;  %v1819_v53 = vadd.f32 %v2577_v20, %v1818_v47  ;;  %2164 = vmatpush.msra.mxu0 %v4599_v19  ;;  %2224 = vmatpush.msra.mxu3 %v4617_v18 }
 0x4c4   :  { %v1806_v58 = vsel %vm1803_vm15, %v1805_v49, %v1801_v52  ;;  %v1843_v11 = vadd.f32 %v4799_v26, %v1842_v13  ;;  %2185 = vmatpush.msra.mxu1 %v4631_v37  ;;  %2205 = vmatpush.msra.mxu2 %v4638_v12 }
 0x4c5   :  { %v1823_v61 = vsel %vm1822_vm4, %v2577_v20, %v1819_v53  ;;  %v1855_v5 = vmul.f32 %v2581_v6, %v1806_v58  ;;  %2165 = vmatpush.msra.mxu0 %v4626_v9  ;;  %2225 = vmatpush.msra.mxu3 %v4643_v30  ;;  %v5159_v9 = vld [vmem:[#allocation22_spill] sm:$0xff] }
 0x4c6   :  { %v1828_v0 = vsel %vm1825_vm5, %v1827_v60, %v1823_v61  ;;  %2186 = vmatpush.msra.mxu1 %v4658_v46  ;;  %2206 = vmatpush.msra.mxu2 %v4665_v16  ;;  %v1847_v17 = vsel %vm1846_vm8, %v4799_v26, %v1843_v11 }
 0x4c7   :  { %v1854_v3 = vmul.f32 %v1828_v0, %v4379_v34  ;;  %v1850_v34 = vand.u32 2147483648, %v4777_v35  ;;  %2166 = vmatpush.msra.mxu0 %v4653_v8  ;;  %2226 = vmatpush.msra.mxu3 %v4670_v2 }
 0x4c8   :  { %2187 = vmatpush.msra.mxu1 %v4682_v15  ;;  %2207 = vmatpush.msra.mxu2 %v4689_v22  ;;  %v1861_v22 = vld [vmem:[#allocation2 + $0x6] ss:$8 sm:$0xf] }
 0x4c9   :  { %v4838_v10 = vadd.f32 %v1855_v5, %v1854_v3  ;;  %2167 = vmatpush.msra.mxu0 %v4677_v14  ;;  %v1851_v21 = vor.u32 1.1754944e-38, %v1850_v34  ;;  %2227 = vmatpush.msra.mxu3 %v5153_v24 }
 0x4ca   :  { %2188 = vmatpush.msra.mxu1 %v5155_v62  ;;  %2208 = vmatpush.msra.mxu2 %v5156_v59 }
 0x4cb   :  { %2582 = vtanh.f32 %v4838_v10  ;;  %2168 = vmatpush.msra.mxu0 %v5154_v55  ;;  %v1852_v19 = vsel %vm1849_vm9, %v1851_v21, %v1847_v17  ;;  %2228 = vmatpush.msra.mxu3 %v5157_v28 }
 0x4cc   :  { %2189 = vmatpush.msra.mxu1 %v5159_v9  ;;  %2209 = vmatpush.msra.mxu2 %v4737_v40 }
 0x4cd   :  { %2169 = vmatpush.msra.mxu0 %v5158_v32  ;;  %2229 = vmatpush.msra.mxu3 %v4742_v39  ;;  %v2333_v32 = vld [vmem:[%s5065_s4 + $0x70] sm:$0xff] }
 0x4ce   :  { %2190 = vmatpush.msra.mxu1 %v4754_v1  ;;  %2210 = vmatpush.msra.mxu2 %v4763_v51 }
 0x4cf   :  { %2170 = vmatpush.msra.mxu0 %v4749_v4  ;;  %2230 = vmatpush.msra.mxu3 %v4768_v7 }
 0x4d1   :  { %v2583_v63 = vpop.eup %2582 }
 0x4d2   :  { %v1858_v18 = vmul.f32 %v2583_v63, %v1852_v19 }
 0x4d4   :  { %1859 = vst [vmem:[#allocation3 + $0x5] sm:$0x1] %v1858_v18  ;;  %1942 = vmatmul.f32.vlgmr.msrb.gmra.mxu0 %v1858_v18  ;;  %1962 = vmatmul.f32.vlgmr.msrb.gmra.mxu1 %v1858_v18 }
 0x4d5   :  { %1982 = vmatmul.f32.vlgmr.msrb.gmra.mxu2 %v1858_v18  ;;  %2002 = vmatmul.f32.vlgmr.msrb.gmra.mxu3 %v1858_v18  ;;  %v2334_v18 = vld [vmem:[%s5065_s4 + $0x78] sm:$0xff] }
 0x4d6   :  { %2339 = vmatpush.msrb.mxu0 %v2334_v18 }
 0x4d8   :  { %2340 = vmatpush.msrb.mxu0 %v2333_v32 }
 0x551   :  { %v1963_v37 = vpop.f32.mrf.mxu1  ;;  %v1943_v2 = vpop.f32.mrf.mxu0 }
 0x552   :  { %v2010_v12 = vrot.slane %v1963_v37, 7 }
 0x554   :  { %v2013_v14 = vsel %vm636_vm0, %v1943_v2, %v2010_v12  ;;  %v2331_v2 = vld [vmem:[%s5065_s4 + $0x60] sm:$0xff] }
 0x558   :  { %v1983_v30 = vpop.f32.mrf.mxu2  ;;  %v2003_v8 = vpop.f32.mrf.mxu3 }
 0x559   :  { %v2011_v46 = vrot.slane %v1983_v30, 6  ;;  %v2012_v16 = vrot.slane %v2003_v8, 5  ;;  %v2332_v30 = vld [vmem:[%s5065_s4 + $0x68] sm:$0xff] }
 0x55a   :  { %2341 = vmatpush.msrb.mxu0 %v2332_v30 }
 0x55b   :  { %v2014_v15 = vsel %vm638_vm1, %v2011_v46, %v2012_v16 }
 0x55c   :  { %v2015_v57 = vsel %vm640_vm2, %v2013_v14, %v2014_v15  ;;  %2342 = vmatpush.msrb.mxu0 %v2331_v2 }
 0x55d   :  { %v2017_v31 = vadd.f32 %v2015_v57, %v1861_v22  ;;  %v2090_v22 = vld [vmem:[#allocation2 + $0x7] ss:$8 sm:$0xf] }
 0x55f   :  { %v2478_v1 = vmul.f32 -1.442695, %v2017_v31  ;;  %v2038_v35 = vrot.slane %v2017_v31, 1  ;;  %v2062_v51 = vrot.slane %v2017_v31, 3  ;;  %v2059_v29 = vrot.slane %v2017_v31, 2  ;;  %v2330_v31 = vld [vmem:[%s5065_s4 + $0x58] sm:$0xff] }
 0x560   :  { %2343 = vmatpush.msrb.mxu0 %v2330_v31 }
 0x561   :  { %2584 = vpow2.f32 %v2478_v1  ;;  %v2479_v7 = vmul.f32 -1.442695, %v2038_v35  ;;  %v2480_v40 = vmul.f32 -1.442695, %v2062_v51  ;;  %v2329_v35 = vld [vmem:[%s5065_s4 + $0x50] sm:$0xff] }
 0x562   :  { %2344 = vmatpush.msrb.mxu0 %v2329_v35 }
 0x563   :  { %2586 = vpow2.f32 %v2479_v7 }
 0x564   :  { %2588 = vpow2.f32 %v2480_v40 }
 0x567   :  { %v2585_v39 = vpop.eup %2584 }
 0x568   :  { %v2021_v4 = vadd.f32 1.0, %v2585_v39  ;;  %v2328_v39 = vld [vmem:[%s5065_s4 + $0x48] sm:$0xff] }
 0x569   :  { %v2587_v54 = vpop.eup %2586  ;;  %2345 = vmatpush.msrb.mxu0 %v2328_v39 }
 0x56a   :  { %v2589_v23 = vpop.eup %2588  ;;  %2590 = vrcp.f32 %v2021_v4  ;;  %v2043_v41 = vadd.f32 1.0, %v2587_v54  ;;  %v2033_v38 = vand.u32 2147483648, %v2021_v4  ;;  %v2031_v47 = vand.u32 2147483647, %v2021_v4 }
 0x56b   :  { %v2067_v20 = vadd.f32 1.0, %v2589_v23  ;;  %vm2027_vm11 = vweird.f32 %v2021_v4  ;;  %v2327_v23 = vld [vmem:[%s5065_s4 + $0x40] sm:$0xff] }
 0x56c   :  { %2592 = vrcp.f32 %v2043_v41  ;;  %v2055_v48 = vand.u32 2147483648, %v2043_v41  ;;  %v2053_v52 = vand.u32 2147483647, %v2043_v41  ;;  %v2034_v53 = vor.u32 1.1754944e-38, %v2033_v38  ;;  %2346 = vmatpush.msrb.mxu0 %v2327_v23  ;;  %v2363_v23 = vld [vmem:[%s5066_s6 + $0x18] sm:$0xff] }
 0x56d   :  { %2594 = vrcp.f32 %v2067_v20  ;;  %vm2032_vm14 = vcmp.eq.f32.partialorder %v2031_v47, 8.507059e+37  ;;  %vm2049_vm15 = vweird.f32 %v2043_v41  ;;  %v2079_v24 = vand.u32 2147483648, %v2067_v20 }
 0x56e   :  { %2596 = vtanh.f32 %v2059_v29  ;;  %v2056_v0 = vor.u32 1.1754944e-38, %v2055_v48  ;;  %vm2054_vm4 = vcmp.eq.f32.partialorder %v2053_v52, 8.507059e+37  ;;  %vm2073_vm6 = vweird.f32 %v2067_v20  ;;  %v2319_v48 = vld [vmem:[%s5065_s4] sm:$0xff] }
 0x56f   :  { %v2077_v55 = vand.u32 2147483647, %v2067_v20  ;;  %v2080_v63 = vor.u32 1.1754944e-38, %v2079_v24  ;;  %v2372_v24 = vld [vmem:[%s5066_s6 + $0x60] sm:$0xff] }
 0x570   :  { %v2591_v25 = vpop.eup %2590 }
 0x571   :  { %v2023_v26 = vmul.f32 %v2591_v25, %v2021_v4  ;;  %vm2028_vm10 = vweird.f32 %v2591_v25  ;;  %vm2078_vm8 = vcmp.eq.f32.partialorder %v2077_v55, 8.507059e+37 }
 0x572   :  { %v2593_v27 = vpop.eup %2592  ;;  %vm2029_vm13 = vmor %vm2027_vm11, %vm2028_vm10 }
 0x573   :  { %v2595_v43 = vpop.eup %2594  ;;  %v2024_v33 = vsub.f32 1.0, %v2023_v26  ;;  %v2045_v36 = vmul.f32 %v2593_v27, %v2043_v41  ;;  %vm2050_vm12 = vweird.f32 %v2593_v27  ;;  %v2326_v41 = vld [vmem:[%s5065_s4 + $0x38] sm:$0xff] }
 0x574   :  { %v2069_v42 = vmul.f32 %v2595_v43, %v2067_v20  ;;  %vm2051_vm3 = vmor %vm2049_vm15, %vm2050_vm12  ;;  %v2597_v3 = vpop.eup %2596  ;;  %vm2074_vm5 = vweird.f32 %v2595_v43  ;;  %2347 = vmatpush.msrb.mxu0 %v2326_v41  ;;  %v2325_v20 = vld [vmem:[%s5065_s4 + $0x30] sm:$0xff] }
 0x575   :  { %v2046_v44 = vsub.f32 1.0, %v2045_v36  ;;  %v2025_v45 = vmul.f32 %v2591_v25, %v2024_v33  ;;  %vm2075_vm7 = vmor %vm2073_vm6, %vm2074_vm5  ;;  %v2323_v33 = vld [vmem:[%s5065_s4 + $0x20] sm:$0xff] }
 0x576   :  { %v2070_v58 = vsub.f32 1.0, %v2069_v42  ;;  %2348 = vmatpush.msrb.mxu0 %v2325_v20  ;;  %v2322_v42 = vld [vmem:[%s5065_s4 + $0x18] sm:$0xff]  ;;  %v2362_v20 = vld [vmem:[%s5066_s6 + $0x10] sm:$0xff] }
 0x577   :  { %v2026_v49 = vadd.f32 %v2591_v25, %v2025_v45  ;;  %v2047_v50 = vmul.f32 %v2593_v27, %v2046_v44  ;;  %v2321_v44 = vld [vmem:[%s5065_s4 + $0x10] sm:$0xff]  ;;  %v2320_v45 = vld [vmem:[%s5065_s4 + $0x8] sm:$0xff] }
 0x578   :  { %v2071_v11 = vmul.f32 %v2595_v43, %v2070_v58  ;;  %v2375_v58 = vld [vmem:[%s5066_s6 + $0x78] sm:$0xff] }
 0x579   :  { %v2030_v60 = vsel %vm2029_vm13, %v2591_v25, %v2026_v49  ;;  %v2048_v61 = vadd.f32 %v2593_v27, %v2047_v50  ;;  %2380 = vmatpush.msrb.mxu1 %v2375_v58 }
 0x57a   :  { %v2035_v6 = vsel %vm2032_vm14, %v2034_v53, %v2030_v60  ;;  %v2072_v21 = vadd.f32 %v2595_v43, %v2071_v11  ;;  %v2374_v60 = vld [vmem:[%s5066_s6 + $0x70] sm:$0xff] }
 0x57b   :  { %v2052_v13 = vsel %vm2051_vm3, %v2593_v27, %v2048_v61  ;;  %v2084_v56 = vmul.f32 %v2597_v3, %v2035_v6  ;;  %v2324_v27 = vld [vmem:[%s5065_s4 + $0x28] sm:$0xff]  ;;  %2381 = vmatpush.msrb.mxu1 %v2374_v60 }
 0x57c   :  { %v2057_v5 = vsel %vm2054_vm4, %v2056_v0, %v2052_v13  ;;  %v2076_v62 = vsel %vm2075_vm7, %v2595_v43, %v2072_v21  ;;  %2349 = vmatpush.msrb.mxu0 %v2324_v27  ;;  %v2416_v27 = vld [vmem:[%s5068_s8 + $0x78] sm:$0xff] }
 0x57d   :  { %v2083_v34 = vmul.f32 %v2057_v5, %v4838_v10  ;;  %v2081_v59 = vsel %vm2078_vm8, %v2080_v63, %v2076_v62  ;;  %v2373_v5 = vld [vmem:[%s5066_s6 + $0x68] sm:$0xff]  ;;  %2421 = vmatpush.msrb.mxu2 %v2416_v27 }
 0x57e   :  { %2350 = vmatpush.msrb.mxu0 %v2323_v33  ;;  %2382 = vmatpush.msrb.mxu1 %v2373_v5  ;;  %v2413_v33 = vld [vmem:[%s5068_s8 + $0x60] sm:$0xff] }
 0x57f   :  { %v4877_v17 = vadd.f32 %v2084_v56, %v2083_v34 }
 0x580   :  { %2351 = vmatpush.msrb.mxu0 %v2322_v42  ;;  %2383 = vmatpush.msrb.mxu1 %v2372_v24  ;;  %v2410_v42 = vld [vmem:[%s5068_s8 + $0x48] sm:$0xff] }
 0x581   :  { %2598 = vtanh.f32 %v4877_v17 }
 0x582   :  { %2352 = vmatpush.msrb.mxu0 %v2321_v44  ;;  %v2409_v44 = vld [vmem:[%s5068_s8 + $0x40] sm:$0xff] }
 0x584   :  { %2353 = vmatpush.msrb.mxu0 %v2320_v45  ;;  %v2408_v45 = vld [vmem:[%s5068_s8 + $0x38] sm:$0xff] }
 0x586   :  { %2354 = vmatpush.msrb.mxu0 %v2319_v48  ;;  %v2406_v48 = vld [vmem:[%s5068_s8 + $0x28] sm:$0xff] }
 0x587   :  { %v2599_v19 = vpop.eup %2598 }
 0x588   :  { %v2087_v28 = vmul.f32 %v2599_v19, %v2081_v59 }
 0x58a   :  { %2088 = vst [vmem:[#allocation3 + $0x6] sm:$0x1] %v2087_v28  ;;  %2171 = vmatmul.f32.vlgmr.msra.gmra.mxu0 %v2087_v28  ;;  %2191 = vmatmul.f32.vlgmr.msra.gmra.mxu1 %v2087_v28 }
 0x58b   :  { %2211 = vmatmul.f32.vlgmr.msra.gmra.mxu2 %v2087_v28  ;;  %2231 = vmatmul.f32.vlgmr.msra.gmra.mxu3 %v2087_v28  ;;  %v2371_v28 = vld [vmem:[%s5066_s6 + $0x58] sm:$0xff] }
 0x58c   :  { %2384 = vmatpush.msrb.mxu1 %v2371_v28 }
 0x607   :  { %v2192_v10 = vpop.f32.mrf.mxu1  ;;  %v2172_v16 = vpop.f32.mrf.mxu0 }
 0x608   :  { %v2239_v9 = vrot.slane %v2192_v10, 7 }
 0x60a   :  { %v2242_v14 = vsel %vm636_vm0, %v2172_v16, %v2239_v9  ;;  %v2370_v9 = vld [vmem:[%s5066_s6 + $0x50] sm:$0xff] }
 0x60b   :  { %2385 = vmatpush.msrb.mxu1 %v2370_v9 }
 0x60e   :  { %v2212_v37 = vpop.f32.mrf.mxu2  ;;  %v2232_v12 = vpop.f32.mrf.mxu3 }
 0x60f   :  { %v2240_v8 = vrot.slane %v2212_v37, 6  ;;  %v2241_v46 = vrot.slane %v2232_v12, 5 }
 0x611   :  { %v2243_v15 = vsel %vm638_vm1, %v2240_v8, %v2241_v46  ;;  %v2369_v46 = vld [vmem:[%s5066_s6 + $0x48] sm:$0xff] }
 0x612   :  { %v2244_v57 = vsel %vm640_vm2, %v2242_v14, %v2243_v15  ;;  %v2368_v14 = vld [vmem:[%s5066_s6 + $0x40] sm:$0xff]  ;;  %2386 = vmatpush.msrb.mxu1 %v2369_v46 }
 0x613   :  { %v4898_v1 = vadd.f32 %v2244_v57, %v2090_v22  ;;  %v2367_v57 = vld [vmem:[%s5066_s6 + $0x38] sm:$0xff] }
 0x614   :  { %2387 = vmatpush.msrb.mxu1 %v2368_v14 }
 0x615   :  { %v2481_v51 = vmul.f32 -1.442695, %v4898_v1  ;;  %v2267_v7 = vrot.slane %v4898_v1, 1  ;;  %v2291_v40 = vrot.slane %v4898_v1, 3  ;;  %v2288_v53 = vrot.slane %v4898_v1, 2  ;;  %v2366_v1 = vld [vmem:[%s5066_s6 + $0x30] sm:$0xff] }
 0x616   :  { %2388 = vmatpush.msrb.mxu1 %v2367_v57 }
 0x617   :  { %2600 = vpow2.f32 %v2481_v51  ;;  %v2482_v4 = vmul.f32 -1.442695, %v2267_v7  ;;  %v2483_v54 = vmul.f32 -1.442695, %v2291_v40  ;;  %v2365_v51 = vld [vmem:[%s5066_s6 + $0x28] sm:$0xff]  ;;  %v2364_v40 = vld [vmem:[%s5066_s6 + $0x20] sm:$0xff] }
 0x618   :  { %2389 = vmatpush.msrb.mxu1 %v2366_v1 }
 0x619   :  { %2602 = vpow2.f32 %v2482_v4 }
 0x61a   :  { %2604 = vpow2.f32 %v2483_v54  ;;  %2390 = vmatpush.msrb.mxu1 %v2365_v51 }
 0x61c   :  { %2391 = vmatpush.msrb.mxu1 %v2364_v40 }
 0x61d   :  { %v2601_v25 = vpop.eup %2600 }
 0x61e   :  { %v2250_v26 = vadd.f32 1.0, %v2601_v25  ;;  %2392 = vmatpush.msrb.mxu1 %v2363_v23  ;;  %v2361_v25 = vld [vmem:[%s5066_s6 + $0x8] sm:$0xff] }
 0x61f   :  { %v2603_v29 = vpop.eup %2602 }
 0x620   :  { %v2605_v43 = vpop.eup %2604  ;;  %2606 = vrcp.f32 %v2250_v26  ;;  %v2272_v36 = vadd.f32 1.0, %v2603_v29  ;;  %v2262_v13 = vand.u32 2147483648, %v2250_v26  ;;  %v2260_v11 = vand.u32 2147483647, %v2250_v26  ;;  %2393 = vmatpush.msrb.mxu1 %v2362_v20  ;;  %v2415_v29 = vld [vmem:[%s5068_s8 + $0x70] sm:$0xff] }
 0x621   :  { %v4924_v38 = vadd.f32 1.0, %v2605_v43  ;;  %vm2256_vm1 = vweird.f32 %v2250_v26  ;;  %v2414_v43 = vld [vmem:[%s5068_s8 + $0x68] sm:$0xff]  ;;  %2422 = vmatpush.msrb.mxu2 %v2415_v29 }
 0x622   :  { %2608 = vrcp.f32 %v2272_v36  ;;  %v2284_v21 = vand.u32 2147483648, %v2272_v36  ;;  %v2282_v62 = vand.u32 2147483647, %v2272_v36  ;;  %v2263_v19 = vor.u32 1.1754944e-38, %v2262_v13  ;;  %2394 = vmatpush.msrb.mxu1 %v2361_v25  ;;  %v2486_v13 = vld [vmem:[%s5067_s7] ss:$0 sm:$0xff] }
 0x623   :  { %2610 = vrcp.f32 %v4924_v38  ;;  %vm2261_vm10 = vcmp.eq.f32.partialorder %v2260_v11, 8.507059e+37  ;;  %vm2278_vm11 = vweird.f32 %v2272_v36  ;;  %v2308_v31 = vand.u32 2147483648, %v4924_v38  ;;  %2423 = vmatpush.msrb.mxu2 %v2414_v43 }
 0x624   :  { %2612 = vtanh.f32 %v2288_v53  ;;  %v2285_v32 = vor.u32 1.1754944e-38, %v2284_v21  ;;  %vm2283_vm13 = vcmp.eq.f32.partialorder %v2282_v62, 8.507059e+37  ;;  %vm2302_vm15 = vweird.f32 %v4924_v38  ;;  %v2487_v21 = vld [vmem:[%s5069_s9] ss:$0 sm:$0xff] }
 0x625   :  { %v2309_v7 = vor.u32 1.1754944e-38, %v2308_v31  ;;  %2424 = vmatpush.msrb.mxu2 %v2413_v33 }
 0x626   :  { %v2607_v47 = vpop.eup %2606 }
 0x627   :  { %v2252_v49 = vmul.f32 %v2607_v47, %v2250_v26  ;;  %vm2257_vm0 = vweird.f32 %v2607_v47  ;;  %v2360_v26 = vld [vmem:[%s5066_s6] sm:$0xff] }
 0x628   :  { %v2609_v50 = vpop.eup %2608  ;;  %vm2258_vm2 = vmor %vm2256_vm1, %vm2257_vm0  ;;  %2395 = vmatpush.msrb.mxu1 %v2360_v26 }
 0x629   :  { %v2253_v52 = vsub.f32 1.0, %v2252_v49  ;;  %v4946_v61 = vpop.eup %2610  ;;  %v2274_v6 = vmul.f32 %v2609_v50, %v2272_v36  ;;  %vm2279_vm9 = vweird.f32 %v2609_v50  ;;  %v2412_v36 = vld [vmem:[%s5068_s8 + $0x58] sm:$0xff]  ;;  %v2405_v49 = vld [vmem:[%s5068_s8 + $0x20] sm:$0xff] }
 0x62a   :  { %v2298_v3 = vmul.f32 %v4946_v61, %v4924_v38  ;;  %vm2280_vm12 = vmor %vm2278_vm11, %vm2279_vm9  ;;  %v2613_v12 = vpop.eup %2612  ;;  %vm2303_vm14 = vweird.f32 %v4946_v61  ;;  %2425 = vmatpush.msrb.mxu2 %v2412_v36 }
 0x62b   :  { %v2254_v0 = vmul.f32 %v2607_v47, %v2253_v52  ;;  %v2275_v34 = vsub.f32 1.0, %v2274_v6  ;;  %vm2304_vm3 = vmor %vm2302_vm15, %vm2303_vm14  ;;  %v2485_v52 = vld [vmem:[%s5064_s5] ss:$0 sm:$0xff]  ;;  %v2402_v6 = vld [vmem:[%s5068_s8 + $0x8] sm:$0xff] }
 0x62c   :  { %v2299_v59 = vsub.f32 1.0, %v2298_v3 }
 0x62d   :  { %v2255_v56 = vadd.f32 %v2607_v47, %v2254_v0  ;;  %v2276_v55 = vmul.f32 %v2609_v50, %v2275_v34  ;;  %v2401_v0 = vld [vmem:[%s5068_s8] sm:$0xff]  ;;  %v2441_v34 = vlaneseq }
 0x62e   :  { %v2300_v8 = vmul.f32 %v4946_v61, %v2299_v59 }
 0x62f   :  { %v2259_v63 = vsel %vm2258_vm2, %v2607_v47, %v2255_v56  ;;  %v2277_v10 = vadd.f32 %v2609_v50, %v2276_v55  ;;  %v2407_v47 = vld [vmem:[%s5068_s8 + $0x30] sm:$0xff]  ;;  %v2442_v56 = vand.u32 127, %v2441_v34 }
 0x630   :  { %v2264_v18 = vsel %vm2261_vm10, %v2263_v19, %v2259_v63  ;;  %v2301_v22 = vadd.f32 %v4946_v61, %v2300_v8 }
 0x631   :  { %v2281_v37 = vsel %vm2280_vm12, %v2609_v50, %v2277_v10  ;;  %v2313_v2 = vmul.f32 %v2613_v12, %v2264_v18  ;;  %v2404_v50 = vld [vmem:[%s5068_s8 + $0x18] sm:$0xff]  ;;  %vm2443_vm5 = vcmp.lt.s32.totalorder %v2442_v56, 3 }
 0x632   :  { %v2286_v30 = vsel %vm2283_vm13, %v2285_v32, %v2281_v37  ;;  %v2305_v35 = vsel %vm2304_vm3, %v4946_v61, %v2301_v22  ;;  %v2403_v61 = vld [vmem:[%s5068_s8 + $0x10] sm:$0xff] }
 0x633   :  { %v2312_v16 = vmul.f32 %v2286_v30, %v4877_v17  ;;  %v2306_v17 = vand.u32 2147483647, %v4924_v38  ;;  %v2411_v38 = vld [vmem:[%s5068_s8 + $0x50] sm:$0xff] }
 0x634   :  { %2426 = vmatpush.msrb.mxu2 %v2411_v38 }
 0x635   :  { %v2314_v15 = vadd.f32 %v2313_v2, %v2312_v16  ;;  %vm2307_vm4 = vcmp.eq.f32.partialorder %v2306_v17, 8.507059e+37 }
 0x636   :  { %v2310_v4 = vsel %vm2307_vm4, %v2309_v7, %v2305_v35  ;;  %2427 = vmatpush.msrb.mxu2 %v2410_v42 }
 0x637   :  { %2614 = vtanh.f32 %v2314_v15 }
 0x638   :  { %2428 = vmatpush.msrb.mxu2 %v2409_v44 }
 0x63a   :  { %2429 = vmatpush.msrb.mxu2 %v2408_v45 }
 0x63c   :  { %2430 = vmatpush.msrb.mxu2 %v2407_v47 }
 0x63d   :  { %v2615_v39 = vpop.eup %2614 }
 0x63e   :  { %v2316_v54 = vmul.f32 %v2615_v39, %v2310_v4  ;;  %2431 = vmatpush.msrb.mxu2 %v2406_v48 }
 0x640   :  { %2317 = vst [vmem:[#allocation3 + $0x7] sm:$0x1] %v2316_v54  ;;  %2432 = vmatpush.msrb.mxu2 %v2405_v49 }
 0x642   :  { %2433 = vmatpush.msrb.mxu2 %v2404_v50 }
 0x644   :  { %2434 = vmatpush.msrb.mxu2 %v2403_v61 }
 0x646   :  { %2435 = vmatpush.msrb.mxu2 %v2402_v6 }
 0x647   :  { %v2318_v41 = vld [vmem:[#allocation3] sm:$0xff] }
 0x648   :  { %2355 = vmatmul.f32.vlgmr.msrb.gmra.mxu0 %v2318_v41  ;;  %2436 = vmatpush.msrb.mxu2 %v2401_v0 }
 0x6c5   :  { %v2356_v53 = vpop.f32.mrf.mxu0 }
 0x6c6   :  { %v2357_v58 = vadd.f32 %v2485_v52, %v2356_v53 }
 0x6c8   :  { %v2359_v60 = vmax.f32 %v2357_v58, 0.0 }
 0x6ca   :  { %2396 = vmatmul.f32.vlgmr.msrb.gmra.mxu1 %v2359_v60 }
 0x747   :  { %v2397_v3 = vpop.f32.mrf.mxu1 }
 0x748   :  { %v2398_v5 = vadd.f32 %v2486_v13, %v2397_v3 }
 0x74a   :  { %v2400_v11 = vmax.f32 %v2398_v5, 0.0 }
 0x74c   :  { %2437 = vmatmul.f32.vlgmr.msrb.gmra.mxu2 %v2400_v11 }
 0x7cf   :  { %v2438_v24 = vpop.f32.mrf.mxu2 }
 0x7d0   :  { %v2439_v55 = vadd.f32 %v2487_v21, %v2438_v24 }
 0x7d2   :  { %v2444_v62 = vsel %vm2443_vm5, %v2439_v55, -1e+30 }
 0x7d3   :  { %2445 = vmax.xlane.f32.xlu0 %v2444_v62 }
 0x846   :  { %v2446_v63 = vpop.xlane.xlu0 %2445 }
 0x847   :  { %v2447_v19 = vsub.f32 %v2444_v62, %v2446_v63 }
 0x849   :  { %v2448_v59 = vmul.f32 1.442695, %v2447_v19 }
 0x84b   :  { %2616 = vpow2.f32 %v2448_v59 }
 0x851   :  { %v2617_v28 = vpop.eup %2616 }
 0x852   :  { %2450 = vadd.xlane.f32.xlu0 %v2617_v28 }
 0x8c5   :  { %v2451_v10 = vpop.xlane.xlu0 %2450 }
 0x8c6   :  { %2618 = vlog2.f32 %v2451_v10 }
 0x8cc   :  { %v2619_v18 = vpop.eup %2618 }
 0x8cd   :  { %v2453_v32 = vmul.f32 0.6931472, %v2619_v18 }
 0x8cf   :  { %v2454_v9 = vsub.f32 %v2447_v19, %v2453_v32 }
 0x8d1   :  { %2455 = vst [vmem:[%s5070_s10] sm:$0xff] %v2454_v9 }

</bundles_post_ra>
